<compile_context>
chip_gen: v6e
topology: v6e:2x2x1
jax: 0.10.0
libtpu: 0.0.40
codegen_flags: <defaults>
</compile_context>

<pallas_src>
import numpy as np

import jax
import jax.numpy as jnp
from jax import lax
from jax.experimental import pallas as pl
from jax.experimental.pallas import tpu as pltpu

NO_FRAMES = 4
CROP_HW = 16
WHOLE_HW = 32
STATS_DIM = 8
ACTION_SPACE = 6
HIDDEN = 128  # fc1_output == lstm_size

VMEM_SPEC = pl.BlockSpec(memory_space=pltpu.MemorySpace.VMEM)

TAPS3 = tuple((di, dj) for di in range(3) for dj in range(3))


# --------------------------------------------------------------------------- #
# Small constant operators (built once in numpy).
# --------------------------------------------------------------------------- #
def _build_constants():
    # rows 0..8: per-tap zero-padding masks for a 3x3/s1/p1 conv on a FULL 8x8 grid
    # row 9    : margin mask keeping the 6x6 block embedded in the 8x8 grid
    masks8 = np.zeros((10, 64), np.float32)
    for t, (di, dj) in enumerate(TAPS3):
        for i in range(8):
            for j in range(8):
                if 0 <= i + di - 1 < 8 and 0 <= j + dj - 1 < 8:
                    masks8[t, i * 8 + j] = 1.0
    for i in range(6):
        for j in range(6):
            masks8[9, i * 8 + j] = 1.0

    # margin mask keeping the 15x15 block embedded in a 16x16 grid
    margin16 = np.zeros((1, 256), np.float32)
    for i in range(15):
        for j in range(15):
            margin16[0, i * 16 + j] = 1.0

    # stride-2 compaction: 16x16 grid (stride-1 conv output) -> 8x8 conv output
    csel21 = np.zeros((256, 64), np.float32)
    for oi in range(8):
        for oj in range(8):
            csel21[(2 * oi) * 16 + 2 * oj, oi * 8 + oj] = 1.0

    # final pool compactions on the 6x6-in-8x8 grid:
    #   [:, 0:16]  crop  MaxPool3/s1 -> 4x4 (row-major flatten order)
    #   [:, 16:20] whole MaxPool3/s3 -> 2x2
    csel_cw = np.zeros((64, 20), np.float32)
    for oi in range(4):
        for oj in range(4):
            csel_cw[oi * 8 + oj, oi * 4 + oj] = 1.0
    for oi in range(2):
        for oj in range(2):
            csel_cw[(3 * oi) * 8 + 3 * oj, 16 + oi * 2 + oj] = 1.0

    return masks8, margin16, csel21, csel_cw


# --------------------------------------------------------------------------- #
# The single fused kernel.
# --------------------------------------------------------------------------- #
def _fused_forward_kernel(
    crop_cols_ref, whole_cols_ref, stats_ref,
    csel21_ref, csel_cw_ref, masks8_ref, margin16_ref,
    conv_w16_ref, conv_b16_ref, mid_w_ref, mid_b_ref,
    fc0_w_ref, fc1_w2_ref, fc1_ws_ref, tail_w_ref, tail_b_ref,
    probs_ref, logits_ref,
):
    f32 = jnp.float32

    def mm(a, b):
        return jnp.dot(a, b, preferred_element_type=f32)

    def rot(x, off, n):
        # circular lane shift: out[:, p] = x[:, (p + off) % n]
        # (slice+concat form of an XLU lane rotation; semantics backend-exact)
        off = off % n
        if off == 0:
            return x
        return jnp.concatenate([x[:, off:], x[:, :off]], axis=1)

    def im2col_3x3(x, w, masks=None):
        # stacked 3x3/s1/p1 im2col rows of a (C, w*w)-flattened grid via lane rotations;
        # `masks` (per-tap padding masks) only needed when the grid has no zero margin.
        cols = []
        for t, (di, dj) in enumerate(TAPS3):
            s = rot(x, (di - 1) * w + (dj - 1), w * w)
            if masks is not None:
                s = s * masks[t]
            cols.append(s)
        return jnp.concatenate(cols, axis=0)                 # (9*C, w*w)

    def window_max3(x, w):
        # 3x3 stride-1 window max on a (C, w*w)-flattened grid (VPU max tree, no MXU)
        vals = [rot(x, di * w + dj, w * w) for (di, dj) in TAPS3]
        while len(vals) > 1:
            nxt = [jnp.maximum(vals[i], vals[i + 1]) for i in range(0, len(vals) - 1, 2)]
            if len(vals) % 2:
                nxt.append(vals[-1])
            vals = nxt
        return vals[0]

    pad_masks8 = [masks8_ref[t:t + 1, :] for t in range(9)]
    margin8 = masks8_ref[9:10, :]

    # ---------------- crop branch head (conv_1 layers 0,1) ----------------
    x = jnp.maximum(mm(conv_w16_ref[:, 0:36], crop_cols_ref[...]) + conv_b16_ref[:, 0:1], 0.0)   # (16,64) 8x8
    x = jnp.maximum(mm(conv_w16_ref[:, 36:180], im2col_3x3(x, 8, pad_masks8))
                    + conv_b16_ref[:, 1:2], 0.0)                                                  # (16,64) 8x8

    # ---------------- whole branch head (conv_2 layers 0,1) ----------------
    y = jnp.maximum(mm(conv_w16_ref[:, 180:280], whole_cols_ref[...]) + conv_b16_ref[:, 2:3], 0.0)
    y = y * margin16_ref[...]                                                                     # 15x15 in 16x16
    y = jnp.maximum(mm(conv_w16_ref[:, 280:424], im2col_3x3(y, 16)) + conv_b16_ref[:, 3:4], 0.0)
    y = mm(y, csel21_ref[...])                                                                    # stride-2 -> (16,64) 8x8

    # ---------------- shared middle (branches stacked on sublanes) ----------------
    xy = jnp.concatenate([x, y], axis=0)                      # (32,64) 8x8
    xy = window_max3(xy, 8) * margin8                         # MaxPool3/s1 -> 6x6 (embedded); post-pool ReLU redundant
    for k in range(3):                                        # 3 block-diagonal 3x3/s1/p1 convs on the 6x6 data
        xy = jnp.maximum(mm(mid_w_ref[k], im2col_3x3(xy, 8)) + mid_b_ref[:, k:k + 1], 0.0) * margin8

    # ---------------- final pools + compaction into fc1 layout ----------------
    pooled = window_max3(xy, 8)
    crop_p = mm(pooled[0:16, :], csel_cw_ref[:, 0:16])        # (16,16)  MaxPool3/s1 : 6x6 -> 4x4
    whole_p = mm(pooled[16:32, :], csel_cw_ref[:, 16:20])     # (16, 4)  MaxPool3/s3 : 6x6 -> 2x2

    # ---------------- stats MLP (fc0) ----------------
    s = jnp.maximum(mm(stats_ref[...], fc0_w_ref[0:8, :]) + tail_b_ref[:, 0:32], 0.0)   # (1,32)
    s = mm(s, fc0_w_ref[8:40, 0:16]) + tail_b_ref[:, 32:48]                             # (1,16)

    # ---------------- fc1: one block dot per branch + diagonal gather ----------------
    ysum = mm(crop_p, fc1_w2_ref[0:16, :]) + mm(whole_p, fc1_w2_ref[16:20, :])          # (16, 16*128)
    parts = [ysum[c:c + 1, c * HIDDEN:(c + 1) * HIDDEN] for c in range(16)]
    while len(parts) > 1:                                                               # balanced tree add
        parts = [parts[i] + parts[i + 1] for i in range(0, len(parts), 2)]
    z = jnp.maximum(parts[0] + mm(s, fc1_ws_ref[...]) + tail_b_ref[:, 48:176], 0.0)     # (1,128)

    # ---------------- single-step LSTM, zero initial state ----------------
    # h0 = c0 = 0  =>  W_hh @ h0 == 0 and f*c0 == 0 exactly (terms dropped).
    gates = mm(z, tail_w_ref[:, 0:512]) + tail_b_ref[:, 176:688]                        # (1,512) [i|f|g|o]
    i_g = jax.nn.sigmoid(gates[:, 0:HIDDEN])
    g_g = jnp.tanh(gates[:, 2 * HIDDEN:3 * HIDDEN])
    o_g = jax.nn.sigmoid(gates[:, 3 * HIDDEN:4 * HIDDEN])
    h_t = o_g * jnp.tanh(i_g * g_g)                                                     # (1,128)

    # ---------------- fc2 + softmax (exact division) ----------------
    logits = mm(h_t, tail_w_ref[:, 512:518]) + tail_b_ref[:, 688:694]                   # (1,A)
    m = jnp.max(logits, axis=-1, keepdims=True)
    e = jnp.exp(logits - m)
    probs = e / jnp.sum(e, axis=-1, keepdims=True)
    probs_ref[...] = probs.astype(probs_ref.dtype)
    logits_ref[...] = logits.astype(logits_ref.dtype)


# --------------------------------------------------------------------------- #
# Raw (PyTorch-layout) parameters + one-time preparation into kernel layout.
# --------------------------------------------------------------------------- #
def init_params(key):
    keys = iter(jax.random.split(key, 32))

    def w(shape, scale=0.1):
        return scale * jax.random.normal(next(keys), shape, jnp.float32)

    p = {}
    p["c1_0_w"] = w((16, NO_FRAMES, 3, 3)); p["c1_0_b"] = w((16,))
    p["c1_1_w"] = w((16, 16, 3, 3));        p["c1_1_b"] = w((16,))
    p["c1_2_w"] = w((16, 16, 3, 3));        p["c1_2_b"] = w((16,))
    p["c1_3_w"] = w((16, 16, 3, 3));        p["c1_3_b"] = w((16,))
    p["c1_4_w"] = w((16, 16, 3, 3));        p["c1_4_b"] = w((16,))
    p["c2_0_w"] = w((16, NO_FRAMES, 5, 5)); p["c2_0_b"] = w((16,))
    p["c2_1_w"] = w((16, 16, 3, 3));        p["c2_1_b"] = w((16,))
    p["c2_2_w"] = w((16, 16, 3, 3));        p["c2_2_b"] = w((16,))
    p["c2_3_w"] = w((16, 16, 3, 3));        p["c2_3_b"] = w((16,))
    p["c2_4_w"] = w((16, 16, 3, 3));        p["c2_4_b"] = w((16,))
    p["fc0_w1"] = w((32, STATS_DIM));       p["fc0_b1"] = w((32,))
    p["fc0_w2"] = w((16, 32));              p["fc0_b2"] = w((16,))
    fc1_in = 16 * 4 * 4 + 16 * 2 * 2 + 16
    p["fc1_w"] = w((HIDDEN, fc1_in));       p["fc1_b"] = w((HIDDEN,))
    p["lstm_w_ih"] = w((4 * HIDDEN, HIDDEN), 0.15)
    p["lstm_w_hh"] = w((4 * HIDDEN, HIDDEN), 0.15)   # unused at runtime (h0 == 0), kept for fidelity
    p["lstm_b_ih"] = w((4 * HIDDEN,))
    p["lstm_b_hh"] = w((4 * HIDDEN,))
    p["fc2_w"] = w((ACTION_SPACE, HIDDEN), 0.3)
    p["fc2_b"] = w((ACTION_SPACE,))
    return p


def prepare_params(raw):
    """One-time re-layout / packing of the PyTorch-layout weights for the kernel."""
    r = {k: np.asarray(v, np.float32) for k, v in raw.items()}

    def conv_mat(w):
        cout, cin, kh, kw = w.shape
        # column order = (tap di-major, dj, then input channel), matching the im2col rows
        return w.transpose(0, 2, 3, 1).reshape(cout, kh * kw * cin)

    masks8, margin16, csel21, csel_cw = _build_constants()
    p = {"masks8": jnp.asarray(masks8), "margin16": jnp.asarray(margin16),
         "csel21": jnp.asarray(csel21), "csel_cw": jnp.asarray(csel_cw)}

    # first two convs of each branch, lane-packed:  c1_0 | c1_1 | c2_0 | c2_1
    p["conv_w16"] = jnp.asarray(np.concatenate(
        [conv_mat(r["c1_0_w"]), conv_mat(r["c1_1_w"]),
         conv_mat(r["c2_0_w"]), conv_mat(r["c2_1_w"])], axis=1))                # (16, 424)
    p["conv_b16"] = jnp.asarray(np.stack(
        [r["c1_0_b"], r["c1_1_b"], r["c2_0_b"], r["c2_1_b"]], axis=1))          # (16, 4)

    # three shared-structure middle convs: block-diagonal (crop | whole) weights
    mids, midb = [], []
    for k in range(3):
        wc = r[f"c1_{k + 2}_w"].transpose(0, 2, 3, 1).reshape(16, 9, 16)
        ww = r[f"c2_{k + 2}_w"].transpose(0, 2, 3, 1).reshape(16, 9, 16)
        blk = np.zeros((32, 9, 32), np.float32)
        blk[:16, :, :16] = wc
        blk[16:, :, 16:] = ww
        mids.append(blk.reshape(32, 288))
        midb.append(np.concatenate([r[f"c1_{k + 2}_b"], r[f"c2_{k + 2}_b"]]))
    p["mid_w"] = jnp.asarray(np.stack(mids, axis=0))                            # (3, 32, 288)
    p["mid_b"] = jnp.asarray(np.stack(midb, axis=1))                            # (32, 3)

    # fc0 (stats MLP), row-packed: [0:8]=W1^T, [8:40, :16]=W2^T
    fc0_w = np.zeros((40, 32), np.float32)
    fc0_w[0:8, :] = r["fc0_w1"].T
    fc0_w[8:40, 0:16] = r["fc0_w2"].T
    p["fc0_w"] = jnp.asarray(fc0_w)

    # fc1, re-laid out for the "one block dot + diagonal gather" contraction
    fw = r["fc1_w"]                                                             # (128, 336)
    w2c = fw[:, :256].reshape(HIDDEN, 16, 16).transpose(2, 1, 0).reshape(16, 16 * HIDDEN)
    w2w = fw[:, 256:320].reshape(HIDDEN, 16, 4).transpose(2, 1, 0).reshape(4, 16 * HIDDEN)
    p["fc1_w2"] = jnp.asarray(np.concatenate([w2c, w2w], axis=0))               # (20, 2048)
    p["fc1_ws"] = jnp.asarray(fw[:, 320:336].T)                                 # (16, 128)

    # LSTM (zero initial state -> only W_ih, biases folded) + fc2, lane-packed
    p["tail_w"] = jnp.asarray(np.concatenate([r["lstm_w_ih"].T, r["fc2_w"].T], axis=1))  # (128, 518)
    p["tail_b"] = jnp.asarray(np.concatenate(
        [r["fc0_b1"], r["fc0_b2"], r["fc1_b"],
         r["lstm_b_ih"] + r["lstm_b_hh"], r["fc2_b"]]).reshape(1, -1))          # (1, 694)
    return p


# --------------------------------------------------------------------------- #
# Forward: one cheap im2col of the RAW inputs (XLA), then ONE pallas_call.
# --------------------------------------------------------------------------- #
def _first_conv_patches(x, kh, kw, stride, pad, emb_hw=None):
    """x:(Cin,H,W) -> tap-major stacked im2col rows (kh*kw*Cin, out_pixels)."""
    c, h, w = x.shape
    ho = (h + 2 * pad - kh) // stride + 1
    wo = (w + 2 * pad - kw) // stride + 1
    xp = jnp.pad(x, ((0, 0), (pad, pad), (pad, pad)))
    parts = []
    for di in range(kh):
        for dj in range(kw):
            sl = xp[:, di:di + stride * ho:stride, dj:dj + stride * wo:stride]
            if emb_hw is not None:  # embed the ho x wo output into an emb_hw x emb_hw grid
                sl = jnp.pad(sl, ((0, 0), (0, emb_hw - ho), (0, emb_hw - wo)))
            parts.append(sl.reshape(c, -1))
    return jnp.concatenate(parts, axis=0)


def _fused_call(params, crop, whole, stats):
    crop_cols = _first_conv_patches(crop[0].astype(jnp.float32), 3, 3, 2, 1)             # (36, 64)
    whole_cols = _first_conv_patches(whole[0].astype(jnp.float32), 5, 5, 2, 1, emb_hw=16)  # (100, 256)
    stats2d = stats.reshape(1, STATS_DIM).astype(jnp.float32)

    operands = (crop_cols, whole_cols, stats2d,
                params["csel21"], params["csel_cw"], params["masks8"], params["margin16"],
                params["conv_w16"], params["conv_b16"], params["mid_w"], params["mid_b"],
                params["fc0_w"], params["fc1_w2"], params["fc1_ws"],
                params["tail_w"], params["tail_b"])

    probs, logits = pl.pallas_call(
        _fused_forward_kernel,
        out_shape=(jax.ShapeDtypeStruct((1, ACTION_SPACE), jnp.float32),
                   jax.ShapeDtypeStruct((1, ACTION_SPACE), jnp.float32)),
        in_specs=[VMEM_SPEC] * len(operands),
        out_specs=(VMEM_SPEC, VMEM_SPEC),
        cost_estimate=pl.CostEstimate(flops=9_000_000, transcendentals=600,
                                      bytes_accessed=900_000),
    )(*operands)
    return probs, logits


def forward(params, crop, whole, stats):
    """crop:(1,F,16,16)  whole:(1,F,32,32)  stats:(STATS_DIM,) -> (1,1,A) action probs."""
    probs, _ = _fused_call(params, crop, whole, stats)
    return probs.reshape(1, 1, ACTION_SPACE)


# --------------------------------------------------------------------------- #
# Pure-JAX reference of the PyTorch forward (for an in-script sanity check).
# --------------------------------------------------------------------------- #
def reference_forward(raw, crop, whole, stats):
    P = lax.Precision.HIGHEST
    relu = lambda v: jnp.maximum(v, 0.0)

    def conv(x, w, b, stride, pad):
        out = lax.conv_general_dilated(x, w, (stride, stride), [(pad, pad), (pad, pad)],
                                       dimension_numbers=("NCHW", "OIHW", "NCHW"), precision=P)
        return out + b.reshape(1, -1, 1, 1)

    def pool(x, k, s):
        return lax.reduce_window(x, -jnp.inf, lax.max, (1, 1, k, k), (1, 1, s, s), "VALID")

    a = relu(conv(crop, raw["c1_0_w"], raw["c1_0_b"], 2, 1))
    a = relu(conv(a, raw["c1_1_w"], raw["c1_1_b"], 1, 1))
    a = relu(pool(a, 3, 1))
    a = relu(conv(a, raw["c1_2_w"], raw["c1_2_b"], 1, 1))
    a = relu(conv(a, raw["c1_3_w"], raw["c1_3_b"], 1, 1))
    a = relu(conv(a, raw["c1_4_w"], raw["c1_4_b"], 1, 1))
    a = relu(pool(a, 3, 1)).reshape(-1)

    b = relu(conv(whole, raw["c2_0_w"], raw["c2_0_b"], 2, 1))
    b = relu(conv(b, raw["c2_1_w"], raw["c2_1_b"], 2, 1))
    b = relu(pool(b, 3, 1))
    b = relu(conv(b, raw["c2_2_w"], raw["c2_2_b"], 1, 1))
    b = relu(conv(b, raw["c2_3_w"], raw["c2_3_b"], 1, 1))
    b = relu(conv(b, raw["c2_4_w"], raw["c2_4_b"], 1, 1))
    b = relu(pool(b, 3, 3)).reshape(-1)

    s = jnp.maximum(jnp.dot(raw["fc0_w1"], stats, precision=P) + raw["fc0_b1"], 0.0)
    s = jnp.dot(raw["fc0_w2"], s, precision=P) + raw["fc0_b2"]

    cat = jnp.concatenate([a, b, s])
    z = jnp.maximum(jnp.dot(raw["fc1_w"], cat, precision=P) + raw["fc1_b"], 0.0)

    gates = jnp.dot(raw["lstm_w_ih"], z, precision=P) + raw["lstm_b_ih"] + raw["lstm_b_hh"]
    i = jax.nn.sigmoid(gates[0:HIDDEN])
    g = jnp.tanh(gates[2 * HIDDEN:3 * HIDDEN])
    o = jax.nn.sigmoid(gates[3 * HIDDEN:4 * HIDDEN])
    h = o * jnp.tanh(i * g)

    logits = jnp.dot(raw["fc2_w"], h, precision=P) + raw["fc2_b"]
    return jax.nn.softmax(logits).reshape(1, 1, ACTION_SPACE), logits.reshape(1, ACTION_SPACE)


# --------------------------------------------------------------------------- #
if __name__ == "__main__":
    key = jax.random.PRNGKey(0)
    k_param, k_crop, k_whole, k_stats = jax.random.split(key, 4)

    raw_params = init_params(k_param)
    params = prepare_params(raw_params)   # one-time weight prep (outside jit)

    crop = jax.random.normal(k_crop, (1, NO_FRAMES, CROP_HW, CROP_HW), jnp.float32)
    whole = jax.random.normal(k_whole, (1, NO_FRAMES, WHOLE_HW, WHOLE_HW), jnp.float32)
    stats = jax.random.normal(k_stats, (STATS_DIM,), jnp.float32)

    fwd = jax.jit(_fused_call)
    probs, logits = jax.block_until_ready(fwd(params, crop, whole, stats))
    probs = probs.reshape(1, 1, ACTION_SPACE)

    ref_probs, ref_logits = jax.jit(reference_forward)(raw_params, crop, whole, stats)

    assert probs.shape == (1, 1, ACTION_SPACE), probs.shape
    assert bool(jnp.all(jnp.isfinite(probs)))
    assert abs(float(jnp.sum(probs)) - 1.0) < 1e-3, float(jnp.sum(probs))
    assert float(jnp.max(jnp.abs(logits - ref_logits))) < 2e-1, "logits mismatch vs pure-JAX reference"
    assert float(jnp.max(jnp.abs(probs - ref_probs))) < 5e-2, "probs mismatch vs pure-JAX reference"
    print("KERNEL_OK")
</pallas_src>

<mosaic_0001>
module attributes {stable_mosaic.version = 11 : i64} {
  func.func @_fused_forward_kernel(%arg0: memref<36x64xf32, #tpu.memory_space<vmem>>, %arg1: memref<100x256xf32, #tpu.memory_space<vmem>>, %arg2: memref<1x8xf32, #tpu.memory_space<vmem>>, %arg3: memref<256x64xf32, #tpu.memory_space<vmem>>, %arg4: memref<64x20xf32, #tpu.memory_space<vmem>>, %arg5: memref<10x64xf32, #tpu.memory_space<vmem>>, %arg6: memref<1x256xf32, #tpu.memory_space<vmem>>, %arg7: memref<16x424xf32, #tpu.memory_space<vmem>>, %arg8: memref<16x4xf32, #tpu.memory_space<vmem>>, %arg9: memref<3x32x288xf32, #tpu.memory_space<vmem>>, %arg10: memref<32x3xf32, #tpu.memory_space<vmem>>, %arg11: memref<40x32xf32, #tpu.memory_space<vmem>>, %arg12: memref<20x2048xf32, #tpu.memory_space<vmem>>, %arg13: memref<16x128xf32, #tpu.memory_space<vmem>>, %arg14: memref<128x518xf32, #tpu.memory_space<vmem>>, %arg15: memref<1x694xf32, #tpu.memory_space<vmem>>, %arg16: memref<1x6xf32, #tpu.memory_space<vmem>>, %arg17: memref<1x6xf32, #tpu.memory_space<vmem>>) attributes {dimension_semantics = [], scalar_prefetch = 0 : i64, scratch_operands = 0 : i64, tpu.core_type = #tpu.core_type<tc>} {
    %c0 = arith.constant 0 : index
    %c0_0 = arith.constant 0 : index
    %0 = vector.load %arg5[%c0, %c0_0] : memref<10x64xf32, #tpu.memory_space<vmem>>, vector<1x64xf32>
    %c1 = arith.constant 1 : index
    %c0_1 = arith.constant 0 : index
    %1 = vector.load %arg5[%c1, %c0_1] : memref<10x64xf32, #tpu.memory_space<vmem>>, vector<1x64xf32>
    %c2 = arith.constant 2 : index
    %c0_2 = arith.constant 0 : index
    %2 = vector.load %arg5[%c2, %c0_2] : memref<10x64xf32, #tpu.memory_space<vmem>>, vector<1x64xf32>
    %c3 = arith.constant 3 : index
    %c0_3 = arith.constant 0 : index
    %3 = vector.load %arg5[%c3, %c0_3] : memref<10x64xf32, #tpu.memory_space<vmem>>, vector<1x64xf32>
    %c4 = arith.constant 4 : index
    %c0_4 = arith.constant 0 : index
    %4 = vector.load %arg5[%c4, %c0_4] : memref<10x64xf32, #tpu.memory_space<vmem>>, vector<1x64xf32>
    %c5 = arith.constant 5 : index
    %c0_5 = arith.constant 0 : index
    %5 = vector.load %arg5[%c5, %c0_5] : memref<10x64xf32, #tpu.memory_space<vmem>>, vector<1x64xf32>
    %c6 = arith.constant 6 : index
    %c0_6 = arith.constant 0 : index
    %6 = vector.load %arg5[%c6, %c0_6] : memref<10x64xf32, #tpu.memory_space<vmem>>, vector<1x64xf32>
    %c7 = arith.constant 7 : index
    %c0_7 = arith.constant 0 : index
    %7 = vector.load %arg5[%c7, %c0_7] : memref<10x64xf32, #tpu.memory_space<vmem>>, vector<1x64xf32>
    %c8 = arith.constant 8 : index
    %c0_8 = arith.constant 0 : index
    %8 = vector.load %arg5[%c8, %c0_8] : memref<10x64xf32, #tpu.memory_space<vmem>>, vector<1x64xf32>
    %c9 = arith.constant 9 : index
    %c0_9 = arith.constant 0 : index
    %9 = vector.load %arg5[%c9, %c0_9] : memref<10x64xf32, #tpu.memory_space<vmem>>, vector<1x64xf32>
    %c0_10 = arith.constant 0 : index
    %c0_11 = arith.constant 0 : index
    %10 = vector.load %arg7[%c0_10, %c0_11] : memref<16x424xf32, #tpu.memory_space<vmem>>, vector<16x36xf32>
    %c0_12 = arith.constant 0 : index
    %c0_13 = arith.constant 0 : index
    %11 = vector.load %arg0[%c0_12, %c0_13] : memref<36x64xf32, #tpu.memory_space<vmem>>, vector<36x64xf32>
    %cst = arith.constant dense<0.000000e+00> : vector<16x64xf32>
    %12 = tpu.matmul %10, %11, %cst {dimension_numbers = #tpu.dot_dimension_numbers<[1], [0], [0], [1], [0, 0, 1, 1], [], []>} : vector<16x36xf32>, vector<36x64xf32>, vector<16x64xf32> -> vector<16x64xf32>
    %c0_14 = arith.constant 0 : index
    %c0_15 = arith.constant 0 : index
    %13 = vector.load %arg8[%c0_14, %c0_15] : memref<16x4xf32, #tpu.memory_space<vmem>>, vector<16x1xf32>
    %14 = vector.broadcast %13 : vector<16x1xf32> to vector<16x64xf32>
    %15 = arith.addf %12, %14 : vector<16x64xf32>
    %cst_16 = arith.constant 0.000000e+00 : f32
    %16 = vector.broadcast %cst_16 : f32 to vector<16x64xf32>
    %17 = arith.maximumf %15, %16 : vector<16x64xf32>
    %c0_17 = arith.constant 0 : index
    %c36 = arith.constant 36 : index
    %18 = vector.load %arg7[%c0_17, %c36] : memref<16x424xf32, #tpu.memory_space<vmem>>, vector<16x144xf32>
    %19 = vector.extract_strided_slice %17 {offsets = [0, 55], sizes = [16, 9], strides = [1, 1]} : vector<16x64xf32> to vector<16x9xf32>
    %20 = vector.extract_strided_slice %17 {offsets = [0, 0], sizes = [16, 55], strides = [1, 1]} : vector<16x64xf32> to vector<16x55xf32>
    %21 = tpu.concatenate %19, %20 in 1 : vector<16x9xf32>, vector<16x55xf32> -> vector<16x64xf32>
    %22 = vector.broadcast %0 : vector<1x64xf32> to vector<16x64xf32>
    %23 = arith.mulf %21, %22 : vector<16x64xf32>
    %24 = vector.extract_strided_slice %17 {offsets = [0, 56], sizes = [16, 8], strides = [1, 1]} : vector<16x64xf32> to vector<16x8xf32>
    %25 = vector.extract_strided_slice %17 {offsets = [0, 0], sizes = [16, 56], strides = [1, 1]} : vector<16x64xf32> to vector<16x56xf32>
    %26 = tpu.concatenate %24, %25 in 1 : vector<16x8xf32>, vector<16x56xf32> -> vector<16x64xf32>
    %27 = vector.broadcast %1 : vector<1x64xf32> to vector<16x64xf32>
    %28 = arith.mulf %26, %27 : vector<16x64xf32>
    %29 = vector.extract_strided_slice %17 {offsets = [0, 57], sizes = [16, 7], strides = [1, 1]} : vector<16x64xf32> to vector<16x7xf32>
    %30 = vector.extract_strided_slice %17 {offsets = [0, 0], sizes = [16, 57], strides = [1, 1]} : vector<16x64xf32> to vector<16x57xf32>
    %31 = tpu.concatenate %29, %30 in 1 : vector<16x7xf32>, vector<16x57xf32> -> vector<16x64xf32>
    %32 = vector.broadcast %2 : vector<1x64xf32> to vector<16x64xf32>
    %33 = arith.mulf %31, %32 : vector<16x64xf32>
    %34 = vector.extract_strided_slice %17 {offsets = [0, 63], sizes = [16, 1], strides = [1, 1]} : vector<16x64xf32> to vector<16x1xf32>
    %35 = vector.extract_strided_slice %17 {offsets = [0, 0], sizes = [16, 63], strides = [1, 1]} : vector<16x64xf32> to vector<16x63xf32>
    %36 = tpu.concatenate %34, %35 in 1 : vector<16x1xf32>, vector<16x63xf32> -> vector<16x64xf32>
    %37 = vector.broadcast %3 : vector<1x64xf32> to vector<16x64xf32>
    %38 = arith.mulf %36, %37 : vector<16x64xf32>
    %39 = vector.broadcast %4 : vector<1x64xf32> to vector<16x64xf32>
    %40 = arith.mulf %17, %39 : vector<16x64xf32>
    %41 = vector.extract_strided_slice %17 {offsets = [0, 1], sizes = [16, 63], strides = [1, 1]} : vector<16x64xf32> to vector<16x63xf32>
    %42 = vector.extract_strided_slice %17 {offsets = [0, 0], sizes = [16, 1], strides = [1, 1]} : vector<16x64xf32> to vector<16x1xf32>
    %43 = tpu.concatenate %41, %42 in 1 : vector<16x63xf32>, vector<16x1xf32> -> vector<16x64xf32>
    %44 = vector.broadcast %5 : vector<1x64xf32> to vector<16x64xf32>
    %45 = arith.mulf %43, %44 : vector<16x64xf32>
    %46 = vector.extract_strided_slice %17 {offsets = [0, 7], sizes = [16, 57], strides = [1, 1]} : vector<16x64xf32> to vector<16x57xf32>
    %47 = vector.extract_strided_slice %17 {offsets = [0, 0], sizes = [16, 7], strides = [1, 1]} : vector<16x64xf32> to vector<16x7xf32>
    %48 = tpu.concatenate %46, %47 in 1 : vector<16x57xf32>, vector<16x7xf32> -> vector<16x64xf32>
    %49 = vector.broadcast %6 : vector<1x64xf32> to vector<16x64xf32>
    %50 = arith.mulf %48, %49 : vector<16x64xf32>
    %51 = vector.extract_strided_slice %17 {offsets = [0, 8], sizes = [16, 56], strides = [1, 1]} : vector<16x64xf32> to vector<16x56xf32>
    %52 = vector.extract_strided_slice %17 {offsets = [0, 0], sizes = [16, 8], strides = [1, 1]} : vector<16x64xf32> to vector<16x8xf32>
    %53 = tpu.concatenate %51, %52 in 1 : vector<16x56xf32>, vector<16x8xf32> -> vector<16x64xf32>
    %54 = vector.broadcast %7 : vector<1x64xf32> to vector<16x64xf32>
    %55 = arith.mulf %53, %54 : vector<16x64xf32>
    %56 = vector.extract_strided_slice %17 {offsets = [0, 9], sizes = [16, 55], strides = [1, 1]} : vector<16x64xf32> to vector<16x55xf32>
    %57 = vector.extract_strided_slice %17 {offsets = [0, 0], sizes = [16, 9], strides = [1, 1]} : vector<16x64xf32> to vector<16x9xf32>
    %58 = tpu.concatenate %56, %57 in 1 : vector<16x55xf32>, vector<16x9xf32> -> vector<16x64xf32>
    %59 = vector.broadcast %8 : vector<1x64xf32> to vector<16x64xf32>
    %60 = arith.mulf %58, %59 : vector<16x64xf32>
    %61 = tpu.concatenate %23, %28, %33, %38, %40, %45, %50, %55, %60 in 0 : vector<16x64xf32>, vector<16x64xf32>, vector<16x64xf32>, vector<16x64xf32>, vector<16x64xf32>, vector<16x64xf32>, vector<16x64xf32>, vector<16x64xf32>, vector<16x64xf32> -> vector<144x64xf32>
    %cst_18 = arith.constant dense<0.000000e+00> : vector<16x64xf32>
    %62 = tpu.matmul %18, %61, %cst_18 {dimension_numbers = #tpu.dot_dimension_numbers<[1], [0], [0], [1], [0, 0, 1, 1], [], []>} : vector<16x144xf32>, vector<144x64xf32>, vector<16x64xf32> -> vector<16x64xf32>
    %c0_19 = arith.constant 0 : index
    %c1_20 = arith.constant 1 : index
    %63 = vector.load %arg8[%c0_19, %c1_20] : memref<16x4xf32, #tpu.memory_space<vmem>>, vector<16x1xf32>
    %64 = vector.broadcast %63 : vector<16x1xf32> to vector<16x64xf32>
    %65 = arith.addf %62, %64 : vector<16x64xf32>
    %cst_21 = arith.constant 0.000000e+00 : f32
    %66 = vector.broadcast %cst_21 : f32 to vector<16x64xf32>
    %67 = arith.maximumf %65, %66 : vector<16x64xf32>
    %c0_22 = arith.constant 0 : index
    %c180 = arith.constant 180 : index
    %68 = vector.load %arg7[%c0_22, %c180] : memref<16x424xf32, #tpu.memory_space<vmem>>, vector<16x100xf32>
    %c0_23 = arith.constant 0 : index
    %c0_24 = arith.constant 0 : index
    %69 = vector.load %arg1[%c0_23, %c0_24] : memref<100x256xf32, #tpu.memory_space<vmem>>, vector<100x256xf32>
    %cst_25 = arith.constant dense<0.000000e+00> : vector<16x256xf32>
    %70 = tpu.matmul %68, %69, %cst_25 {dimension_numbers = #tpu.dot_dimension_numbers<[1], [0], [0], [1], [0, 0, 1, 1], [], []>} : vector<16x100xf32>, vector<100x256xf32>, vector<16x256xf32> -> vector<16x256xf32>
    %c0_26 = arith.constant 0 : index
    %c2_27 = arith.constant 2 : index
    %71 = vector.load %arg8[%c0_26, %c2_27] : memref<16x4xf32, #tpu.memory_space<vmem>>, vector<16x1xf32>
    %72 = vector.broadcast %71 : vector<16x1xf32> to vector<16x256xf32>
    %73 = arith.addf %70, %72 : vector<16x256xf32>
    %cst_28 = arith.constant 0.000000e+00 : f32
    %74 = vector.broadcast %cst_28 : f32 to vector<16x256xf32>
    %75 = arith.maximumf %73, %74 : vector<16x256xf32>
    %c0_29 = arith.constant 0 : index
    %c0_30 = arith.constant 0 : index
    %76 = vector.load %arg6[%c0_29, %c0_30] : memref<1x256xf32, #tpu.memory_space<vmem>>, vector<1x256xf32>
    %77 = vector.broadcast %76 : vector<1x256xf32> to vector<16x256xf32>
    %78 = arith.mulf %75, %77 : vector<16x256xf32>
    %c0_31 = arith.constant 0 : index
    %c280 = arith.constant 280 : index
    %79 = vector.load %arg7[%c0_31, %c280] : memref<16x424xf32, #tpu.memory_space<vmem>>, vector<16x144xf32>
    %80 = vector.extract_strided_slice %78 {offsets = [0, 239], sizes = [16, 17], strides = [1, 1]} : vector<16x256xf32> to vector<16x17xf32>
    %81 = vector.extract_strided_slice %78 {offsets = [0, 0], sizes = [16, 239], strides = [1, 1]} : vector<16x256xf32> to vector<16x239xf32>
    %82 = tpu.concatenate %80, %81 in 1 : vector<16x17xf32>, vector<16x239xf32> -> vector<16x256xf32>
    %83 = vector.extract_strided_slice %78 {offsets = [0, 240], sizes = [16, 16], strides = [1, 1]} : vector<16x256xf32> to vector<16x16xf32>
    %84 = vector.extract_strided_slice %78 {offsets = [0, 0], sizes = [16, 240], strides = [1, 1]} : vector<16x256xf32> to vector<16x240xf32>
    %85 = tpu.concatenate %83, %84 in 1 : vector<16x16xf32>, vector<16x240xf32> -> vector<16x256xf32>
    %86 = vector.extract_strided_slice %78 {offsets = [0, 241], sizes = [16, 15], strides = [1, 1]} : vector<16x256xf32> to vector<16x15xf32>
    %87 = vector.extract_strided_slice %78 {offsets = [0, 0], sizes = [16, 241], strides = [1, 1]} : vector<16x256xf32> to vector<16x241xf32>
    %88 = tpu.concatenate %86, %87 in 1 : vector<16x15xf32>, vector<16x241xf32> -> vector<16x256xf32>
    %89 = vector.extract_strided_slice %78 {offsets = [0, 255], sizes = [16, 1], strides = [1, 1]} : vector<16x256xf32> to vector<16x1xf32>
    %90 = vector.extract_strided_slice %78 {offsets = [0, 0], sizes = [16, 255], strides = [1, 1]} : vector<16x256xf32> to vector<16x255xf32>
    %91 = tpu.concatenate %89, %90 in 1 : vector<16x1xf32>, vector<16x255xf32> -> vector<16x256xf32>
    %92 = vector.extract_strided_slice %78 {offsets = [0, 1], sizes = [16, 255], strides = [1, 1]} : vector<16x256xf32> to vector<16x255xf32>
    %93 = vector.extract_strided_slice %78 {offsets = [0, 0], sizes = [16, 1], strides = [1, 1]} : vector<16x256xf32> to vector<16x1xf32>
    %94 = tpu.concatenate %92, %93 in 1 : vector<16x255xf32>, vector<16x1xf32> -> vector<16x256xf32>
    %95 = vector.extract_strided_slice %78 {offsets = [0, 15], sizes = [16, 241], strides = [1, 1]} : vector<16x256xf32> to vector<16x241xf32>
    %96 = vector.extract_strided_slice %78 {offsets = [0, 0], sizes = [16, 15], strides = [1, 1]} : vector<16x256xf32> to vector<16x15xf32>
    %97 = tpu.concatenate %95, %96 in 1 : vector<16x241xf32>, vector<16x15xf32> -> vector<16x256xf32>
    %98 = vector.extract_strided_slice %78 {offsets = [0, 16], sizes = [16, 240], strides = [1, 1]} : vector<16x256xf32> to vector<16x240xf32>
    %99 = vector.extract_strided_slice %78 {offsets = [0, 0], sizes = [16, 16], strides = [1, 1]} : vector<16x256xf32> to vector<16x16xf32>
    %100 = tpu.concatenate %98, %99 in 1 : vector<16x240xf32>, vector<16x16xf32> -> vector<16x256xf32>
    %101 = vector.extract_strided_slice %78 {offsets = [0, 17], sizes = [16, 239], strides = [1, 1]} : vector<16x256xf32> to vector<16x239xf32>
    %102 = vector.extract_strided_slice %78 {offsets = [0, 0], sizes = [16, 17], strides = [1, 1]} : vector<16x256xf32> to vector<16x17xf32>
    %103 = tpu.concatenate %101, %102 in 1 : vector<16x239xf32>, vector<16x17xf32> -> vector<16x256xf32>
    %104 = tpu.concatenate %82, %85, %88, %91, %78, %94, %97, %100, %103 in 0 : vector<16x256xf32>, vector<16x256xf32>, vector<16x256xf32>, vector<16x256xf32>, vector<16x256xf32>, vector<16x256xf32>, vector<16x256xf32>, vector<16x256xf32>, vector<16x256xf32> -> vector<144x256xf32>
    %cst_32 = arith.constant dense<0.000000e+00> : vector<16x256xf32>
    %105 = tpu.matmul %79, %104, %cst_32 {dimension_numbers = #tpu.dot_dimension_numbers<[1], [0], [0], [1], [0, 0, 1, 1], [], []>} : vector<16x144xf32>, vector<144x256xf32>, vector<16x256xf32> -> vector<16x256xf32>
    %c0_33 = arith.constant 0 : index
    %c3_34 = arith.constant 3 : index
    %106 = vector.load %arg8[%c0_33, %c3_34] : memref<16x4xf32, #tpu.memory_space<vmem>>, vector<16x1xf32>
    %107 = vector.broadcast %106 : vector<16x1xf32> to vector<16x256xf32>
    %108 = arith.addf %105, %107 : vector<16x256xf32>
    %cst_35 = arith.constant 0.000000e+00 : f32
    %109 = vector.broadcast %cst_35 : f32 to vector<16x256xf32>
    %110 = arith.maximumf %108, %109 : vector<16x256xf32>
    %c0_36 = arith.constant 0 : index
    %c0_37 = arith.constant 0 : index
    %111 = vector.load %arg3[%c0_36, %c0_37] : memref<256x64xf32, #tpu.memory_space<vmem>>, vector<256x64xf32>
    %cst_38 = arith.constant dense<0.000000e+00> : vector<16x64xf32>
    %112 = tpu.matmul %110, %111, %cst_38 {dimension_numbers = #tpu.dot_dimension_numbers<[1], [0], [0], [1], [0, 0, 1, 1], [], []>} : vector<16x256xf32>, vector<256x64xf32>, vector<16x64xf32> -> vector<16x64xf32>
    %113 = tpu.concatenate %67, %112 in 0 : vector<16x64xf32>, vector<16x64xf32> -> vector<32x64xf32>
    %114 = vector.extract_strided_slice %113 {offsets = [0, 1], sizes = [32, 63], strides = [1, 1]} : vector<32x64xf32> to vector<32x63xf32>
    %115 = vector.extract_strided_slice %113 {offsets = [0, 0], sizes = [32, 1], strides = [1, 1]} : vector<32x64xf32> to vector<32x1xf32>
    %116 = tpu.concatenate %114, %115 in 1 : vector<32x63xf32>, vector<32x1xf32> -> vector<32x64xf32>
    %117 = vector.extract_strided_slice %113 {offsets = [0, 2], sizes = [32, 62], strides = [1, 1]} : vector<32x64xf32> to vector<32x62xf32>
    %118 = vector.extract_strided_slice %113 {offsets = [0, 0], sizes = [32, 2], strides = [1, 1]} : vector<32x64xf32> to vector<32x2xf32>
    %119 = tpu.concatenate %117, %118 in 1 : vector<32x62xf32>, vector<32x2xf32> -> vector<32x64xf32>
    %120 = vector.extract_strided_slice %113 {offsets = [0, 8], sizes = [32, 56], strides = [1, 1]} : vector<32x64xf32> to vector<32x56xf32>
    %121 = vector.extract_strided_slice %113 {offsets = [0, 0], sizes = [32, 8], strides = [1, 1]} : vector<32x64xf32> to vector<32x8xf32>
    %122 = tpu.concatenate %120, %121 in 1 : vector<32x56xf32>, vector<32x8xf32> -> vector<32x64xf32>
    %123 = vector.extract_strided_slice %113 {offsets = [0, 9], sizes = [32, 55], strides = [1, 1]} : vector<32x64xf32> to vector<32x55xf32>
    %124 = vector.extract_strided_slice %113 {offsets = [0, 0], sizes = [32, 9], strides = [1, 1]} : vector<32x64xf32> to vector<32x9xf32>
    %125 = tpu.concatenate %123, %124 in 1 : vector<32x55xf32>, vector<32x9xf32> -> vector<32x64xf32>
    %126 = vector.extract_strided_slice %113 {offsets = [0, 10], sizes = [32, 54], strides = [1, 1]} : vector<32x64xf32> to vector<32x54xf32>
    %127 = vector.extract_strided_slice %113 {offsets = [0, 0], sizes = [32, 10], strides = [1, 1]} : vector<32x64xf32> to vector<32x10xf32>
    %128 = tpu.concatenate %126, %127 in 1 : vector<32x54xf32>, vector<32x10xf32> -> vector<32x64xf32>
    %129 = vector.extract_strided_slice %113 {offsets = [0, 16], sizes = [32, 48], strides = [1, 1]} : vector<32x64xf32> to vector<32x48xf32>
    %130 = vector.extract_strided_slice %113 {offsets = [0, 0], sizes = [32, 16], strides = [1, 1]} : vector<32x64xf32> to vector<32x16xf32>
    %131 = tpu.concatenate %129, %130 in 1 : vector<32x48xf32>, vector<32x16xf32> -> vector<32x64xf32>
    %132 = vector.extract_strided_slice %113 {offsets = [0, 17], sizes = [32, 47], strides = [1, 1]} : vector<32x64xf32> to vector<32x47xf32>
    %133 = vector.extract_strided_slice %113 {offsets = [0, 0], sizes = [32, 17], strides = [1, 1]} : vector<32x64xf32> to vector<32x17xf32>
    %134 = tpu.concatenate %132, %133 in 1 : vector<32x47xf32>, vector<32x17xf32> -> vector<32x64xf32>
    %135 = vector.extract_strided_slice %113 {offsets = [0, 18], sizes = [32, 46], strides = [1, 1]} : vector<32x64xf32> to vector<32x46xf32>
    %136 = vector.extract_strided_slice %113 {offsets = [0, 0], sizes = [32, 18], strides = [1, 1]} : vector<32x64xf32> to vector<32x18xf32>
    %137 = tpu.concatenate %135, %136 in 1 : vector<32x46xf32>, vector<32x18xf32> -> vector<32x64xf32>
    %138 = arith.maximumf %113, %116 : vector<32x64xf32>
    %139 = arith.maximumf %119, %122 : vector<32x64xf32>
    %140 = arith.maximumf %125, %128 : vector<32x64xf32>
    %141 = arith.maximumf %131, %134 : vector<32x64xf32>
    %142 = arith.maximumf %138, %139 : vector<32x64xf32>
    %143 = arith.maximumf %140, %141 : vector<32x64xf32>
    %144 = arith.maximumf %142, %143 : vector<32x64xf32>
    %145 = arith.maximumf %144, %137 : vector<32x64xf32>
    %146 = vector.broadcast %9 : vector<1x64xf32> to vector<32x64xf32>
    %147 = arith.mulf %145, %146 : vector<32x64xf32>
    %c0_39 = arith.constant 0 : index
    %c0_40 = arith.constant 0 : index
    %c0_41 = arith.constant 0 : index
    %148 = vector.load %arg9[%c0_39, %c0_40, %c0_41] : memref<3x32x288xf32, #tpu.memory_space<vmem>>, vector<1x32x288xf32>
    %149 = vector.shape_cast %148 : vector<1x32x288xf32> to vector<32x288xf32>
    %150 = vector.extract_strided_slice %147 {offsets = [0, 55], sizes = [32, 9], strides = [1, 1]} : vector<32x64xf32> to vector<32x9xf32>
    %151 = vector.extract_strided_slice %147 {offsets = [0, 0], sizes = [32, 55], strides = [1, 1]} : vector<32x64xf32> to vector<32x55xf32>
    %152 = tpu.concatenate %150, %151 in 1 : vector<32x9xf32>, vector<32x55xf32> -> vector<32x64xf32>
    %153 = vector.extract_strided_slice %147 {offsets = [0, 56], sizes = [32, 8], strides = [1, 1]} : vector<32x64xf32> to vector<32x8xf32>
    %154 = vector.extract_strided_slice %147 {offsets = [0, 0], sizes = [32, 56], strides = [1, 1]} : vector<32x64xf32> to vector<32x56xf32>
    %155 = tpu.concatenate %153, %154 in 1 : vector<32x8xf32>, vector<32x56xf32> -> vector<32x64xf32>
    %156 = vector.extract_strided_slice %147 {offsets = [0, 57], sizes = [32, 7], strides = [1, 1]} : vector<32x64xf32> to vector<32x7xf32>
    %157 = vector.extract_strided_slice %147 {offsets = [0, 0], sizes = [32, 57], strides = [1, 1]} : vector<32x64xf32> to vector<32x57xf32>
    %158 = tpu.concatenate %156, %157 in 1 : vector<32x7xf32>, vector<32x57xf32> -> vector<32x64xf32>
    %159 = vector.extract_strided_slice %147 {offsets = [0, 63], sizes = [32, 1], strides = [1, 1]} : vector<32x64xf32> to vector<32x1xf32>
    %160 = vector.extract_strided_slice %147 {offsets = [0, 0], sizes = [32, 63], strides = [1, 1]} : vector<32x64xf32> to vector<32x63xf32>
    %161 = tpu.concatenate %159, %160 in 1 : vector<32x1xf32>, vector<32x63xf32> -> vector<32x64xf32>
    %162 = vector.extract_strided_slice %147 {offsets = [0, 1], sizes = [32, 63], strides = [1, 1]} : vector<32x64xf32> to vector<32x63xf32>
    %163 = vector.extract_strided_slice %147 {offsets = [0, 0], sizes = [32, 1], strides = [1, 1]} : vector<32x64xf32> to vector<32x1xf32>
    %164 = tpu.concatenate %162, %163 in 1 : vector<32x63xf32>, vector<32x1xf32> -> vector<32x64xf32>
    %165 = vector.extract_strided_slice %147 {offsets = [0, 7], sizes = [32, 57], strides = [1, 1]} : vector<32x64xf32> to vector<32x57xf32>
    %166 = vector.extract_strided_slice %147 {offsets = [0, 0], sizes = [32, 7], strides = [1, 1]} : vector<32x64xf32> to vector<32x7xf32>
    %167 = tpu.concatenate %165, %166 in 1 : vector<32x57xf32>, vector<32x7xf32> -> vector<32x64xf32>
    %168 = vector.extract_strided_slice %147 {offsets = [0, 8], sizes = [32, 56], strides = [1, 1]} : vector<32x64xf32> to vector<32x56xf32>
    %169 = vector.extract_strided_slice %147 {offsets = [0, 0], sizes = [32, 8], strides = [1, 1]} : vector<32x64xf32> to vector<32x8xf32>
    %170 = tpu.concatenate %168, %169 in 1 : vector<32x56xf32>, vector<32x8xf32> -> vector<32x64xf32>
    %171 = vector.extract_strided_slice %147 {offsets = [0, 9], sizes = [32, 55], strides = [1, 1]} : vector<32x64xf32> to vector<32x55xf32>
    %172 = vector.extract_strided_slice %147 {offsets = [0, 0], sizes = [32, 9], strides = [1, 1]} : vector<32x64xf32> to vector<32x9xf32>
    %173 = tpu.concatenate %171, %172 in 1 : vector<32x55xf32>, vector<32x9xf32> -> vector<32x64xf32>
    %174 = tpu.concatenate %152, %155, %158, %161, %147, %164, %167, %170, %173 in 0 : vector<32x64xf32>, vector<32x64xf32>, vector<32x64xf32>, vector<32x64xf32>, vector<32x64xf32>, vector<32x64xf32>, vector<32x64xf32>, vector<32x64xf32>, vector<32x64xf32> -> vector<288x64xf32>
    %cst_42 = arith.constant dense<0.000000e+00> : vector<32x64xf32>
    %175 = tpu.matmul %149, %174, %cst_42 {dimension_numbers = #tpu.dot_dimension_numbers<[1], [0], [0], [1], [0, 0, 1, 1], [], []>} : vector<32x288xf32>, vector<288x64xf32>, vector<32x64xf32> -> vector<32x64xf32>
    %c0_43 = arith.constant 0 : index
    %c0_44 = arith.constant 0 : index
    %176 = vector.load %arg10[%c0_43, %c0_44] : memref<32x3xf32, #tpu.memory_space<vmem>>, vector<32x1xf32>
    %177 = vector.broadcast %176 : vector<32x1xf32> to vector<32x64xf32>
    %178 = arith.addf %175, %177 : vector<32x64xf32>
    %cst_45 = arith.constant 0.000000e+00 : f32
    %179 = vector.broadcast %cst_45 : f32 to vector<32x64xf32>
    %180 = arith.maximumf %178, %179 : vector<32x64xf32>
    %181 = vector.broadcast %9 : vector<1x64xf32> to vector<32x64xf32>
    %182 = arith.mulf %180, %181 : vector<32x64xf32>
    %c1_46 = arith.constant 1 : index
    %c0_47 = arith.constant 0 : index
    %c0_48 = arith.constant 0 : index
    %183 = vector.load %arg9[%c1_46, %c0_47, %c0_48] : memref<3x32x288xf32, #tpu.memory_space<vmem>>, vector<1x32x288xf32>
    %184 = vector.shape_cast %183 : vector<1x32x288xf32> to vector<32x288xf32>
    %185 = vector.extract_strided_slice %182 {offsets = [0, 55], sizes = [32, 9], strides = [1, 1]} : vector<32x64xf32> to vector<32x9xf32>
    %186 = vector.extract_strided_slice %182 {offsets = [0, 0], sizes = [32, 55], strides = [1, 1]} : vector<32x64xf32> to vector<32x55xf32>
    %187 = tpu.concatenate %185, %186 in 1 : vector<32x9xf32>, vector<32x55xf32> -> vector<32x64xf32>
    %188 = vector.extract_strided_slice %182 {offsets = [0, 56], sizes = [32, 8], strides = [1, 1]} : vector<32x64xf32> to vector<32x8xf32>
    %189 = vector.extract_strided_slice %182 {offsets = [0, 0], sizes = [32, 56], strides = [1, 1]} : vector<32x64xf32> to vector<32x56xf32>
    %190 = tpu.concatenate %188, %189 in 1 : vector<32x8xf32>, vector<32x56xf32> -> vector<32x64xf32>
    %191 = vector.extract_strided_slice %182 {offsets = [0, 57], sizes = [32, 7], strides = [1, 1]} : vector<32x64xf32> to vector<32x7xf32>
    %192 = vector.extract_strided_slice %182 {offsets = [0, 0], sizes = [32, 57], strides = [1, 1]} : vector<32x64xf32> to vector<32x57xf32>
    %193 = tpu.concatenate %191, %192 in 1 : vector<32x7xf32>, vector<32x57xf32> -> vector<32x64xf32>
    %194 = vector.extract_strided_slice %182 {offsets = [0, 63], sizes = [32, 1], strides = [1, 1]} : vector<32x64xf32> to vector<32x1xf32>
    %195 = vector.extract_strided_slice %182 {offsets = [0, 0], sizes = [32, 63], strides = [1, 1]} : vector<32x64xf32> to vector<32x63xf32>
    %196 = tpu.concatenate %194, %195 in 1 : vector<32x1xf32>, vector<32x63xf32> -> vector<32x64xf32>
    %197 = vector.extract_strided_slice %182 {offsets = [0, 1], sizes = [32, 63], strides = [1, 1]} : vector<32x64xf32> to vector<32x63xf32>
    %198 = vector.extract_strided_slice %182 {offsets = [0, 0], sizes = [32, 1], strides = [1, 1]} : vector<32x64xf32> to vector<32x1xf32>
    %199 = tpu.concatenate %197, %198 in 1 : vector<32x63xf32>, vector<32x1xf32> -> vector<32x64xf32>
    %200 = vector.extract_strided_slice %182 {offsets = [0, 7], sizes = [32, 57], strides = [1, 1]} : vector<32x64xf32> to vector<32x57xf32>
    %201 = vector.extract_strided_slice %182 {offsets = [0, 0], sizes = [32, 7], strides = [1, 1]} : vector<32x64xf32> to vector<32x7xf32>
    %202 = tpu.concatenate %200, %201 in 1 : vector<32x57xf32>, vector<32x7xf32> -> vector<32x64xf32>
    %203 = vector.extract_strided_slice %182 {offsets = [0, 8], sizes = [32, 56], strides = [1, 1]} : vector<32x64xf32> to vector<32x56xf32>
    %204 = vector.extract_strided_slice %182 {offsets = [0, 0], sizes = [32, 8], strides = [1, 1]} : vector<32x64xf32> to vector<32x8xf32>
    %205 = tpu.concatenate %203, %204 in 1 : vector<32x56xf32>, vector<32x8xf32> -> vector<32x64xf32>
    %206 = vector.extract_strided_slice %182 {offsets = [0, 9], sizes = [32, 55], strides = [1, 1]} : vector<32x64xf32> to vector<32x55xf32>
    %207 = vector.extract_strided_slice %182 {offsets = [0, 0], sizes = [32, 9], strides = [1, 1]} : vector<32x64xf32> to vector<32x9xf32>
    %208 = tpu.concatenate %206, %207 in 1 : vector<32x55xf32>, vector<32x9xf32> -> vector<32x64xf32>
    %209 = tpu.concatenate %187, %190, %193, %196, %182, %199, %202, %205, %208 in 0 : vector<32x64xf32>, vector<32x64xf32>, vector<32x64xf32>, vector<32x64xf32>, vector<32x64xf32>, vector<32x64xf32>, vector<32x64xf32>, vector<32x64xf32>, vector<32x64xf32> -> vector<288x64xf32>
    %cst_49 = arith.constant dense<0.000000e+00> : vector<32x64xf32>
    %210 = tpu.matmul %184, %209, %cst_49 {dimension_numbers = #tpu.dot_dimension_numbers<[1], [0], [0], [1], [0, 0, 1, 1], [], []>} : vector<32x288xf32>, vector<288x64xf32>, vector<32x64xf32> -> vector<32x64xf32>
    %c0_50 = arith.constant 0 : index
    %c1_51 = arith.constant 1 : index
    %211 = vector.load %arg10[%c0_50, %c1_51] : memref<32x3xf32, #tpu.memory_space<vmem>>, vector<32x1xf32>
    %212 = vector.broadcast %211 : vector<32x1xf32> to vector<32x64xf32>
    %213 = arith.addf %210, %212 : vector<32x64xf32>
    %cst_52 = arith.constant 0.000000e+00 : f32
    %214 = vector.broadcast %cst_52 : f32 to vector<32x64xf32>
    %215 = arith.maximumf %213, %214 : vector<32x64xf32>
    %216 = vector.broadcast %9 : vector<1x64xf32> to vector<32x64xf32>
    %217 = arith.mulf %215, %216 : vector<32x64xf32>
    %c2_53 = arith.constant 2 : index
    %c0_54 = arith.constant 0 : index
    %c0_55 = arith.constant 0 : index
    %218 = vector.load %arg9[%c2_53, %c0_54, %c0_55] : memref<3x32x288xf32, #tpu.memory_space<vmem>>, vector<1x32x288xf32>
    %219 = vector.shape_cast %218 : vector<1x32x288xf32> to vector<32x288xf32>
    %220 = vector.extract_strided_slice %217 {offsets = [0, 55], sizes = [32, 9], strides = [1, 1]} : vector<32x64xf32> to vector<32x9xf32>
    %221 = vector.extract_strided_slice %217 {offsets = [0, 0], sizes = [32, 55], strides = [1, 1]} : vector<32x64xf32> to vector<32x55xf32>
    %222 = tpu.concatenate %220, %221 in 1 : vector<32x9xf32>, vector<32x55xf32> -> vector<32x64xf32>
    %223 = vector.extract_strided_slice %217 {offsets = [0, 56], sizes = [32, 8], strides = [1, 1]} : vector<32x64xf32> to vector<32x8xf32>
    %224 = vector.extract_strided_slice %217 {offsets = [0, 0], sizes = [32, 56], strides = [1, 1]} : vector<32x64xf32> to vector<32x56xf32>
    %225 = tpu.concatenate %223, %224 in 1 : vector<32x8xf32>, vector<32x56xf32> -> vector<32x64xf32>
    %226 = vector.extract_strided_slice %217 {offsets = [0, 57], sizes = [32, 7], strides = [1, 1]} : vector<32x64xf32> to vector<32x7xf32>
    %227 = vector.extract_strided_slice %217 {offsets = [0, 0], sizes = [32, 57], strides = [1, 1]} : vector<32x64xf32> to vector<32x57xf32>
    %228 = tpu.concatenate %226, %227 in 1 : vector<32x7xf32>, vector<32x57xf32> -> vector<32x64xf32>
    %229 = vector.extract_strided_slice %217 {offsets = [0, 63], sizes = [32, 1], strides = [1, 1]} : vector<32x64xf32> to vector<32x1xf32>
    %230 = vector.extract_strided_slice %217 {offsets = [0, 0], sizes = [32, 63], strides = [1, 1]} : vector<32x64xf32> to vector<32x63xf32>
    %231 = tpu.concatenate %229, %230 in 1 : vector<32x1xf32>, vector<32x63xf32> -> vector<32x64xf32>
    %232 = vector.extract_strided_slice %217 {offsets = [0, 1], sizes = [32, 63], strides = [1, 1]} : vector<32x64xf32> to vector<32x63xf32>
    %233 = vector.extract_strided_slice %217 {offsets = [0, 0], sizes = [32, 1], strides = [1, 1]} : vector<32x64xf32> to vector<32x1xf32>
    %234 = tpu.concatenate %232, %233 in 1 : vector<32x63xf32>, vector<32x1xf32> -> vector<32x64xf32>
    %235 = vector.extract_strided_slice %217 {offsets = [0, 7], sizes = [32, 57], strides = [1, 1]} : vector<32x64xf32> to vector<32x57xf32>
    %236 = vector.extract_strided_slice %217 {offsets = [0, 0], sizes = [32, 7], strides = [1, 1]} : vector<32x64xf32> to vector<32x7xf32>
    %237 = tpu.concatenate %235, %236 in 1 : vector<32x57xf32>, vector<32x7xf32> -> vector<32x64xf32>
    %238 = vector.extract_strided_slice %217 {offsets = [0, 8], sizes = [32, 56], strides = [1, 1]} : vector<32x64xf32> to vector<32x56xf32>
    %239 = vector.extract_strided_slice %217 {offsets = [0, 0], sizes = [32, 8], strides = [1, 1]} : vector<32x64xf32> to vector<32x8xf32>
    %240 = tpu.concatenate %238, %239 in 1 : vector<32x56xf32>, vector<32x8xf32> -> vector<32x64xf32>
    %241 = vector.extract_strided_slice %217 {offsets = [0, 9], sizes = [32, 55], strides = [1, 1]} : vector<32x64xf32> to vector<32x55xf32>
    %242 = vector.extract_strided_slice %217 {offsets = [0, 0], sizes = [32, 9], strides = [1, 1]} : vector<32x64xf32> to vector<32x9xf32>
    %243 = tpu.concatenate %241, %242 in 1 : vector<32x55xf32>, vector<32x9xf32> -> vector<32x64xf32>
    %244 = tpu.concatenate %222, %225, %228, %231, %217, %234, %237, %240, %243 in 0 : vector<32x64xf32>, vector<32x64xf32>, vector<32x64xf32>, vector<32x64xf32>, vector<32x64xf32>, vector<32x64xf32>, vector<32x64xf32>, vector<32x64xf32>, vector<32x64xf32> -> vector<288x64xf32>
    %cst_56 = arith.constant dense<0.000000e+00> : vector<32x64xf32>
    %245 = tpu.matmul %219, %244, %cst_56 {dimension_numbers = #tpu.dot_dimension_numbers<[1], [0], [0], [1], [0, 0, 1, 1], [], []>} : vector<32x288xf32>, vector<288x64xf32>, vector<32x64xf32> -> vector<32x64xf32>
    %c0_57 = arith.constant 0 : index
    %c2_58 = arith.constant 2 : index
    %246 = vector.load %arg10[%c0_57, %c2_58] : memref<32x3xf32, #tpu.memory_space<vmem>>, vector<32x1xf32>
    %247 = vector.broadcast %246 : vector<32x1xf32> to vector<32x64xf32>
    %248 = arith.addf %245, %247 : vector<32x64xf32>
    %cst_59 = arith.constant 0.000000e+00 : f32
    %249 = vector.broadcast %cst_59 : f32 to vector<32x64xf32>
    %250 = arith.maximumf %248, %249 : vector<32x64xf32>
    %251 = vector.broadcast %9 : vector<1x64xf32> to vector<32x64xf32>
    %252 = arith.mulf %250, %251 : vector<32x64xf32>
    %253 = vector.extract_strided_slice %252 {offsets = [0, 1], sizes = [32, 63], strides = [1, 1]} : vector<32x64xf32> to vector<32x63xf32>
    %254 = vector.extract_strided_slice %252 {offsets = [0, 0], sizes = [32, 1], strides = [1, 1]} : vector<32x64xf32> to vector<32x1xf32>
    %255 = tpu.concatenate %253, %254 in 1 : vector<32x63xf32>, vector<32x1xf32> -> vector<32x64xf32>
    %256 = vector.extract_strided_slice %252 {offsets = [0, 2], sizes = [32, 62], strides = [1, 1]} : vector<32x64xf32> to vector<32x62xf32>
    %257 = vector.extract_strided_slice %252 {offsets = [0, 0], sizes = [32, 2], strides = [1, 1]} : vector<32x64xf32> to vector<32x2xf32>
    %258 = tpu.concatenate %256, %257 in 1 : vector<32x62xf32>, vector<32x2xf32> -> vector<32x64xf32>
    %259 = vector.extract_strided_slice %252 {offsets = [0, 8], sizes = [32, 56], strides = [1, 1]} : vector<32x64xf32> to vector<32x56xf32>
    %260 = vector.extract_strided_slice %252 {offsets = [0, 0], sizes = [32, 8], strides = [1, 1]} : vector<32x64xf32> to vector<32x8xf32>
    %261 = tpu.concatenate %259, %260 in 1 : vector<32x56xf32>, vector<32x8xf32> -> vector<32x64xf32>
    %262 = vector.extract_strided_slice %252 {offsets = [0, 9], sizes = [32, 55], strides = [1, 1]} : vector<32x64xf32> to vector<32x55xf32>
    %263 = vector.extract_strided_slice %252 {offsets = [0, 0], sizes = [32, 9], strides = [1, 1]} : vector<32x64xf32> to vector<32x9xf32>
    %264 = tpu.concatenate %262, %263 in 1 : vector<32x55xf32>, vector<32x9xf32> -> vector<32x64xf32>
    %265 = vector.extract_strided_slice %252 {offsets = [0, 10], sizes = [32, 54], strides = [1, 1]} : vector<32x64xf32> to vector<32x54xf32>
    %266 = vector.extract_strided_slice %252 {offsets = [0, 0], sizes = [32, 10], strides = [1, 1]} : vector<32x64xf32> to vector<32x10xf32>
    %267 = tpu.concatenate %265, %266 in 1 : vector<32x54xf32>, vector<32x10xf32> -> vector<32x64xf32>
    %268 = vector.extract_strided_slice %252 {offsets = [0, 16], sizes = [32, 48], strides = [1, 1]} : vector<32x64xf32> to vector<32x48xf32>
    %269 = vector.extract_strided_slice %252 {offsets = [0, 0], sizes = [32, 16], strides = [1, 1]} : vector<32x64xf32> to vector<32x16xf32>
    %270 = tpu.concatenate %268, %269 in 1 : vector<32x48xf32>, vector<32x16xf32> -> vector<32x64xf32>
    %271 = vector.extract_strided_slice %252 {offsets = [0, 17], sizes = [32, 47], strides = [1, 1]} : vector<32x64xf32> to vector<32x47xf32>
    %272 = vector.extract_strided_slice %252 {offsets = [0, 0], sizes = [32, 17], strides = [1, 1]} : vector<32x64xf32> to vector<32x17xf32>
    %273 = tpu.concatenate %271, %272 in 1 : vector<32x47xf32>, vector<32x17xf32> -> vector<32x64xf32>
    %274 = vector.extract_strided_slice %252 {offsets = [0, 18], sizes = [32, 46], strides = [1, 1]} : vector<32x64xf32> to vector<32x46xf32>
    %275 = vector.extract_strided_slice %252 {offsets = [0, 0], sizes = [32, 18], strides = [1, 1]} : vector<32x64xf32> to vector<32x18xf32>
    %276 = tpu.concatenate %274, %275 in 1 : vector<32x46xf32>, vector<32x18xf32> -> vector<32x64xf32>
    %277 = arith.maximumf %252, %255 : vector<32x64xf32>
    %278 = arith.maximumf %258, %261 : vector<32x64xf32>
    %279 = arith.maximumf %264, %267 : vector<32x64xf32>
    %280 = arith.maximumf %270, %273 : vector<32x64xf32>
    %281 = arith.maximumf %277, %278 : vector<32x64xf32>
    %282 = arith.maximumf %279, %280 : vector<32x64xf32>
    %283 = arith.maximumf %281, %282 : vector<32x64xf32>
    %284 = arith.maximumf %283, %276 : vector<32x64xf32>
    %285 = vector.extract_strided_slice %284 {offsets = [0, 0], sizes = [16, 64], strides = [1, 1]} : vector<32x64xf32> to vector<16x64xf32>
    %c0_60 = arith.constant 0 : index
    %c0_61 = arith.constant 0 : index
    %286 = vector.load %arg4[%c0_60, %c0_61] : memref<64x20xf32, #tpu.memory_space<vmem>>, vector<64x16xf32>
    %cst_62 = arith.constant dense<0.000000e+00> : vector<16x16xf32>
    %287 = tpu.matmul %285, %286, %cst_62 {dimension_numbers = #tpu.dot_dimension_numbers<[1], [0], [0], [1], [0, 0, 1, 1], [], []>} : vector<16x64xf32>, vector<64x16xf32>, vector<16x16xf32> -> vector<16x16xf32>
    %288 = vector.extract_strided_slice %284 {offsets = [16, 0], sizes = [16, 64], strides = [1, 1]} : vector<32x64xf32> to vector<16x64xf32>
    %c0_63 = arith.constant 0 : index
    %c16 = arith.constant 16 : index
    %289 = vector.load %arg4[%c0_63, %c16] : memref<64x20xf32, #tpu.memory_space<vmem>>, vector<64x4xf32>
    %cst_64 = arith.constant dense<0.000000e+00> : vector<16x4xf32>
    %290 = tpu.matmul %288, %289, %cst_64 {dimension_numbers = #tpu.dot_dimension_numbers<[1], [0], [0], [1], [0, 0, 1, 1], [], []>} : vector<16x64xf32>, vector<64x4xf32>, vector<16x4xf32> -> vector<16x4xf32>
    %c0_65 = arith.constant 0 : index
    %c0_66 = arith.constant 0 : index
    %291 = vector.load %arg2[%c0_65, %c0_66] : memref<1x8xf32, #tpu.memory_space<vmem>>, vector<1x8xf32>
    %c0_67 = arith.constant 0 : index
    %c0_68 = arith.constant 0 : index
    %292 = vector.load %arg11[%c0_67, %c0_68] : memref<40x32xf32, #tpu.memory_space<vmem>>, vector<8x32xf32>
    %cst_69 = arith.constant dense<0.000000e+00> : vector<1x32xf32>
    %293 = tpu.matmul %291, %292, %cst_69 {dimension_numbers = #tpu.dot_dimension_numbers<[1], [0], [0], [1], [0, 0, 1, 1], [], []>} : vector<1x8xf32>, vector<8x32xf32>, vector<1x32xf32> -> vector<1x32xf32>
    %c0_70 = arith.constant 0 : index
    %c0_71 = arith.constant 0 : index
    %294 = vector.load %arg15[%c0_70, %c0_71] : memref<1x694xf32, #tpu.memory_space<vmem>>, vector<1x32xf32>
    %295 = arith.addf %293, %294 : vector<1x32xf32>
    %cst_72 = arith.constant 0.000000e+00 : f32
    %296 = vector.broadcast %cst_72 : f32 to vector<1x32xf32>
    %297 = arith.maximumf %295, %296 : vector<1x32xf32>
    %c8_73 = arith.constant 8 : index
    %c0_74 = arith.constant 0 : index
    %298 = vector.load %arg11[%c8_73, %c0_74] : memref<40x32xf32, #tpu.memory_space<vmem>>, vector<32x16xf32>
    %cst_75 = arith.constant dense<0.000000e+00> : vector<1x16xf32>
    %299 = tpu.matmul %297, %298, %cst_75 {dimension_numbers = #tpu.dot_dimension_numbers<[1], [0], [0], [1], [0, 0, 1, 1], [], []>} : vector<1x32xf32>, vector<32x16xf32>, vector<1x16xf32> -> vector<1x16xf32>
    %c0_76 = arith.constant 0 : index
    %c32 = arith.constant 32 : index
    %300 = vector.load %arg15[%c0_76, %c32] : memref<1x694xf32, #tpu.memory_space<vmem>>, vector<1x16xf32>
    %301 = arith.addf %299, %300 : vector<1x16xf32>
    %c0_77 = arith.constant 0 : index
    %c0_78 = arith.constant 0 : index
    %302 = vector.load %arg12[%c0_77, %c0_78] : memref<20x2048xf32, #tpu.memory_space<vmem>>, vector<16x2048xf32>
    %cst_79 = arith.constant dense<0.000000e+00> : vector<16x2048xf32>
    %303 = tpu.matmul %287, %302, %cst_79 {dimension_numbers = #tpu.dot_dimension_numbers<[1], [0], [0], [1], [0, 0, 1, 1], [], []>} : vector<16x16xf32>, vector<16x2048xf32>, vector<16x2048xf32> -> vector<16x2048xf32>
    %c16_80 = arith.constant 16 : index
    %c0_81 = arith.constant 0 : index
    %304 = vector.load %arg12[%c16_80, %c0_81] : memref<20x2048xf32, #tpu.memory_space<vmem>>, vector<4x2048xf32>
    %cst_82 = arith.constant dense<0.000000e+00> : vector<16x2048xf32>
    %305 = tpu.matmul %290, %304, %cst_82 {dimension_numbers = #tpu.dot_dimension_numbers<[1], [0], [0], [1], [0, 0, 1, 1], [], []>} : vector<16x4xf32>, vector<4x2048xf32>, vector<16x2048xf32> -> vector<16x2048xf32>
    %306 = arith.addf %303, %305 : vector<16x2048xf32>
    %307 = vector.extract_strided_slice %306 {offsets = [0, 0], sizes = [1, 128], strides = [1, 1]} : vector<16x2048xf32> to vector<1x128xf32>
    %308 = vector.extract_strided_slice %306 {offsets = [1, 128], sizes = [1, 128], strides = [1, 1]} : vector<16x2048xf32> to vector<1x128xf32>
    %309 = vector.extract_strided_slice %306 {offsets = [2, 256], sizes = [1, 128], strides = [1, 1]} : vector<16x2048xf32> to vector<1x128xf32>
    %310 = vector.extract_strided_slice %306 {offsets = [3, 384], sizes = [1, 128], strides = [1, 1]} : vector<16x2048xf32> to vector<1x128xf32>
    %311 = vector.extract_strided_slice %306 {offsets = [4, 512], sizes = [1, 128], strides = [1, 1]} : vector<16x2048xf32> to vector<1x128xf32>
    %312 = vector.extract_strided_slice %306 {offsets = [5, 640], sizes = [1, 128], strides = [1, 1]} : vector<16x2048xf32> to vector<1x128xf32>
    %313 = vector.extract_strided_slice %306 {offsets = [6, 768], sizes = [1, 128], strides = [1, 1]} : vector<16x2048xf32> to vector<1x128xf32>
    %314 = vector.extract_strided_slice %306 {offsets = [7, 896], sizes = [1, 128], strides = [1, 1]} : vector<16x2048xf32> to vector<1x128xf32>
    %315 = vector.extract_strided_slice %306 {offsets = [8, 1024], sizes = [1, 128], strides = [1, 1]} : vector<16x2048xf32> to vector<1x128xf32>
    %316 = vector.extract_strided_slice %306 {offsets = [9, 1152], sizes = [1, 128], strides = [1, 1]} : vector<16x2048xf32> to vector<1x128xf32>
    %317 = vector.extract_strided_slice %306 {offsets = [10, 1280], sizes = [1, 128], strides = [1, 1]} : vector<16x2048xf32> to vector<1x128xf32>
    %318 = vector.extract_strided_slice %306 {offsets = [11, 1408], sizes = [1, 128], strides = [1, 1]} : vector<16x2048xf32> to vector<1x128xf32>
    %319 = vector.extract_strided_slice %306 {offsets = [12, 1536], sizes = [1, 128], strides = [1, 1]} : vector<16x2048xf32> to vector<1x128xf32>
    %320 = vector.extract_strided_slice %306 {offsets = [13, 1664], sizes = [1, 128], strides = [1, 1]} : vector<16x2048xf32> to vector<1x128xf32>
    %321 = vector.extract_strided_slice %306 {offsets = [14, 1792], sizes = [1, 128], strides = [1, 1]} : vector<16x2048xf32> to vector<1x128xf32>
    %322 = vector.extract_strided_slice %306 {offsets = [15, 1920], sizes = [1, 128], strides = [1, 1]} : vector<16x2048xf32> to vector<1x128xf32>
    %323 = arith.addf %307, %308 : vector<1x128xf32>
    %324 = arith.addf %309, %310 : vector<1x128xf32>
    %325 = arith.addf %311, %312 : vector<1x128xf32>
    %326 = arith.addf %313, %314 : vector<1x128xf32>
    %327 = arith.addf %315, %316 : vector<1x128xf32>
    %328 = arith.addf %317, %318 : vector<1x128xf32>
    %329 = arith.addf %319, %320 : vector<1x128xf32>
    %330 = arith.addf %321, %322 : vector<1x128xf32>
    %331 = arith.addf %323, %324 : vector<1x128xf32>
    %332 = arith.addf %325, %326 : vector<1x128xf32>
    %333 = arith.addf %327, %328 : vector<1x128xf32>
    %334 = arith.addf %329, %330 : vector<1x128xf32>
    %335 = arith.addf %331, %332 : vector<1x128xf32>
    %336 = arith.addf %333, %334 : vector<1x128xf32>
    %337 = arith.addf %335, %336 : vector<1x128xf32>
    %c0_83 = arith.constant 0 : index
    %c0_84 = arith.constant 0 : index
    %338 = vector.load %arg13[%c0_83, %c0_84] : memref<16x128xf32, #tpu.memory_space<vmem>>, vector<16x128xf32>
    %cst_85 = arith.constant dense<0.000000e+00> : vector<1x128xf32>
    %339 = tpu.matmul %301, %338, %cst_85 {dimension_numbers = #tpu.dot_dimension_numbers<[1], [0], [0], [1], [0, 0, 1, 1], [], []>} : vector<1x16xf32>, vector<16x128xf32>, vector<1x128xf32> -> vector<1x128xf32>
    %340 = arith.addf %337, %339 : vector<1x128xf32>
    %c0_86 = arith.constant 0 : index
    %c48 = arith.constant 48 : index
    %341 = vector.load %arg15[%c0_86, %c48] : memref<1x694xf32, #tpu.memory_space<vmem>>, vector<1x128xf32>
    %342 = arith.addf %340, %341 : vector<1x128xf32>
    %cst_87 = arith.constant 0.000000e+00 : f32
    %343 = vector.broadcast %cst_87 : f32 to vector<1x128xf32>
    %344 = arith.maximumf %342, %343 : vector<1x128xf32>
    %c0_88 = arith.constant 0 : index
    %c0_89 = arith.constant 0 : index
    %345 = vector.load %arg14[%c0_88, %c0_89] : memref<128x518xf32, #tpu.memory_space<vmem>>, vector<128x512xf32>
    %cst_90 = arith.constant dense<0.000000e+00> : vector<1x512xf32>
    %346 = tpu.matmul %344, %345, %cst_90 {dimension_numbers = #tpu.dot_dimension_numbers<[1], [0], [0], [1], [0, 0, 1, 1], [], []>} : vector<1x128xf32>, vector<128x512xf32>, vector<1x512xf32> -> vector<1x512xf32>
    %c0_91 = arith.constant 0 : index
    %c176 = arith.constant 176 : index
    %347 = vector.load %arg15[%c0_91, %c176] : memref<1x694xf32, #tpu.memory_space<vmem>>, vector<1x512xf32>
    %348 = arith.addf %346, %347 : vector<1x512xf32>
    %349 = vector.extract_strided_slice %348 {offsets = [0, 0], sizes = [1, 128], strides = [1, 1]} : vector<1x512xf32> to vector<1x128xf32>
    %350 = arith.negf %349 : vector<1x128xf32>
    %351 = math.exp %350 : vector<1x128xf32>
    %cst_92 = arith.constant 1.000000e+00 : f32
    %352 = vector.broadcast %cst_92 : f32 to vector<1x128xf32>
    %353 = arith.addf %352, %351 : vector<1x128xf32>
    %354 = arith.divf %352, %353 : vector<1x128xf32>
    %355 = vector.extract_strided_slice %348 {offsets = [0, 256], sizes = [1, 128], strides = [1, 1]} : vector<1x512xf32> to vector<1x128xf32>
    %356 = math.tanh %355 : vector<1x128xf32>
    %357 = vector.extract_strided_slice %348 {offsets = [0, 384], sizes = [1, 128], strides = [1, 1]} : vector<1x512xf32> to vector<1x128xf32>
    %358 = arith.negf %357 : vector<1x128xf32>
    %359 = math.exp %358 : vector<1x128xf32>
    %cst_93 = arith.constant 1.000000e+00 : f32
    %360 = vector.broadcast %cst_93 : f32 to vector<1x128xf32>
    %361 = arith.addf %360, %359 : vector<1x128xf32>
    %362 = arith.divf %360, %361 : vector<1x128xf32>
    %363 = arith.mulf %354, %356 : vector<1x128xf32>
    %364 = math.tanh %363 : vector<1x128xf32>
    %365 = arith.mulf %362, %364 : vector<1x128xf32>
    %c0_94 = arith.constant 0 : index
    %c512 = arith.constant 512 : index
    %366 = vector.load %arg14[%c0_94, %c512] : memref<128x518xf32, #tpu.memory_space<vmem>>, vector<128x6xf32>
    %cst_95 = arith.constant dense<0.000000e+00> : vector<1x6xf32>
    %367 = tpu.matmul %365, %366, %cst_95 {dimension_numbers = #tpu.dot_dimension_numbers<[1], [0], [0], [1], [0, 0, 1, 1], [], []>} : vector<1x128xf32>, vector<128x6xf32>, vector<1x6xf32> -> vector<1x6xf32>
    %c0_96 = arith.constant 0 : index
    %c688 = arith.constant 688 : index
    %368 = vector.load %arg15[%c0_96, %c688] : memref<1x694xf32, #tpu.memory_space<vmem>>, vector<1x6xf32>
    %369 = arith.addf %367, %368 : vector<1x6xf32>
    %cst_97 = arith.constant dense<0xFF800000> : vector<1xf32>
    %370 = vector.multi_reduction <maximumf>, %369, %cst_97 [1] : vector<1x6xf32> to vector<1xf32>
    %371 = vector.shape_cast %370 : vector<1xf32> to vector<1x1xf32>
    %372 = vector.broadcast %371 : vector<1x1xf32> to vector<1x6xf32>
    %373 = arith.subf %369, %372 : vector<1x6xf32>
    %374 = math.exp %373 : vector<1x6xf32>
    %cst_98 = arith.constant dense<0.000000e+00> : vector<1xf32>
    %375 = vector.multi_reduction <add>, %374, %cst_98 [1] : vector<1x6xf32> to vector<1xf32>
    %376 = vector.shape_cast %375 : vector<1xf32> to vector<1x1xf32>
    %377 = vector.broadcast %376 : vector<1x1xf32> to vector<1x6xf32>
    %378 = arith.divf %374, %377 : vector<1x6xf32>
    %c0_99 = arith.constant 0 : index
    %c0_100 = arith.constant 0 : index
    %379 = vector.load %arg16[%c0_99, %c0_100] : memref<1x6xf32, #tpu.memory_space<vmem>>, vector<1x6xf32>
    tpu.vector_store %arg16[%c0_99, %c0_100], %378 {strides = array<i32>} : memref<1x6xf32, #tpu.memory_space<vmem>>, vector<1x6xf32>,
    %c0_101 = arith.constant 0 : index
    %c0_102 = arith.constant 0 : index
    %380 = vector.load %arg17[%c0_101, %c0_102] : memref<1x6xf32, #tpu.memory_space<vmem>>, vector<1x6xf32>
    tpu.vector_store %arg17[%c0_101, %c0_102], %369 {strides = array<i32>} : memref<1x6xf32, #tpu.memory_space<vmem>>, vector<1x6xf32>,
    return
  }
}

</mosaic_0001>

<bundles_post_ra>
// kernel: _fused_call.1
= control target key start
LH: loop header
LB: loop body
LE: loop exit
PB: predicated region body
PF: predicated region fallthrough
CT: control target
= control target key end

     0   :  { %s8325_s0 = inlined_call_operand.vmem [shape: f32[36,64], index: 0, kind: input, shape index: {}]   ;;  %s8326_s1 = inlined_call_operand.vmem [shape: f32[100,256], index: 1, kind: input, shape index: {}]   ;;  %s8327_s2 = inlined_call_operand.vmem [shape: f32[1,8], index: 2, kind: input, shape index: {}]   ;;  %s8328_s3 = inlined_call_operand.vmem [shape: f32[256,64], index: 3, kind: input, shape index: {}]   ;;  %s8329_s4 = inlined_call_operand.vmem [shape: f32[64,20], index: 4, kind: input, shape index: {}]   ;;  %s8330_s5 = inlined_call_operand.vmem [shape: f32[10,64], index: 5, kind: input, shape index: {}]   ;;  %s8331_s6 = inlined_call_operand.vmem [shape: f32[1,256], index: 6, kind: input, shape index: {}]   ;;  %s8332_s7 = inlined_call_operand.vmem [shape: f32[16,424], index: 7, kind: input, shape index: {}]   ;;  %s8333_s8 = inlined_call_operand.vmem [shape: f32[16,4], index: 8, kind: input, shape index: {}]   ;;  %s8334_s9 = inlined_call_operand.vmem [shape: f32[3,32,288], index: 9, kind: input, shape index: {}]   ;;  %s8335_s10 = inlined_call_operand.vmem [shape: f32[32,3], index: 10, kind: input, shape index: {}]   ;;  %s8336_s11 = inlined_call_operand.vmem [shape: f32[40,32], index: 11, kind: input, shape index: {}]   ;;  %s8337_s12 = inlined_call_operand.vmem [shape: f32[20,2048], index: 12, kind: input, shape index: {}]   ;;  %s8338_s13 = inlined_call_operand.vmem [shape: f32[16,128], index: 13, kind: input, shape index: {}]   ;;  %s8339_s14 = inlined_call_operand.vmem [shape: f32[128,518], index: 14, kind: input, shape index: {}]   ;;  %s8340_s15 = inlined_call_operand.vmem [shape: f32[1,694], index: 15, kind: input, shape index: {}]   ;;  %s8341_s16 = inlined_call_operand.hbm [shape: f32[1,6], index: 16, kind: output, shape index: {0}]   ;;  %s8342_s17 = inlined_call_operand.hbm [shape: f32[1,6], index: 17, kind: output, shape index: {1}]  }
   0x1   :  { %8398 = sst [smem:[#allocation8_spill]] %s8325_s0 }
   0x2   :  { %8399 = sst [smem:[#allocation9_spill]] %s8326_s1 }
   0x3   :  { %8400 = sst [smem:[#allocation10_spill]] %s8339_s14 }
   0x4   :  { %8401 = sst [smem:[#allocation11_spill]] %s8341_s16 }
   0x5   :  { %8402 = sst [smem:[#allocation12_spill]] %s8342_s17 }
   0x6   :  { %23 = vsyncpa [#allocation3], 0  ;;  %v5875_v0 = vld [vmem:[%s8332_s7 + $0x8] sm:$0xff]  ;;  %vm93_vm0 = vcmask 1043456   ;;  %s5739_s28 = smov 76   ;;  %s8403_s30 = sld [smem:[#allocation8_spill]] }
   0x7   :  { %v5880_v1 = vld [vmem:[%s8332_s7 + $0x28] sm:$0xff]  ;;  %503 = vrot.lane.b32.xlu0 %v5875_v0, %s5739_s28  ;;  %vm86_vm1 = vcmask 293888   ;;  %v5890_v3 = vld [vmem:[%s8332_s7 + $0x10] sm:$0xff]  ;;  %v5740_v6 = vmov 0.0   ;;  %v5906_v7 = vld [vmem:[%s8332_s7] sm:$0xff]  ;;  %v5741_v8 = vmov 2  }
   0x8   :  { %507 = vrot.lane.b32.xlu1 %v5880_v1, %s5739_s28  ;;  %v5895_v4 = vld [vmem:[%s8332_s7 + $0x30] sm:$0xff]  ;;  %384 = vmatprep.subr.mxu1 %v5740_v6  ;;  %v5926_v12 = vld [vmem:[%s8332_s7 + $0x20] sm:$0xff]  ;;  %s8404_s21 = sld [smem:[#allocation9_spill]]  ;;  %v5951_v18 = vld [vmem:[%s8333_s8 + $0x8] sm:$0xff] }
   0x9   :  { %5661 = vset.pattern.permute.xlu1 %v5741_v8  ;;  %5474 = vmatprep.mubr.msk.f32.mxu0 %vm86_vm1, %v5906_v7  ;;  %v5946_v17 = vld [vmem:[%s8333_s8] sm:$0xff] }
   0xa   :  { %5660 = vset.pattern.permute.xlu0 %v5741_v8 }
   0xb   :  { %505 = vrot.lane.b32.xlu0 %v5890_v3, %s5739_s28 }
   0xc   :  { %v73_v2 = vld [vmem:[%s8403_s30 + $0x20] sm:$0xf]  ;;  %v72_v5 = vld [vmem:[%s8403_s30 + $0x18] sm:$0xff]  ;;  %v71_v9 = vld [vmem:[%s8403_s30 + $0x10] sm:$0xff]  ;;  %509 = vrot.lane.b32.xlu1 %v5895_v4, %s5739_s28 }
   0xd   :  { %5464 = vmatprep.subr.msk.mxu0 %vm93_vm0, %v73_v2  ;;  %v70_v10 = vld [vmem:[%s8403_s30 + $0x8] sm:$0xff]  ;;  %v69_v11 = vld [vmem:[%s8403_s30] sm:$0xff] }
   0xe   :  { %5465 = vmatpush3.msk.msra.mxu0 %vm93_vm0, %v73_v2  ;;  %v490_v13 = vld [vmem:[%s8404_s21 + $0xc8] sm:$0xf]  ;;  %v489_v14 = vld [vmem:[%s8404_s21 + $0xc0] sm:$0xf]  ;;  %v488_v15 = vld [vmem:[%s8404_s21 + $0xb8] sm:$0xff] }
   0xf   :  { %5466 = vmatprep.subr.mxu0 %v72_v5  ;;  %v487_v16 = vld [vmem:[%s8404_s21 + $0xb0] sm:$0xff] }
  0x10   :  { %5467 = vmatpush3.msra.mxu0 %v72_v5 }
  0x11   :  { %5468 = vmatprep.subr.mxu0 %v71_v9 }
  0x12   :  { %5469 = vmatpush3.msra.mxu0 %v71_v9 }
  0x13   :  { %5470 = vmatprep.subr.mxu0 %v70_v10 }
  0x14   :  { %5471 = vmatpush3.msra.mxu0 %v70_v10 }
  0x15   :  { %5472 = vmatprep.subr.mxu0 %v69_v11 }
  0x16   :  { %5473 = vmatpush3.msra.mxu0 %v69_v11 }
  0x17   :  { %5475 = vmatmul.mubr.msk.f32.vlgmr.msra.gmra.mxu0 %vm86_vm1, %v5926_v12  ;;  %5115 = vmatprep.subr.msk.mxu0 %vm93_vm0, %v490_v13 }
  0x18   :  { %24 = vsyncpa [#allocation5], 0  ;;  %5116 = vmatpush1.msk.msra.mxu0 %vm93_vm0, %v489_v14  ;;  %v486_v19 = vld [vmem:[%s8404_s21 + $0xa8] sm:$0xff]  ;;  %589 = vmatprep.mubr.f32.mxu0 %v5740_v6  ;;  %v485_v20 = vld [vmem:[%s8404_s21 + $0xa0] sm:$0xff]  ;;  %vm511_vm2 = vcmask 621568   ;;  %vm514_vm3 = vcmask 818176   ;;  %v608_v48 = vlaneseq }
  0x19   :  { %533 = vmatprep.subr.mxu0 %v488_v15  ;;  %492 = vperm.xlu1 %5661, %v5946_v17   ;;  %v484_v21 = vld [vmem:[%s8404_s21 + $0x98] sm:$0xff]  ;;  %v483_v22 = vld [vmem:[%s8404_s21 + $0x90] sm:$0xff]  ;;  %v482_v23 = vld [vmem:[%s8404_s21 + $0x88] sm:$0xff]  ;;  %v5742_v47 = vmov 0   ;;  %s8363_s19 = smov 1   ;;  %s8367_s1 = smov 112  }
  0x1a   :  { %534 = vmatpush1.msra.mxu0 %v487_v16  ;;  %496 = vperm.xlu0 %5660, %v5951_v18   ;;  %v481_v24 = vld [vmem:[%s8404_s21 + $0x80] sm:$0xff]  ;;  %v480_v25 = vld [vmem:[%s8404_s21 + $0x78] sm:$0xff]  ;;  %v479_v26 = vld [vmem:[%s8404_s21 + $0x70] sm:$0xff]  ;;  %v6026_v49 = vshrl.u32 %v608_v48, 7  ;;  %s5746_s28 = smov 113   ;;  %s8385_s20 = smov 127  }
  0x1b   :  { %535 = vmatprep.subr.mxu0 %v486_v19  ;;  %v478_v27 = vld [vmem:[%s8404_s21 + $0x68] sm:$0xff]  ;;  %v477_v28 = vld [vmem:[%s8404_s21 + $0x60] sm:$0xff]  ;;  %v476_v29 = vld [vmem:[%s8404_s21 + $0x58] sm:$0xff]  ;;  %s5748_s22 = smov 16   ;;  %s5749_s8 = smov 17   ;;  %vm750_vm4 = vcmask 916480  }
  0x1c   :  { %536 = vmatpush1.msra.mxu0 %v485_v20  ;;  %v475_v30 = vld [vmem:[%s8404_s21 + $0x50] sm:$0xff]  ;;  %v474_v31 = vld [vmem:[%s8404_s21 + $0x48] sm:$0xff]  ;;  %v473_v32 = vld [vmem:[%s8404_s21 + $0x40] sm:$0xff]  ;;  %v6031_v51 = vsub.s32 0, %v6026_v49  ;;  %v6042_v62 = vsub.s32 1, %v6026_v49  ;;  %s8369_s23 = smov 111  }
  0x1d   :  { %537 = vmatprep.subr.mxu0 %v484_v21  ;;  %v472_v33 = vld [vmem:[%s8404_s21 + $0x38] sm:$0xff]  ;;  %v471_v34 = vld [vmem:[%s8404_s21 + $0x30] sm:$0xff]  ;;  %v470_v35 = vld [vmem:[%s8404_s21 + $0x28] sm:$0xff]  ;;  %5662 = vset.pattern.permute.xlu1 %v5742_v47  ;;  %s5751_s30 = smov 104   ;;  %vm731_vm5 = vcmask 924672   ;;  %vm712_vm6 = vcmask 1039360  }
  0x1e   :  { %538 = vmatpush1.msra.mxu0 %v483_v22  ;;  %v469_v36 = vld [vmem:[%s8404_s21 + $0x20] sm:$0xff]  ;;  %v468_v37 = vld [vmem:[%s8404_s21 + $0x18] sm:$0xff]  ;;  %v467_v38 = vld [vmem:[%s8404_s21 + $0x10] sm:$0xff]  ;;  %5663 = vset.pattern.permute.xlu0 %v5742_v47  ;;  %vm255_vm7 = vcmask 7168   ;;  %vm677_vm8 = vcmask 121856   ;;  %vm379_vm9 = vcmask 130048  }
  0x1f   :  { %539 = vmatprep.subr.mxu0 %v482_v23  ;;  %v466_v39 = vld [vmem:[%s8404_s21 + $0x8] sm:$0xff]  ;;  %v465_v40 = vld [vmem:[%s8404_s21] sm:$0xff]  ;;  %v623_v21 = vld [vmem:[%s8332_s7 + $0x18] sm:$0xff]  ;;  %vm640_vm10 = vcmask 138240   ;;  %vm769_vm11 = vcmask 908288   ;;  %vm800_vm12 = vcmask 850944  }
  0x20   :  { %540 = vmatpush1.msra.mxu0 %v481_v24  ;;  %v606_v54 = vld [vmem:[%s8331_s6] sm:$0x3]  ;;  %s5745_s6 = smov 15   ;;  %v625_v22 = vld [vmem:[%s8332_s7 + $0x38] sm:$0xff]  ;;  %s8389_s7 = smov 120   ;;  %vm324_vm13 = vcmask 457728  }
  0x21   :  { %541 = vmatprep.subr.mxu0 %v480_v25  ;;  %v611_v57 = vrot.slane %v606_v54, %v6031_v51  ;;  %v615_v2 = vrot.slane %v606_v54, %v6042_v62  ;;  %s8359_s29 = smov 121   ;;  %s8395_s0 = smov 56   ;;  %vm303_vm14 = vcmask 465920   ;;  %vm282_vm15 = vcmask 515072  }
  0x22   :  { %542 = vmatpush1.msra.mxu0 %v479_v26  ;;  %s8357_s21 = smov 57   ;;  %s8361_s18 = smov 65   ;;  %vm234_vm1 = vcmask 56320  }
  0x23   :  { %543 = vmatprep.subr.mxu0 %v478_v27  ;;  %s8345_s24 = smov 73   ;;  %s8349_s25 = smov 8  }
  0x24   :  { %544 = vmatpush1.msra.mxu0 %v477_v28  ;;  %s8347_s26 = smov 9   ;;  %s5766_s27 = smov 92  }
  0x25   :  { %545 = vmatprep.subr.mxu0 %v476_v29  ;;  %s8423_s16 = smov 54   ;;  %s8424_s17 = smov 118  }
  0x26   :  { %546 = vmatpush1.msra.mxu0 %v475_v30  ;;  %s8425_s14 = smov 48  }
  0x27   :  { %547 = vmatprep.subr.mxu0 %v474_v31 }
  0x28   :  { %548 = vmatpush1.msra.mxu0 %v473_v32  ;;  %v5752_v32 = vmov 3  }
  0x29   :  { %549 = vmatprep.subr.mxu0 %v472_v33 }
  0x2a   :  { %550 = vmatpush1.msra.mxu0 %v471_v34 }
  0x2b   :  { %551 = vmatprep.subr.mxu0 %v470_v35 }
  0x2c   :  { %552 = vmatpush1.msra.mxu0 %v469_v36 }
  0x2d   :  { %553 = vmatprep.subr.mxu0 %v468_v37 }
  0x2e   :  { %554 = vmatpush1.msra.mxu0 %v467_v38 }
  0x2f   :  { %555 = vmatprep.subr.mxu0 %v466_v39 }
  0x30   :  { %556 = vmatpush1.msra.mxu0 %v465_v40 }
  0x79   :  { %v504_v41 = vpop.permute.xlu0 %503 }
  0x7a   :  { %v508_v42 = vpop.permute.xlu1 %507 }
  0x7d   :  { %v506_v43 = vpop.permute.xlu0 %505 }
  0x7e   :  { %v510_v44 = vpop.permute.xlu1 %509  ;;  %v512_v45 = vsel %vm511_vm2, %v504_v41, %v506_v43 }
  0x7f   :  { %5117 = vmatmul.mubr.msk.f32.vlgmr.msra.gmra.mxu0 %vm514_vm3, %v512_v45  ;;  %v513_v46 = vsel %vm511_vm2, %v508_v42, %v510_v44  ;;  %vm213_vm2 = vcmask 64512  }
  0x80   :  { %595 = vmatprep.mubr.f32.mxu0 %v5740_v6 }
  0x83   :  { %5118 = vmatmul.mubr.msk.f32.gmra.mxu0 %vm514_vm3, %v513_v46  ;;  %vm192_vm3 = vcmask 72704  }
  0x94   :  { %v493_v53 = vpop.permute.xlu1 %492 }
  0x95   :  { %v497_v9 = vpop.permute.xlu0 %496 }
  0xd7   :  { %v6028_v50 = vpop.f32.mrf.mxu0 }
  0xd9   :  { %v6033_v52 = vpop.f32.mrf.mxu0 }
 0x13f   :  { %v591_v55 = vpop.f32.mrf.mxu0 }
 0x140   :  { %v592_v56 = vadd.f32 %v591_v55, %v493_v53 }
 0x141   :  { %v593_v58 = vpop.f32.mrf.mxu0 }
 0x142   :  { %v602_v59 = vmax.f32 %v592_v56, 0.0  ;;  %v594_v61 = vadd.f32 %v593_v58, %v493_v53 }
 0x143   :  { %v597_v10 = vpop.f32.mrf.mxu0 }
 0x144   :  { %v6039_v60 = vmul.f32 %v611_v57, %v602_v59  ;;  %v603_v63 = vmax.f32 %v594_v61, 0.0  ;;  %v598_v11 = vadd.f32 %v597_v10, %v497_v9 }
 0x145   :  { %v599_v14 = vpop.f32.mrf.mxu0 }
 0x146   :  { %692 = vrot.lane.b32.xlu0 %v6039_v60, %s8363_s19  ;;  %742 = vrot.lane.b32.xlu1 %v6039_v60, %s8367_s1  ;;  %v6052_v5 = vmul.f32 %v615_v2, %v603_v63  ;;  %v604_v13 = vmax.f32 %v598_v11, 0.0  ;;  %v600_v16 = vadd.f32 %v599_v14, %v497_v9 }
 0x148   :  { %v6065_v15 = vmul.f32 %v611_v57, %v604_v13  ;;  %v605_v19 = vmax.f32 %v600_v16, 0.0 }
 0x14a   :  { %673 = vrot.lane.b32.xlu0 %v6039_v60, %s5745_s6  ;;  %723 = vrot.lane.b32.xlu1 %v6039_v60, %s5746_s28  ;;  %v6074_v20 = vmul.f32 %v615_v2, %v605_v19 }
 0x14e   :  { %744 = vrot.lane.b32.xlu0 %v6052_v5, %s8367_s1  ;;  %704 = vrot.lane.b32.xlu1 %v6039_v60, %s8385_s20 }
 0x152   :  { %725 = vrot.lane.b32.xlu0 %v6052_v5, %s5746_s28  ;;  %686 = vrot.lane.b32.xlu1 %v6052_v5, %s8363_s19 }
 0x156   :  { %706 = vrot.lane.b32.xlu0 %v6052_v5, %s8385_s20  ;;  %667 = vrot.lane.b32.xlu1 %v6052_v5, %s5745_s6 }
 0x15a   :  { %694 = vrot.lane.b32.xlu0 %v6065_v15, %s8363_s19  ;;  %746 = vrot.lane.b32.xlu1 %v6065_v15, %s8367_s1 }
 0x15e   :  { %675 = vrot.lane.b32.xlu0 %v6065_v15, %s5745_s6  ;;  %727 = vrot.lane.b32.xlu1 %v6065_v15, %s5746_s28 }
 0x162   :  { %748 = vrot.lane.b32.xlu0 %v6074_v20, %s8367_s1  ;;  %708 = vrot.lane.b32.xlu1 %v6065_v15, %s8385_s20 }
 0x166   :  { %729 = vrot.lane.b32.xlu0 %v6074_v20, %s5746_s28  ;;  %649 = vrot.lane.b32.xlu1 %v6052_v5, %s5748_s22  ;;  %s8355_s28 = smov 71  }
 0x16a   :  { %710 = vrot.lane.b32.xlu0 %v6074_v20, %s8385_s20  ;;  %628 = vrot.lane.b32.xlu1 %v6052_v5, %s5749_s8 }
 0x16e   :  { %657 = vrot.lane.b32.xlu0 %v6065_v15, %s5748_s22  ;;  %765 = vrot.lane.b32.xlu1 %v6065_v15, %s8369_s23 }
 0x172   :  { %655 = vrot.lane.b32.xlu0 %v6039_v60, %s5748_s22  ;;  %688 = vrot.lane.b32.xlu1 %v6074_v20, %s8363_s19 }
 0x176   :  { %638 = vrot.lane.b32.xlu0 %v6065_v15, %s5749_s8  ;;  %669 = vrot.lane.b32.xlu1 %v6074_v20, %s5745_s6  ;;  %s8387_s6 = smov 63  }
 0x17a   :  { %636 = vrot.lane.b32.xlu0 %v6039_v60, %s5749_s8  ;;  %651 = vrot.lane.b32.xlu1 %v6074_v20, %s5748_s22  ;;  %s8351_s22 = smov 72  }
 0x17e   :  { %763 = vrot.lane.b32.xlu0 %v6052_v5, %s8369_s23  ;;  %630 = vrot.lane.b32.xlu1 %v6074_v20, %s5749_s8  ;;  %s8353_s8 = smov 7  }
 0x182   :  { %767 = vrot.lane.b32.xlu0 %v6074_v20, %s8369_s23  ;;  %761 = vrot.lane.b32.xlu1 %v6039_v60, %s8369_s23 }
 0x186   :  { %794 = vrot.lane.b32.xlu0 %v623_v21, %s5751_s30  ;;  %792 = vrot.lane.b32.xlu1 %v5890_v3, %s5751_s30 }
 0x18a   :  { %798 = vrot.lane.b32.xlu0 %v625_v22, %s5751_s30  ;;  %796 = vrot.lane.b32.xlu1 %v5895_v4, %s5751_s30  ;;  %s8391_s30 = smov 119  }
 0x18e   :  { %78 = vperm.xlu0 %5663, %v5946_v17   ;;  %83 = vperm.xlu1 %5662, %v5951_v18  }
 0x192   :  { %5664 = vset.pattern.permute.xlu0 %v5752_v32  ;;  %5665 = vset.pattern.permute.xlu1 %v5752_v32 }
 0x1b8   :  { %v6113_v23 = vpop.permute.xlu0 %692  ;;  %v743_v24 = vpop.permute.xlu1 %742 }
 0x1bc   :  { %v6115_v25 = vpop.permute.xlu0 %673  ;;  %v724_v26 = vpop.permute.xlu1 %723 }
 0x1c0   :  { %v745_v27 = vpop.permute.xlu0 %744  ;;  %v705_v28 = vpop.permute.xlu1 %704 }
 0x1c1   :  { %v759_v40 = vsel %vm750_vm4, %v745_v27, %v743_v24  ;;  %v751_v43 = vsel %vm750_vm4, %v743_v24, %v745_v27 }
 0x1c4   :  { %v726_v3 = vpop.permute.xlu0 %725  ;;  %v687_v29 = vpop.permute.xlu1 %686 }
 0x1c5   :  { %v740_v46 = vsel %vm731_vm5, %v726_v3, %v724_v26  ;;  %v732_v54 = vsel %vm731_vm5, %v724_v26, %v726_v3  ;;  %v696_v11 = vsel %vm255_vm7, %v6113_v23, %v687_v29 }
 0x1c8   :  { %v707_v30 = vpop.permute.xlu0 %706  ;;  %v6117_v31 = vpop.permute.xlu1 %667 }
 0x1c9   :  { %v721_v57 = vsel %vm712_vm6, %v707_v30, %v705_v28  ;;  %v713_v61 = vsel %vm712_vm6, %v705_v28, %v707_v30  ;;  %v684_v21 = vsel %vm677_vm8, %v6117_v31, %v6115_v25 }
 0x1cc   :  { %v695_v4 = vpop.permute.xlu0 %694  ;;  %v747_v33 = vpop.permute.xlu1 %746 }
 0x1d0   :  { %v676_v34 = vpop.permute.xlu0 %675  ;;  %v728_v35 = vpop.permute.xlu1 %727 }
 0x1d4   :  { %v749_v36 = vpop.permute.xlu0 %748  ;;  %v709_v37 = vpop.permute.xlu1 %708 }
 0x1d5   :  { %v760_v38 = vsel %vm750_vm4, %v749_v36, %v747_v33  ;;  %v752_v39 = vsel %vm750_vm4, %v747_v33, %v749_v36  ;;  %vm345_vm4 = vcmask 449536  }
 0x1d6   :  { %809 = vmatprep.subr.mxu0 %v760_v38 }
 0x1d7   :  { %810 = vmatpush1.msra.mxu0 %v752_v39 }
 0x1d8   :  { %v730_v41 = vpop.permute.xlu0 %729  ;;  %811 = vmatprep.subr.mxu0 %v759_v40  ;;  %v6119_v42 = vpop.permute.xlu1 %649 }
 0x1d9   :  { %812 = vmatpush1.msra.mxu0 %v751_v43  ;;  %v741_v44 = vsel %vm731_vm5, %v730_v41, %v728_v35  ;;  %v733_v45 = vsel %vm731_vm5, %v728_v35, %v730_v41  ;;  %vm374_vm5 = vcmask 752640  }
 0x1da   :  { %813 = vmatprep.subr.mxu0 %v741_v44 }
 0x1db   :  { %814 = vmatpush1.msra.mxu0 %v733_v45 }
 0x1dc   :  { %v711_v48 = vpop.permute.xlu0 %710  ;;  %815 = vmatprep.subr.mxu0 %v740_v46  ;;  %v6121_v53 = vpop.permute.xlu1 %628 }
 0x1dd   :  { %816 = vmatpush1.msra.mxu0 %v732_v54  ;;  %v722_v55 = vsel %vm712_vm6, %v711_v48, %v709_v37  ;;  %v714_v56 = vsel %vm712_vm6, %v709_v37, %v711_v48  ;;  %vm1053_vm6 = vcmask 506880  }
 0x1de   :  { %817 = vmatprep.subr.mxu0 %v722_v55 }
 0x1df   :  { %818 = vmatpush1.msra.mxu0 %v714_v56  ;;  %v5110_v56 = vld [vmem:[%s8330_s5 + $0x6] ss:$0 sm:$0xff] }
 0x1e0   :  { %v658_v58 = vpop.permute.xlu0 %657  ;;  %819 = vmatprep.subr.mxu0 %v721_v57  ;;  %v766_v59 = vpop.permute.xlu1 %765 }
 0x1e1   :  { %820 = vmatpush1.msra.mxu0 %v713_v61 }
 0x1e2   :  { %821 = vmatprep.subr.mxu0 %v6074_v20 }
 0x1e3   :  { %822 = vmatpush1.msra.mxu0 %v6065_v15  ;;  %v702_v15 = vsel %vm255_vm7, %v687_v29, %v6113_v23 }
 0x1e4   :  { %v656_v63 = vpop.permute.xlu0 %655  ;;  %823 = vmatprep.subr.mxu0 %v6052_v5  ;;  %v689_v2 = vpop.permute.xlu1 %688 }
 0x1e5   :  { %824 = vmatpush1.msra.mxu0 %v6039_v60  ;;  %v697_v9 = vsel %vm255_vm7, %v695_v4, %v689_v2  ;;  %v703_v10 = vsel %vm255_vm7, %v689_v2, %v695_v4  ;;  %v678_v60 = vsel %vm677_vm8, %v6115_v25, %v6117_v31  ;;  %v659_v24 = vsel %vm379_vm9, %v656_v63, %v6119_v42 }
 0x1e6   :  { %825 = vmatprep.subr.mxu0 %v697_v9  ;;  %v665_v28 = vsel %vm379_vm9, %v6119_v42, %v656_v63 }
 0x1e7   :  { %826 = vmatpush1.msra.mxu0 %v703_v10 }
 0x1e8   :  { %v639_v13 = vpop.permute.xlu0 %638  ;;  %827 = vmatprep.subr.mxu0 %v696_v11  ;;  %v670_v14 = vpop.permute.xlu1 %669  ;;  %v5109_v11 = vld [vmem:[%s8330_s5 + $0x5] ss:$0 sm:$0xff] }
 0x1e9   :  { %828 = vmatpush1.msra.mxu0 %v702_v15  ;;  %v679_v5 = vsel %vm677_vm8, %v676_v34, %v670_v14  ;;  %v685_v16 = vsel %vm677_vm8, %v670_v14, %v676_v34  ;;  %vm1138_vm8 = vcmask 441344  }
 0x1ea   :  { %829 = vmatprep.subr.mxu0 %v679_v5 }
 0x1eb   :  { %830 = vmatpush1.msra.mxu0 %v685_v16 }
 0x1ec   :  { %v637_v19 = vpop.permute.xlu0 %636  ;;  %831 = vmatprep.subr.mxu0 %v678_v60  ;;  %v652_v20 = vpop.permute.xlu1 %651 }
 0x1ed   :  { %832 = vmatpush1.msra.mxu0 %v684_v21  ;;  %v660_v22 = vsel %vm379_vm9, %v658_v58, %v652_v20  ;;  %v666_v23 = vsel %vm379_vm9, %v652_v20, %v658_v58  ;;  %v641_v29 = vsel %vm640_vm10, %v637_v19, %v6121_v53  ;;  %v647_v32 = vsel %vm640_vm10, %v6121_v53, %v637_v19  ;;  %v5108_v20 = vld [vmem:[%s8330_s5 + $0x4] ss:$0 sm:$0xff] }
 0x1ee   :  { %833 = vmatprep.subr.mxu0 %v660_v22 }
 0x1ef   :  { %834 = vmatpush1.msra.mxu0 %v666_v23 }
 0x1f0   :  { %v764_v26 = vpop.permute.xlu0 %763  ;;  %835 = vmatprep.subr.mxu0 %v659_v24  ;;  %v631_v27 = vpop.permute.xlu1 %630 }
 0x1f1   :  { %836 = vmatpush1.msra.mxu0 %v665_v28  ;;  %v642_v25 = vsel %vm640_vm10, %v639_v13, %v631_v27  ;;  %v648_v3 = vsel %vm640_vm10, %v631_v27, %v639_v13  ;;  %vm1167_vm10 = vcmask 392192  }
 0x1f2   :  { %837 = vmatprep.subr.mxu0 %v642_v25 }
 0x1f3   :  { %838 = vmatpush1.msra.mxu0 %v648_v3 }
 0x1f4   :  { %v768_v30 = vpop.permute.xlu0 %767  ;;  %839 = vmatprep.subr.mxu0 %v641_v29  ;;  %v762_v31 = vpop.permute.xlu1 %761 }
 0x1f5   :  { %840 = vmatpush1.msra.mxu0 %v647_v32  ;;  %v779_v4 = vsel %vm769_vm11, %v768_v30, %v766_v59  ;;  %v771_v33 = vsel %vm769_vm11, %v766_v59, %v768_v30  ;;  %v778_v34 = vsel %vm769_vm11, %v764_v26, %v762_v31  ;;  %v770_v37 = vsel %vm769_vm11, %v762_v31, %v764_v26  ;;  %v5107_v26 = vld [vmem:[%s8330_s5 + $0x3] ss:$0 sm:$0xff]  ;;  %v5106_v32 = vld [vmem:[%s8330_s5 + $0x2] ss:$0 sm:$0xff] }
 0x1f6   :  { %869 = vmatprep.subr.mxu0 %v779_v4  ;;  %vm1196_vm11 = vcmask 384000  }
 0x1f7   :  { %870 = vmatpush2.msra.mxu0 %v771_v33 }
 0x1f8   :  { %v795_v35 = vpop.permute.xlu0 %794  ;;  %871 = vmatprep.subr.mxu0 %v778_v34  ;;  %v793_v36 = vpop.permute.xlu1 %792 }
 0x1f9   :  { %v801_v38 = vsel %vm800_vm12, %v793_v36, %v795_v35  ;;  %872 = vmatpush2.msra.mxu0 %v770_v37  ;;  %5119 = vmatprep.mubr.msk.f32.mxu0 %vm379_vm9, %v795_v35 }
 0x1fa   :  { %874 = vmatmul.mubr.f32.vlgmr.msra.gmra.mxu0 %v801_v38 }
 0x1fc   :  { %v799_v39 = vpop.permute.xlu0 %798  ;;  %v797_v40 = vpop.permute.xlu1 %796 }
 0x1fd   :  { %5120 = vmatprep.mubr.msk.f32.mxu0 %vm379_vm9, %v799_v39  ;;  %v802_v41 = vsel %vm800_vm12, %v797_v40, %v799_v39  ;;  %v5105_v40 = vld [vmem:[%s8330_s5 + $0x1] ss:$0 sm:$0xff]  ;;  %vm1225_vm12 = vcmask 375808  }
 0x1fe   :  { %880 = vmatmul.mubr.f32.gmra.mxu0 %v802_v41 }
 0x209   :  { %v79_v42 = vpop.permute.xlu0 %78  ;;  %v84_v43 = vpop.permute.xlu1 %83 }
 0x20a   :  { %v164_v44 = vadd.f32 %v6033_v52, %v79_v42  ;;  %v169_v45 = vadd.f32 %v6028_v50, %v84_v43  ;;  %v5768_v50 = vmov 1  }
 0x20c   :  { %v6153_v46 = vmax.f32 %v164_v44, 0.0  ;;  %v6155_v48 = vmax.f32 %v169_v45, 0.0 }
 0x20e   :  { %312 = vrot.lane.b32.xlu0 %v6153_v46, %s8389_s7  ;;  %314 = vrot.lane.b32.xlu1 %v6155_v48, %s8389_s7  ;;  %v269_v24 = vmul.f32 %v5108_v20, %v6155_v48  ;;  %v268_v28 = vmul.f32 %v5108_v20, %v6153_v46  ;;  %v902_v20 = vld [vmem:[%s8328_s3 + $0x60] sm:$0xff] }
 0x212   :  { %293 = vrot.lane.b32.xlu0 %v6155_v48, %s8359_s29  ;;  %320 = vrot.lane.b32.xlu1 %v6155_v48, %s8395_s0 }
 0x216   :  { %291 = vrot.lane.b32.xlu0 %v6153_v46, %s8359_s29  ;;  %318 = vrot.lane.b32.xlu1 %v6153_v46, %s8395_s0  ;;  %s8377_s29 = smov 48  }
 0x21a   :  { %272 = vrot.lane.b32.xlu0 %v6155_v48, %s8385_s20  ;;  %299 = vrot.lane.b32.xlu1 %v6155_v48, %s8357_s21 }
 0x21e   :  { %270 = vrot.lane.b32.xlu0 %v6153_v46, %s8385_s20  ;;  %297 = vrot.lane.b32.xlu1 %v6153_v46, %s8357_s21  ;;  %s8379_s21 = smov 54  }
 0x222   :  { %245 = vrot.lane.b32.xlu0 %v6155_v48, %s8361_s18  ;;  %278 = vrot.lane.b32.xlu1 %v6155_v48, %s8387_s6 }
 0x226   :  { %243 = vrot.lane.b32.xlu0 %v6153_v46, %s8361_s18  ;;  %276 = vrot.lane.b32.xlu1 %v6153_v46, %s8387_s6  ;;  %s8407_s18 = smov 121  }
 0x22a   :  { %224 = vrot.lane.b32.xlu0 %v6155_v48, %s8355_s28  ;;  %251 = vrot.lane.b32.xlu1 %v6155_v48, %s8363_s19 }
 0x22e   :  { %222 = vrot.lane.b32.xlu0 %v6153_v46, %s8355_s28  ;;  %249 = vrot.lane.b32.xlu1 %v6153_v46, %s8363_s19  ;;  %s8375_s19 = smov 47   ;;  %s8405_s28 = smov 1  }
 0x232   :  { %203 = vrot.lane.b32.xlu0 %v6155_v48, %s8351_s22  ;;  %230 = vrot.lane.b32.xlu1 %v6155_v48, %s8353_s8 }
 0x236   :  { %201 = vrot.lane.b32.xlu0 %v6153_v46, %s8351_s22  ;;  %228 = vrot.lane.b32.xlu1 %v6153_v46, %s8353_s8  ;;  %s8381_s8 = smov 126   ;;  %s8406_s22 = smov 65  }
 0x23a   :  { %182 = vrot.lane.b32.xlu0 %v6155_v48, %s8345_s24  ;;  %209 = vrot.lane.b32.xlu1 %v6155_v48, %s8349_s25 }
 0x23e   :  { %180 = vrot.lane.b32.xlu0 %v6153_v46, %s8345_s24  ;;  %207 = vrot.lane.b32.xlu1 %v6153_v46, %s8349_s25  ;;  %s8393_s24 = smov 55   ;;  %s8371_s25 = smov 110  }
 0x242   :  { %335 = vrot.lane.b32.xlu0 %v6155_v48, %s8391_s30  ;;  %188 = vrot.lane.b32.xlu1 %v6155_v48, %s8347_s26 }
 0x246   :  { %333 = vrot.lane.b32.xlu0 %v6153_v46, %s8391_s30  ;;  %186 = vrot.lane.b32.xlu1 %v6153_v46, %s8347_s26  ;;  %s8365_s26 = smov 118  }
 0x24a   :  { %366 = vrot.lane.b32.xlu0 %v5906_v7, %s5766_s27  ;;  %341 = vrot.lane.b32.xlu1 %v6155_v48, %s8393_s24 }
 0x24e   :  { %781 = vperm.xlu0 %5664, %v5946_v17   ;;  %339 = vrot.lane.b32.xlu1 %v6153_v46, %s8393_s24 }
 0x252   :  { %368 = vrot.lane.b32.xlu1 %v5875_v0, %s5766_s27  ;;  %372 = vrot.lane.b32.xlu0 %v5880_v1, %s5766_s27  ;;  %v5111_v1 = vld [vmem:[%s8330_s5 + $0x7] ss:$0 sm:$0xff] }
 0x253   :  { %5667 = vset.pattern.permute.xlu0 %v5768_v50 }
 0x256   :  { %785 = vperm.xlu1 %5665, %v5951_v18   ;;  %355 = vperm.xlu0 %5667, %v5946_v17  }
 0x25a   :  { %370 = vrot.lane.b32.xlu1 %v5926_v12, %s5766_s27  ;;  %5668 = vset.pattern.permute.xlu0 %v5742_v47  ;;  %s8373_s27 = smov 46  }
 0x25b   :  { %5666 = vset.pattern.permute.xlu1 %v5768_v50 }
 0x25e   :  { %359 = vperm.xlu1 %5666, %v5951_v18  }
 0x262   :  { %5669 = vset.pattern.permute.xlu1 %v5742_v47 }
 0x280   :  { %v313_v0 = vpop.permute.xlu0 %312  ;;  %v315_v7 = vpop.permute.xlu1 %314 }
 0x284   :  { %v294_v12 = vpop.permute.xlu0 %293  ;;  %v321_v52 = vpop.permute.xlu1 %320 }
 0x285   :  { %v326_v53 = vsel %vm324_vm13, %v315_v7, %v321_v52  ;;  %v5104_v7 = vld [vmem:[%s8330_s5] ss:$0 sm:$0xff] }
 0x286   :  { %v332_v54 = vmul.f32 %v5111_v1, %v326_v53 }
 0x288   :  { %v292_v55 = vpop.permute.xlu0 %291  ;;  %v319_v17 = vpop.permute.xlu1 %318  ;;  %385 = vmatpush1.msra.mxu1 %v332_v54 }
 0x289   :  { %v325_v18 = vsel %vm324_vm13, %v313_v0, %v319_v17  ;;  %386 = vmatprep.subr.mxu1 %v5740_v6 }
 0x28a   :  { %v331_v47 = vmul.f32 %v5111_v1, %v325_v18  ;;  %v5112_v18 = vld [vmem:[%s8330_s5 + $0x8] ss:$0 sm:$0xff] }
 0x28c   :  { %v273_v57 = vpop.permute.xlu0 %272  ;;  %v300_v58 = vpop.permute.xlu1 %299  ;;  %387 = vmatpush1.msra.mxu1 %v331_v47 }
 0x28d   :  { %v305_v59 = vsel %vm303_vm14, %v294_v12, %v300_v58  ;;  %388 = vmatprep.subr.mxu1 %v5740_v6 }
 0x28e   :  { %v311_v61 = vmul.f32 %v5110_v56, %v305_v59 }
 0x290   :  { %v271_v63 = vpop.permute.xlu0 %270  ;;  %v298_v2 = vpop.permute.xlu1 %297  ;;  %389 = vmatpush1.msra.mxu1 %v311_v61 }
 0x291   :  { %v304_v9 = vsel %vm303_vm14, %v292_v55, %v298_v2  ;;  %390 = vmatprep.subr.mxu1 %v5740_v6 }
 0x292   :  { %v310_v10 = vmul.f32 %v5110_v56, %v304_v9  ;;  %v921_v9 = vld [vmem:[%s8328_s3 + $0xf8] sm:$0xff] }
 0x294   :  { %v246_v13 = vpop.permute.xlu0 %245  ;;  %v279_v14 = vpop.permute.xlu1 %278  ;;  %391 = vmatpush1.msra.mxu1 %v310_v10 }
 0x295   :  { %v284_v15 = vsel %vm282_vm15, %v273_v57, %v279_v14  ;;  %392 = vmatprep.subr.mxu1 %v5740_v6  ;;  %v920_v14 = vld [vmem:[%s8328_s3 + $0xf0] sm:$0xff] }
 0x296   :  { %v290_v5 = vmul.f32 %v5109_v11, %v284_v15  ;;  %v904_v15 = vld [vmem:[%s8328_s3 + $0x70] sm:$0xff] }
 0x298   :  { %v244_v16 = vpop.permute.xlu0 %243  ;;  %v277_v60 = vpop.permute.xlu1 %276  ;;  %393 = vmatpush1.msra.mxu1 %v290_v5  ;;  %v919_v5 = vld [vmem:[%s8328_s3 + $0xe8] sm:$0xff] }
 0x299   :  { %v283_v19 = vsel %vm282_vm15, %v271_v63, %v277_v60  ;;  %394 = vmatprep.subr.mxu1 %v5740_v6 }
 0x29a   :  { %v289_v21 = vmul.f32 %v5109_v11, %v283_v19  ;;  %v905_v11 = vld [vmem:[%s8328_s3 + $0x78] sm:$0xff]  ;;  %v918_v19 = vld [vmem:[%s8328_s3 + $0xe0] sm:$0xff] }
 0x29c   :  { %v225_v22 = vpop.permute.xlu0 %224  ;;  %v252_v23 = vpop.permute.xlu1 %251  ;;  %395 = vmatpush1.msra.mxu1 %v289_v21  ;;  %v917_v21 = vld [vmem:[%s8328_s3 + $0xd8] sm:$0xff] }
 0x29d   :  { %v257_v27 = vsel %vm255_vm7, %v246_v13, %v252_v23  ;;  %396 = vmatprep.subr.mxu1 %v5740_v6  ;;  %v916_v23 = vld [vmem:[%s8328_s3 + $0xd0] sm:$0xff] }
 0x29e   :  { %397 = vmatpush1.msra.mxu1 %v269_v24  ;;  %v263_v25 = vmul.f32 %v5107_v26, %v257_v27  ;;  %v900_v27 = vld [vmem:[%s8328_s3 + $0x50] sm:$0xff] }
 0x29f   :  { %398 = vmatprep.subr.mxu1 %v5740_v6 }
 0x2a0   :  { %v223_v3 = vpop.permute.xlu0 %222  ;;  %v250_v29 = vpop.permute.xlu1 %249  ;;  %399 = vmatpush1.msra.mxu1 %v268_v28  ;;  %v915_v28 = vld [vmem:[%s8328_s3 + $0xc8] sm:$0xff] }
 0x2a1   :  { %v256_v30 = vsel %vm255_vm7, %v244_v16, %v250_v29  ;;  %400 = vmatprep.subr.mxu1 %v5740_v6  ;;  %v903_v16 = vld [vmem:[%s8328_s3 + $0x68] sm:$0xff]  ;;  %v914_v29 = vld [vmem:[%s8328_s3 + $0xc0] sm:$0xff] }
 0x2a2   :  { %v262_v31 = vmul.f32 %v5107_v26, %v256_v30  ;;  %401 = vmatpush1.msra.mxu1 %v263_v25  ;;  %v899_v25 = vld [vmem:[%s8328_s3 + $0x48] sm:$0xff] }
 0x2a3   :  { %402 = vmatprep.subr.mxu1 %v5740_v6 }
 0x2a4   :  { %v204_v4 = vpop.permute.xlu0 %203  ;;  %v231_v33 = vpop.permute.xlu1 %230  ;;  %403 = vmatpush1.msra.mxu1 %v262_v31  ;;  %v898_v31 = vld [vmem:[%s8328_s3 + $0x40] sm:$0xff] }
 0x2a5   :  { %v236_v34 = vsel %vm234_vm1, %v225_v22, %v231_v33  ;;  %404 = vmatprep.subr.mxu1 %v5740_v6  ;;  %v901_v22 = vld [vmem:[%s8328_s3 + $0x58] sm:$0xff] }
 0x2a6   :  { %v242_v35 = vmul.f32 %v5106_v32, %v236_v34  ;;  %v897_v33 = vld [vmem:[%s8328_s3 + $0x38] sm:$0xff] }
 0x2a8   :  { %v202_v36 = vpop.permute.xlu0 %201  ;;  %v229_v37 = vpop.permute.xlu1 %228  ;;  %405 = vmatpush1.msra.mxu1 %v242_v35  ;;  %v912_v35 = vld [vmem:[%s8328_s3 + $0xb0] sm:$0xff] }
 0x2a9   :  { %v235_v38 = vsel %vm234_vm1, %v223_v3, %v229_v37  ;;  %406 = vmatprep.subr.mxu1 %v5740_v6  ;;  %v896_v37 = vld [vmem:[%s8328_s3 + $0x30] sm:$0xff] }
 0x2aa   :  { %v241_v39 = vmul.f32 %v5106_v32, %v235_v38 }
 0x2ac   :  { %v183_v41 = vpop.permute.xlu0 %182  ;;  %v210_v42 = vpop.permute.xlu1 %209  ;;  %407 = vmatpush1.msra.mxu1 %v241_v39  ;;  %v911_v39 = vld [vmem:[%s8328_s3 + $0xa8] sm:$0xff] }
 0x2ad   :  { %v215_v43 = vsel %vm213_vm2, %v204_v4, %v210_v42  ;;  %408 = vmatprep.subr.mxu1 %v5740_v6  ;;  %v913_v4 = vld [vmem:[%s8328_s3 + $0xb8] sm:$0xff]  ;;  %v894_v42 = vld [vmem:[%s8328_s3 + $0x20] sm:$0xff] }
 0x2ae   :  { %v221_v44 = vmul.f32 %v5105_v40, %v215_v43  ;;  %v909_v43 = vld [vmem:[%s8328_s3 + $0x98] sm:$0xff] }
 0x2b0   :  { %v208_v45 = vpop.permute.xlu1 %207  ;;  %409 = vmatpush1.msra.mxu1 %v221_v44  ;;  %v181_v48 = vpop.permute.xlu0 %180 }
 0x2b1   :  { %v214_v46 = vsel %vm213_vm2, %v202_v36, %v208_v45  ;;  %410 = vmatprep.subr.mxu1 %v5740_v6  ;;  %v893_v45 = vld [vmem:[%s8328_s3 + $0x18] sm:$0xff] }
 0x2b2   :  { %v220_v0 = vmul.f32 %v5105_v40, %v214_v46  ;;  %v895_v40 = vld [vmem:[%s8328_s3 + $0x28] sm:$0xff]  ;;  %v908_v46 = vld [vmem:[%s8328_s3 + $0x90] sm:$0xff] }
 0x2b4   :  { %v189_v1 = vpop.permute.xlu1 %188  ;;  %411 = vmatpush1.msra.mxu1 %v220_v0  ;;  %v336_v53 = vpop.permute.xlu0 %335  ;;  %v907_v0 = vld [vmem:[%s8328_s3 + $0x88] sm:$0xff] }
 0x2b5   :  { %v194_v12 = vsel %vm192_vm3, %v183_v41, %v189_v1  ;;  %412 = vmatprep.subr.mxu1 %v5740_v6  ;;  %v910_v41 = vld [vmem:[%s8328_s3 + $0xa0] sm:$0xff] }
 0x2b6   :  { %v200_v52 = vmul.f32 %v5104_v7, %v194_v12  ;;  %v891_v12 = vld [vmem:[%s8328_s3 + $0x8] sm:$0xff] }
 0x2b8   :  { %v187_v54 = vpop.permute.xlu1 %186  ;;  %413 = vmatpush1.msra.mxu1 %v200_v52  ;;  %v334_v57 = vpop.permute.xlu0 %333 }
 0x2b9   :  { %v193_v55 = vsel %vm192_vm3, %v181_v48, %v187_v54  ;;  %414 = vmatprep.subr.mxu1 %v5740_v6  ;;  %v892_v48 = vld [vmem:[%s8328_s3 + $0x10] sm:$0xff]  ;;  %v890_v54 = vld [vmem:[%s8328_s3] sm:$0xff] }
 0x2ba   :  { %v199_v17 = vmul.f32 %v5104_v7, %v193_v55  ;;  %v875_v26 = vpop.f32.mrf.mxu0 }
 0x2bc   :  { %v342_v47 = vpop.permute.xlu1 %341  ;;  %415 = vmatpush1.msra.mxu1 %v199_v17  ;;  %v367_v2 = vpop.permute.xlu0 %366 }
 0x2bd   :  { %v347_v56 = vsel %vm345_vm4, %v336_v53, %v342_v47  ;;  %444 = vmatprep.subr.mxu1 %v5740_v6  ;;  %v877_v30 = vpop.f32.mrf.mxu0  ;;  %v906_v53 = vld [vmem:[%s8328_s3 + $0x80] sm:$0xff]  ;;  %s8383_s3 = smov 62  }
 0x2be   :  { %v353_v58 = vmul.f32 %v5112_v18, %v347_v56 }
 0x2bf   :  { %v881_v44 = vpop.f32.mrf.mxu0 }
 0x2c0   :  { %v340_v59 = vpop.permute.xlu1 %339  ;;  %445 = vmatpush2.msra.mxu1 %v353_v58 }
 0x2c1   :  { %v346_v61 = vsel %vm345_vm4, %v334_v57, %v340_v59  ;;  %446 = vmatprep.subr.mxu1 %v5740_v6  ;;  %v883_v7 = vpop.f32.mrf.mxu0 }
 0x2c2   :  { %v352_v63 = vmul.f32 %v5112_v18, %v346_v61 }
 0x2c4   :  { %v369_v10 = vpop.permute.xlu1 %368  ;;  %447 = vmatpush2.msra.mxu1 %v352_v63 }
 0x2c5   :  { %5113 = vmatprep.mubr.msk.f32.mxu1 %vm379_vm9, %v369_v10  ;;  %5223 = vmatprep.subr.mxu1 %v921_v9  ;;  %v375_v13 = vsel %vm374_vm5, %v367_v2, %v369_v10 }
 0x2c6   :  { %449 = vmatmul.mubr.f32.vlgmr.msra.gmra.mxu1 %v375_v13 }
 0x2c7   :  { %5224 = vmatpush3.msra.mxu1 %v905_v11 }
 0x2c8   :  { %5225 = vmatprep.subr.mxu1 %v920_v14 }
 0x2c9   :  { %5226 = vmatpush3.msra.mxu1 %v904_v15  ;;  %v782_v60 = vpop.permute.xlu0 %781 }
 0x2ca   :  { %5227 = vmatprep.subr.mxu1 %v919_v5  ;;  %v878_v32 = vadd.f32 %v877_v30, %v782_v60  ;;  %v876_v1 = vadd.f32 %v875_v26, %v782_v60 }
 0x2cb   :  { %5228 = vmatpush3.msra.mxu1 %v903_v16 }
 0x2cc   :  { %5229 = vmatprep.subr.mxu1 %v918_v19  ;;  %v887_v38 = vmax.f32 %v878_v32, 0.0  ;;  %v886_v55 = vmax.f32 %v876_v1, 0.0 }
 0x2cd   :  { %5230 = vmatpush3.msra.mxu1 %v902_v20  ;;  %v373_v24 = vpop.permute.xlu0 %372 }
 0x2ce   :  { %5231 = vmatprep.subr.mxu1 %v917_v21  ;;  %5114 = vmatprep.mubr.msk.f32.mxu1 %vm379_vm9, %v373_v24 }
 0x2cf   :  { %5232 = vmatpush3.msra.mxu1 %v901_v22 }
 0x2d0   :  { %5233 = vmatprep.subr.mxu1 %v916_v23 }
 0x2d1   :  { %5234 = vmatpush3.msra.mxu1 %v900_v27  ;;  %v786_v3 = vpop.permute.xlu1 %785  ;;  %v356_v56 = vpop.permute.xlu0 %355 }
 0x2d2   :  { %5235 = vmatprep.subr.mxu1 %v915_v28  ;;  %v884_v52 = vadd.f32 %v883_v7, %v786_v3  ;;  %v882_v17 = vadd.f32 %v881_v44, %v786_v3 }
 0x2d3   :  { %5236 = vmatpush3.msra.mxu1 %v899_v25 }
 0x2d4   :  { %5237 = vmatprep.subr.mxu1 %v914_v29  ;;  %v889_v18 = vmax.f32 %v884_v52, 0.0  ;;  %v888_v47 = vmax.f32 %v882_v17, 0.0 }
 0x2d5   :  { %5238 = vmatpush3.msra.mxu1 %v898_v31  ;;  %v371_v34 = vpop.permute.xlu1 %370 }
 0x2d6   :  { %5239 = vmatprep.subr.mxu1 %v913_v4  ;;  %v376_v36 = vsel %vm374_vm5, %v371_v34, %v373_v24  ;;  %vm1534_vm5 = vcmask 261120  }
 0x2d7   :  { %5240 = vmatpush3.msra.mxu1 %v897_v33 }
 0x2d8   :  { %454 = vmatmul.mubr.f32.gmra.mxu1 %v376_v36  ;;  %5241 = vmatprep.subr.mxu1 %v912_v35 }
 0x2d9   :  { %5242 = vmatpush3.msra.mxu1 %v896_v37  ;;  %986 = vmatprep.mubr.f32.mxu1 %v887_v38  ;;  %v360_v9 = vpop.permute.xlu1 %359 }
 0x2da   :  { %5243 = vmatprep.subr.mxu1 %v911_v39 }
 0x2db   :  { %5244 = vmatpush3.msra.mxu1 %v895_v40 }
 0x2dc   :  { %5245 = vmatprep.subr.mxu1 %v910_v41  ;;  %v6474_v41 = vld [vmem:[%s8330_s5 + $0x9] ss:$0 sm:$0xff] }
 0x2dd   :  { %5246 = vmatpush3.msra.mxu1 %v894_v42 }
 0x2de   :  { %5247 = vmatprep.subr.mxu1 %v909_v43 }
 0x2df   :  { %5248 = vmatpush3.msra.mxu1 %v893_v45 }
 0x2e0   :  { %5249 = vmatprep.subr.mxu1 %v908_v46 }
 0x2e1   :  { %5250 = vmatpush3.msra.mxu1 %v892_v48 }
 0x2e2   :  { %5251 = vmatprep.subr.mxu1 %v907_v0 }
 0x2e3   :  { %5252 = vmatpush3.msra.mxu1 %v891_v12 }
 0x2e4   :  { %5253 = vmatprep.subr.mxu1 %v906_v53 }
 0x2e5   :  { %5254 = vmatpush3.msra.mxu1 %v890_v54 }
 0x2e6   :  { %987 = vmatmul.mubr.f32.vlgmr.msra.gmra.mxu1 %v886_v55 }
 0x2e7   :  { %991 = vmatprep.mubr.f32.mxu1 %v889_v18 }
 0x2ea   :  { %992 = vmatmul.mubr.f32.gmra.mxu1 %v888_v47 }
 0x386   :  { %v450_v57 = vpop.f32.mrf.mxu1 }
 0x387   :  { %v451_v58 = vadd.f32 %v450_v57, %v356_v56 }
 0x388   :  { %v452_v59 = vpop.f32.mrf.mxu1 }
 0x389   :  { %v6395_v61 = vmax.f32 %v451_v58, 0.0 }
 0x38b   :  { %1013 = vrot.lane.b32.xlu1 %v6395_v61, %s8387_s6  ;;  %1001 = vrot.lane.b32.xlu0 %v6395_v61, %s8385_s20 }
 0x38f   :  { %1041 = vrot.lane.b32.xlu1 %v6395_v61, %s8383_s3  ;;  %1029 = vrot.lane.b32.xlu0 %v6395_v61, %s8381_s8 }
 0x393   :  { %1070 = vrot.lane.b32.xlu1 %v6395_v61, %s8395_s0  ;;  %1058 = vrot.lane.b32.xlu0 %v6395_v61, %s8389_s7 }
 0x397   :  { %1098 = vrot.lane.b32.xlu1 %v6395_v61, %s8393_s24  ;;  %1086 = vrot.lane.b32.xlu0 %v6395_v61, %s8391_s30 }
 0x398   :  { %v455_v63 = vpop.f32.mrf.mxu1 }
 0x399   :  { %v456_v10 = vadd.f32 %v455_v63, %v360_v9 }
 0x39a   :  { %v457_v2 = vpop.f32.mrf.mxu1 }
 0x39b   :  { %1126 = vrot.lane.b32.xlu1 %v6395_v61, %s8379_s21  ;;  %1114 = vrot.lane.b32.xlu0 %v6395_v61, %s8365_s26  ;;  %v6425_v11 = vmax.f32 %v456_v10, 0.0 }
 0x39f   :  { %1155 = vrot.lane.b32.xlu1 %v6395_v61, %s8377_s29  ;;  %1143 = vrot.lane.b32.xlu0 %v6395_v61, %s8367_s1 }
 0x3a3   :  { %1184 = vrot.lane.b32.xlu1 %v6395_v61, %s8375_s19  ;;  %1172 = vrot.lane.b32.xlu0 %v6395_v61, %s8369_s23 }
 0x3a7   :  { %1213 = vrot.lane.b32.xlu1 %v6395_v61, %s8373_s27  ;;  %1201 = vrot.lane.b32.xlu0 %v6395_v61, %s8371_s25 }
 0x3ab   :  { %1015 = vrot.lane.b32.xlu1 %v6425_v11, %s8387_s6  ;;  %1003 = vrot.lane.b32.xlu0 %v6425_v11, %s8385_s20 }
 0x3af   :  { %1043 = vrot.lane.b32.xlu1 %v6425_v11, %s8383_s3  ;;  %1031 = vrot.lane.b32.xlu0 %v6425_v11, %s8381_s8 }
 0x3b3   :  { %1072 = vrot.lane.b32.xlu1 %v6425_v11, %s8395_s0  ;;  %1060 = vrot.lane.b32.xlu0 %v6425_v11, %s8389_s7 }
 0x3b7   :  { %1100 = vrot.lane.b32.xlu1 %v6425_v11, %s8393_s24  ;;  %1088 = vrot.lane.b32.xlu0 %v6425_v11, %s8391_s30 }
 0x3bb   :  { %1128 = vrot.lane.b32.xlu1 %v6425_v11, %s8379_s21  ;;  %1116 = vrot.lane.b32.xlu0 %v6425_v11, %s8365_s26 }
 0x3bf   :  { %1157 = vrot.lane.b32.xlu1 %v6425_v11, %s8377_s29  ;;  %1145 = vrot.lane.b32.xlu0 %v6425_v11, %s8367_s1 }
 0x3c3   :  { %1186 = vrot.lane.b32.xlu1 %v6425_v11, %s8375_s19  ;;  %1174 = vrot.lane.b32.xlu0 %v6425_v11, %s8369_s23 }
 0x3c7   :  { %1215 = vrot.lane.b32.xlu1 %v6425_v11, %s8373_s27  ;;  %1203 = vrot.lane.b32.xlu0 %v6425_v11, %s8371_s25 }
 0x3fd   :  { %v1014_v13 = vpop.permute.xlu1 %1013  ;;  %v1002_v14 = vpop.permute.xlu0 %1001 }
 0x3fe   :  { %v1025_v27 = vsel %vm282_vm15, %v1002_v14, %v1014_v13 }
 0x3ff   :  { %v1230_v33 = vmax.f32 %v6395_v61, %v1025_v27 }
 0x401   :  { %v1042_v15 = vpop.permute.xlu1 %1041  ;;  %v1030_v5 = vpop.permute.xlu0 %1029 }
 0x402   :  { %v1054_v28 = vsel %vm1053_vm6, %v1030_v5, %v1042_v15 }
 0x405   :  { %v1071_v16 = vpop.permute.xlu1 %1070  ;;  %v1059_v60 = vpop.permute.xlu0 %1058 }
 0x406   :  { %v1082_v26 = vsel %vm324_vm13, %v1059_v60, %v1071_v16 }
 0x407   :  { %v1234_v3 = vmax.f32 %v1054_v28, %v1082_v26 }
 0x409   :  { %v1099_v19 = vpop.permute.xlu1 %1098  ;;  %v1087_v20 = vpop.permute.xlu0 %1086  ;;  %v1246_v36 = vmax.f32 %v1230_v33, %v1234_v3 }
 0x40a   :  { %v1110_v31 = vsel %vm345_vm4, %v1087_v20, %v1099_v19 }
 0x40d   :  { %v1127_v21 = vpop.permute.xlu1 %1126  ;;  %v1115_v22 = vpop.permute.xlu0 %1114 }
 0x40e   :  { %v1139_v25 = vsel %vm1138_vm8, %v1115_v22, %v1127_v21 }
 0x40f   :  { %v1238_v34 = vmax.f32 %v1110_v31, %v1139_v25 }
 0x411   :  { %v1156_v23 = vpop.permute.xlu1 %1155  ;;  %v1144_v24 = vpop.permute.xlu0 %1143 }
 0x412   :  { %v1168_v32 = vsel %vm1167_vm10, %v1144_v24, %v1156_v23  ;;  %v5255_v23 = vpop.f32.mrf.mxu1 }
 0x415   :  { %v1185_v29 = vpop.permute.xlu1 %1184  ;;  %v1173_v30 = vpop.permute.xlu0 %1172 }
 0x416   :  { %v1197_v4 = vsel %vm1196_vm11, %v1173_v30, %v1185_v29 }
 0x417   :  { %v1242_v35 = vmax.f32 %v1168_v32, %v1197_v4 }
 0x419   :  { %v1250_v37 = vmax.f32 %v1238_v34, %v1242_v35  ;;  %v1214_v38 = vpop.permute.xlu1 %1213  ;;  %v1202_v39 = vpop.permute.xlu0 %1201 }
 0x41a   :  { %v1226_v42 = vsel %vm1225_vm12, %v1202_v39, %v1214_v38 }
 0x41b   :  { %v1254_v40 = vmax.f32 %v1246_v36, %v1250_v37 }
 0x41d   :  { %v1258_v43 = vmax.f32 %v1254_v40, %v1226_v42  ;;  %v1016_v44 = vpop.permute.xlu1 %1015  ;;  %v1004_v45 = vpop.permute.xlu0 %1003 }
 0x41e   :  { %v1026_v47 = vsel %vm282_vm15, %v1004_v45, %v1016_v44 }
 0x41f   :  { %v6478_v46 = vmul.f32 %v6474_v41, %v1258_v43  ;;  %v1231_v10 = vmax.f32 %v6425_v11, %v1026_v47  ;;  %v5256_v11 = vpop.f32.mrf.mxu1 }
 0x420   :  { %v6508_v24 = vadd.f32 %v5256_v11, %v5255_v23 }
 0x421   :  { %v1044_v48 = vpop.permute.xlu1 %1043  ;;  %1466 = vrot.lane.b32.xlu1 %v6478_v46, %s8395_s0  ;;  %1454 = vrot.lane.b32.xlu0 %v6478_v46, %s8389_s7  ;;  %v1032_v0 = vpop.permute.xlu0 %1031 }
 0x422   :  { %v1055_v56 = vsel %vm1053_vm6, %v1032_v0, %v1044_v48  ;;  %v5258_v26 = vpop.f32.mrf.mxu1 }
 0x424   :  { %v5259_v27 = vpop.f32.mrf.mxu1 }
 0x425   :  { %v1073_v7 = vpop.permute.xlu1 %1072  ;;  %1382 = vrot.lane.b32.xlu1 %v6478_v46, %s8405_s28  ;;  %1370 = vrot.lane.b32.xlu0 %v6478_v46, %s8406_s22  ;;  %v1061_v1 = vpop.permute.xlu0 %1060  ;;  %v6542_v28 = vadd.f32 %v5259_v27, %v5258_v26 }
 0x426   :  { %v1083_v18 = vsel %vm324_vm13, %v1061_v1, %v1073_v7 }
 0x427   :  { %v1235_v58 = vmax.f32 %v1055_v56, %v1083_v18 }
 0x429   :  { %v1101_v12 = vpop.permute.xlu1 %1100  ;;  %v1089_v52 = vpop.permute.xlu0 %1088  ;;  %v1247_v15 = vmax.f32 %v1231_v10, %v1235_v58 }
 0x42a   :  { %v1111_v63 = vsel %vm345_vm4, %v1089_v52, %v1101_v12 }
 0x42d   :  { %v1129_v53 = vpop.permute.xlu1 %1128  ;;  %v1117_v54 = vpop.permute.xlu0 %1116 }
 0x42e   :  { %v1140_v57 = vsel %vm1138_vm8, %v1117_v54, %v1129_v53 }
 0x42f   :  { %v1239_v13 = vmax.f32 %v1111_v63, %v1140_v57 }
 0x431   :  { %v1158_v55 = vpop.permute.xlu1 %1157  ;;  %v1146_v17 = vpop.permute.xlu0 %1145 }
 0x432   :  { %v1169_v2 = vsel %vm1167_vm10, %v1146_v17, %v1158_v55 }
 0x435   :  { %v1187_v59 = vpop.permute.xlu1 %1186  ;;  %v1175_v61 = vpop.permute.xlu0 %1174 }
 0x436   :  { %v1198_v9 = vsel %vm1196_vm11, %v1175_v61, %v1187_v59 }
 0x437   :  { %v1243_v14 = vmax.f32 %v1169_v2, %v1198_v9 }
 0x439   :  { %v1251_v5 = vmax.f32 %v1239_v13, %v1243_v14  ;;  %v1216_v16 = vpop.permute.xlu1 %1215  ;;  %v1204_v60 = vpop.permute.xlu0 %1203 }
 0x43a   :  { %v1227_v20 = vsel %vm1225_vm12, %v1204_v60, %v1216_v16 }
 0x43b   :  { %v1255_v19 = vmax.f32 %v1247_v15, %v1251_v5 }
 0x43d   :  { %v1259_v21 = vmax.f32 %v1255_v19, %v1227_v20 }
 0x43f   :  { %v6498_v22 = vmul.f32 %v6474_v41, %v1259_v21 }
 0x441   :  { %1468 = vrot.lane.b32.xlu1 %v6498_v22, %s8395_s0  ;;  %1456 = vrot.lane.b32.xlu0 %v6498_v22, %s8389_s7 }
 0x445   :  { %1384 = vrot.lane.b32.xlu1 %v6498_v22, %s8405_s28  ;;  %1372 = vrot.lane.b32.xlu0 %v6498_v22, %s8406_s22 }
 0x449   :  { %1017 = vrot.lane.b32.xlu1 %v6508_v24, %s8387_s6  ;;  %1005 = vrot.lane.b32.xlu0 %v6508_v24, %s8385_s20 }
 0x44d   :  { %1045 = vrot.lane.b32.xlu1 %v6508_v24, %s8383_s3  ;;  %1033 = vrot.lane.b32.xlu0 %v6508_v24, %s8381_s8 }
 0x451   :  { %1074 = vrot.lane.b32.xlu1 %v6508_v24, %s8395_s0  ;;  %1062 = vrot.lane.b32.xlu0 %v6508_v24, %s8389_s7 }
 0x455   :  { %1102 = vrot.lane.b32.xlu1 %v6508_v24, %s8393_s24  ;;  %1090 = vrot.lane.b32.xlu0 %v6508_v24, %s8391_s30 }
 0x459   :  { %1130 = vrot.lane.b32.xlu1 %v6508_v24, %s8379_s21  ;;  %1118 = vrot.lane.b32.xlu0 %v6508_v24, %s8365_s26 }
 0x45d   :  { %1159 = vrot.lane.b32.xlu1 %v6508_v24, %s8377_s29  ;;  %1147 = vrot.lane.b32.xlu0 %v6508_v24, %s8367_s1 }
 0x461   :  { %1188 = vrot.lane.b32.xlu1 %v6508_v24, %s8375_s19  ;;  %1176 = vrot.lane.b32.xlu0 %v6508_v24, %s8369_s23 }
 0x465   :  { %1217 = vrot.lane.b32.xlu1 %v6508_v24, %s8373_s27  ;;  %1205 = vrot.lane.b32.xlu0 %v6508_v24, %s8371_s25 }
 0x469   :  { %1007 = vrot.lane.b32.xlu1 %v6542_v28, %s8385_s20  ;;  %1035 = vrot.lane.b32.xlu0 %v6542_v28, %s8381_s8  ;;  %s8417_s8 = smov 127  }
 0x46d   :  { %1019 = vrot.lane.b32.xlu1 %v6542_v28, %s8387_s6  ;;  %1064 = vrot.lane.b32.xlu0 %v6542_v28, %s8389_s7 }
 0x471   :  { %1047 = vrot.lane.b32.xlu1 %v6542_v28, %s8383_s3  ;;  %1092 = vrot.lane.b32.xlu0 %v6542_v28, %s8391_s30  ;;  %s8416_s3 = smov 63  }
 0x475   :  { %1076 = vrot.lane.b32.xlu1 %v6542_v28, %s8395_s0  ;;  %1120 = vrot.lane.b32.xlu0 %v6542_v28, %s8365_s26  ;;  %s8408_s26 = smov 57  }
 0x479   :  { %1104 = vrot.lane.b32.xlu1 %v6542_v28, %s8393_s24  ;;  %1149 = vrot.lane.b32.xlu0 %v6542_v28, %s8367_s1  ;;  %s8409_s1 = smov 71  }
 0x47d   :  { %1132 = vrot.lane.b32.xlu1 %v6542_v28, %s8379_s21  ;;  %1178 = vrot.lane.b32.xlu0 %v6542_v28, %s8369_s23  ;;  %s8410_s23 = smov 7   ;;  %s8426_s21 = smov 112  }
 0x481   :  { %1161 = vrot.lane.b32.xlu1 %v6542_v28, %s8377_s29  ;;  %1428 = vrot.lane.b32.xlu0 %v6498_v22, %s8407_s18  ;;  %s8414_s29 = smov 73  }
 0x485   :  { %1190 = vrot.lane.b32.xlu1 %v6542_v28, %s8375_s19  ;;  %1207 = vrot.lane.b32.xlu0 %v6542_v28, %s8371_s25  ;;  %s8411_s25 = smov 72   ;;  %s8413_s19 = smov 9  }
 0x489   :  { %1440 = vrot.lane.b32.xlu1 %v6498_v22, %s8408_s26  ;;  %1344 = vrot.lane.b32.xlu0 %v6498_v22, %s8409_s1 }
 0x48d   :  { %1219 = vrot.lane.b32.xlu1 %v6542_v28, %s8373_s27  ;;  %1426 = vrot.lane.b32.xlu0 %v6478_v46, %s8407_s18  ;;  %s8412_s27 = smov 8  }
 0x491   :  { %1356 = vrot.lane.b32.xlu1 %v6498_v22, %s8410_s23  ;;  %1342 = vrot.lane.b32.xlu0 %v6478_v46, %s8409_s1 }
 0x493   :  { %v6606_v25 = vpop.permute.xlu1 %1466  ;;  %v6608_v3 = vpop.permute.xlu0 %1454 }
 0x495   :  { %1438 = vrot.lane.b32.xlu1 %v6478_v46, %s8408_s26  ;;  %1400 = vrot.lane.b32.xlu0 %v6498_v22, %s8385_s20 }
 0x497   :  { %v6612_v29 = vpop.permute.xlu1 %1382  ;;  %v6614_v30 = vpop.permute.xlu0 %1370 }
 0x499   :  { %1354 = vrot.lane.b32.xlu1 %v6478_v46, %s8410_s23  ;;  %1316 = vrot.lane.b32.xlu0 %v6498_v22, %s8411_s25 }
 0x49d   :  { %1412 = vrot.lane.b32.xlu1 %v6498_v22, %s8387_s6  ;;  %1398 = vrot.lane.b32.xlu0 %v6478_v46, %s8385_s20 }
 0x4a1   :  { %1328 = vrot.lane.b32.xlu1 %v6498_v22, %s8412_s27  ;;  %1314 = vrot.lane.b32.xlu0 %v6478_v46, %s8411_s25 }
 0x4a5   :  { %1410 = vrot.lane.b32.xlu1 %v6478_v46, %s8387_s6 }
 0x4a9   :  { %1326 = vrot.lane.b32.xlu1 %v6478_v46, %s8412_s27 }
 0x4b3   :  { %v6616_v31 = vpop.permute.xlu1 %1468  ;;  %v6618_v32 = vpop.permute.xlu0 %1456 }
 0x4b7   :  { %v6620_v4 = vpop.permute.xlu1 %1384  ;;  %v6622_v33 = vpop.permute.xlu0 %1372 }
 0x4bb   :  { %v1018_v34 = vpop.permute.xlu1 %1017  ;;  %v1006_v35 = vpop.permute.xlu0 %1005 }
 0x4bc   :  { %v1027_v7 = vsel %vm282_vm15, %v1006_v35, %v1018_v34 }
 0x4bd   :  { %v1232_v47 = vmax.f32 %v6508_v24, %v1027_v7 }
 0x4bf   :  { %v1046_v36 = vpop.permute.xlu1 %1045  ;;  %v1034_v37 = vpop.permute.xlu0 %1033 }
 0x4c0   :  { %v1056_v1 = vsel %vm1053_vm6, %v1034_v37, %v1046_v36 }
 0x4c3   :  { %v1075_v38 = vpop.permute.xlu1 %1074  ;;  %v1063_v39 = vpop.permute.xlu0 %1062 }
 0x4c4   :  { %v1084_v0 = vsel %vm324_vm13, %v1063_v39, %v1075_v38 }
 0x4c5   :  { %v1236_v52 = vmax.f32 %v1056_v1, %v1084_v0 }
 0x4c7   :  { %v1103_v40 = vpop.permute.xlu1 %1102  ;;  %v1091_v42 = vpop.permute.xlu0 %1090  ;;  %v1248_v58 = vmax.f32 %v1232_v47, %v1236_v52 }
 0x4c8   :  { %v1112_v55 = vsel %vm345_vm4, %v1091_v42, %v1103_v40 }
 0x4cb   :  { %v1131_v43 = vpop.permute.xlu1 %1130  ;;  %v1119_v44 = vpop.permute.xlu0 %1118 }
 0x4cc   :  { %v1141_v12 = vsel %vm1138_vm8, %v1119_v44, %v1131_v43 }
 0x4cd   :  { %v1240_v56 = vmax.f32 %v1112_v55, %v1141_v12 }
 0x4cf   :  { %v1160_v45 = vpop.permute.xlu1 %1159  ;;  %v1148_v48 = vpop.permute.xlu0 %1147 }
 0x4d0   :  { %v1170_v17 = vsel %vm1167_vm10, %v1148_v48, %v1160_v45 }
 0x4d3   :  { %v1189_v53 = vpop.permute.xlu1 %1188  ;;  %v1177_v54 = vpop.permute.xlu0 %1176 }
 0x4d4   :  { %v1199_v18 = vsel %vm1196_vm11, %v1177_v54, %v1189_v53 }
 0x4d5   :  { %v1244_v57 = vmax.f32 %v1170_v17, %v1199_v18 }
 0x4d7   :  { %v1252_v59 = vmax.f32 %v1240_v56, %v1244_v57  ;;  %v1218_v61 = vpop.permute.xlu1 %1217  ;;  %v1206_v63 = vpop.permute.xlu0 %1205  ;;  %v1272_v57 = vld [vmem:[%s8334_s9 + $0x10] sm:$0xff] }
 0x4d8   :  { %v1228_v9 = vsel %vm1225_vm12, %v1206_v63, %v1218_v61  ;;  %5485 = vmatprep.mubr.msk.f32.mxu0 %vm1534_vm5, %v1272_v57  ;;  %v1395_v57 = vsel %vm255_vm7, %v6622_v33, %v6620_v4 }
 0x4d9   :  { %v1256_v2 = vmax.f32 %v1248_v58, %v1252_v59 }
 0x4db   :  { %v1260_v10 = vmax.f32 %v1256_v2, %v1228_v9  ;;  %v1008_v13 = vpop.permute.xlu1 %1007  ;;  %v1036_v14 = vpop.permute.xlu0 %1035  ;;  %v6754_v2 = vld [vmem:[%s8335_s10 + $0x18] sm:$0xff]  ;;  %v6759_v9 = vld [vmem:[%s8335_s10 + $0x10] sm:$0xff] }
 0x4dd   :  { %v6634_v15 = vmul.f32 %v6474_v41, %v1260_v10  ;;  %v6766_v10 = vld [vmem:[%s8335_s10] sm:$0xff] }
 0x4df   :  { %v1020_v5 = vpop.permute.xlu1 %1019  ;;  %1470 = vrot.lane.b32.xlu1 %v6634_v15, %s8395_s0  ;;  %1458 = vrot.lane.b32.xlu0 %v6634_v15, %s8389_s7  ;;  %v1065_v16 = vpop.permute.xlu0 %1064 }
 0x4e0   :  { %v1028_v36 = vsel %vm282_vm15, %v1008_v13, %v1020_v5  ;;  %v6771_v13 = vld [vmem:[%s8335_s10 + $0x8] sm:$0xff] }
 0x4e1   :  { %v1233_v0 = vmax.f32 %v6542_v28, %v1028_v36  ;;  %v1271_v28 = vld [vmem:[%s8334_s9 + $0x8] sm:$0xff] }
 0x4e2   :  { %1611 = vmatprep.mubr.f32.mxu1 %v1271_v28  ;;  %v1479_v28 = vsel %vm324_vm13, %v6618_v32, %v6616_v31 }
 0x4e3   :  { %v1048_v60 = vpop.permute.xlu1 %1047  ;;  %1386 = vrot.lane.b32.xlu1 %v6634_v15, %s8405_s28  ;;  %1374 = vrot.lane.b32.xlu0 %v6634_v15, %s8406_s22  ;;  %v1093_v19 = vpop.permute.xlu0 %1092 }
 0x4e4   :  { %v1057_v38 = vsel %vm1053_vm6, %v1036_v14, %v1048_v60 }
 0x4e7   :  { %v1077_v20 = vpop.permute.xlu1 %1076  ;;  %1442 = vrot.lane.b32.xlu1 %v6634_v15, %s8408_s26  ;;  %1430 = vrot.lane.b32.xlu0 %v6634_v15, %s8407_s18  ;;  %v1121_v21 = vpop.permute.xlu0 %1120 }
 0x4e8   :  { %v1085_v34 = vsel %vm324_vm13, %v1065_v16, %v1077_v20 }
 0x4e9   :  { %v1237_v43 = vmax.f32 %v1057_v38, %v1085_v34 }
 0x4eb   :  { %v1105_v23 = vpop.permute.xlu1 %1104  ;;  %1358 = vrot.lane.b32.xlu1 %v6634_v15, %s8410_s23  ;;  %1346 = vrot.lane.b32.xlu0 %v6634_v15, %s8409_s1  ;;  %v1150_v11 = vpop.permute.xlu0 %1149  ;;  %v1249_v12 = vmax.f32 %v1233_v0, %v1237_v43 }
 0x4ec   :  { %v1113_v39 = vsel %vm345_vm4, %v1093_v19, %v1105_v23 }
 0x4ef   :  { %v1133_v24 = vpop.permute.xlu1 %1132  ;;  %1414 = vrot.lane.b32.xlu1 %v6634_v15, %s8387_s6  ;;  %1402 = vrot.lane.b32.xlu0 %v6634_v15, %s8385_s20  ;;  %v1179_v26 = vpop.permute.xlu0 %1178 }
 0x4f0   :  { %v1142_v35 = vsel %vm1138_vm8, %v1121_v21, %v1133_v24 }
 0x4f1   :  { %v1241_v44 = vmax.f32 %v1113_v39, %v1142_v35 }
 0x4f3   :  { %v1162_v27 = vpop.permute.xlu1 %1161  ;;  %1330 = vrot.lane.b32.xlu1 %v6634_v15, %s8412_s27  ;;  %1318 = vrot.lane.b32.xlu0 %v6634_v15, %s8411_s25  ;;  %v6671_v45 = vpop.permute.xlu0 %1428 }
 0x4f4   :  { %v1171_v40 = vsel %vm1167_vm10, %v1150_v11, %v1162_v27 }
 0x4f7   :  { %v1191_v37 = vpop.permute.xlu1 %1190  ;;  %1302 = vrot.lane.b32.xlu1 %v6634_v15, %s8413_s19  ;;  %1290 = vrot.lane.b32.xlu0 %v6634_v15, %s8414_s29  ;;  %v1208_v52 = vpop.permute.xlu0 %1207 }
 0x4f8   :  { %v1200_v42 = vsel %vm1196_vm11, %v1179_v26, %v1191_v37 }
 0x4f9   :  { %v1245_v48 = vmax.f32 %v1171_v40, %v1200_v42 }
 0x4fb   :  { %v1253_v7 = vmax.f32 %v1241_v44, %v1245_v48  ;;  %v6674_v1 = vpop.permute.xlu1 %1440  ;;  %v6719_v47 = vpop.permute.xlu0 %1344 }
 0x4fd   :  { %v1257_v54 = vmax.f32 %v1249_v12, %v1253_v7 }
 0x4ff   :  { %v1220_v53 = vpop.permute.xlu1 %1219  ;;  %v6735_v58 = vpop.permute.xlu0 %1426 }
 0x500   :  { %v1229_v55 = vsel %vm1225_vm12, %v1208_v52, %v1220_v53 }
 0x501   :  { %v1261_v17 = vmax.f32 %v1257_v54, %v1229_v55 }
 0x503   :  { %v6678_v18 = vmul.f32 %v6474_v41, %v1261_v17  ;;  %v6721_v56 = vpop.permute.xlu1 %1356  ;;  %v6743_v61 = vpop.permute.xlu0 %1342 }
 0x505   :  { %1472 = vrot.lane.b32.xlu1 %v6678_v18, %s8395_s0  ;;  %1460 = vrot.lane.b32.xlu0 %v6678_v18, %s8389_s7  ;;  %s8418_s7 = smov 55  }
 0x507   :  { %v6737_v59 = vpop.permute.xlu1 %1438  ;;  %v6773_v14 = vpop.permute.xlu0 %1400 }
 0x509   :  { %1388 = vrot.lane.b32.xlu1 %v6678_v18, %s8405_s28  ;;  %1376 = vrot.lane.b32.xlu0 %v6678_v18, %s8406_s22 }
 0x50b   :  { %v6745_v63 = vpop.permute.xlu1 %1354  ;;  %v6779_v16 = vpop.permute.xlu0 %1316 }
 0x50d   :  { %1444 = vrot.lane.b32.xlu1 %v6678_v18, %s8408_s26  ;;  %1432 = vrot.lane.b32.xlu0 %v6678_v18, %s8407_s18 }
 0x50f   :  { %v6775_v5 = vpop.permute.xlu1 %1412  ;;  %v6785_v19 = vpop.permute.xlu0 %1398 }
 0x511   :  { %1360 = vrot.lane.b32.xlu1 %v6678_v18, %s8410_s23  ;;  %1348 = vrot.lane.b32.xlu0 %v6678_v18, %s8409_s1 }
 0x513   :  { %v6781_v60 = vpop.permute.xlu1 %1328  ;;  %v6789_v21 = vpop.permute.xlu0 %1314 }
 0x515   :  { %1416 = vrot.lane.b32.xlu1 %v6678_v18, %s8387_s6  ;;  %1404 = vrot.lane.b32.xlu0 %v6678_v18, %s8385_s20  ;;  %s8419_s6 = smov 119   ;;  %s8427_s20 = smov 47  }
 0x517   :  { %v6787_v20 = vpop.permute.xlu1 %1410 }
 0x519   :  { %1332 = vrot.lane.b32.xlu1 %v6678_v18, %s8412_s27  ;;  %1320 = vrot.lane.b32.xlu0 %v6678_v18, %s8411_s25 }
 0x51b   :  { %v6791_v23 = vpop.permute.xlu1 %1326 }
 0x51d   :  { %1300 = vrot.lane.b32.xlu1 %v6498_v22, %s8413_s19  ;;  %1288 = vrot.lane.b32.xlu0 %v6498_v22, %s8414_s29 }
 0x521   :  { %1304 = vrot.lane.b32.xlu1 %v6678_v18, %s8413_s19  ;;  %1292 = vrot.lane.b32.xlu0 %v6678_v18, %s8414_s29 }
 0x525   :  { %1298 = vrot.lane.b32.xlu1 %v6478_v46, %s8413_s19  ;;  %1286 = vrot.lane.b32.xlu0 %v6478_v46, %s8414_s29 }
 0x529   :  { %1498 = vrot.lane.b32.xlu1 %v6634_v15, %s8393_s24  ;;  %1486 = vrot.lane.b32.xlu0 %v6634_v15, %s8391_s30 }
 0x52d   :  { %1500 = vrot.lane.b32.xlu1 %v6678_v18, %s8393_s24  ;;  %1488 = vrot.lane.b32.xlu0 %v6678_v18, %s8391_s30 }
 0x531   :  { %1496 = vrot.lane.b32.xlu1 %v6498_v22, %s8393_s24  ;;  %1484 = vrot.lane.b32.xlu0 %v6498_v22, %s8391_s30 }
 0x535   :  { %1494 = vrot.lane.b32.xlu1 %v6478_v46, %s8393_s24  ;;  %1482 = vrot.lane.b32.xlu0 %v6478_v46, %s8391_s30  ;;  %s8415_s30 = smov 120   ;;  %s8422_s24 = smov 126  }
 0x539   :  { %1531 = vperm.xlu0 %5668, %v6754_v2   ;;  %1526 = vperm.xlu1 %5669, %v6759_v9  }
 0x53d   :  { %1516 = vperm.xlu0 %5668, %v6766_v10   ;;  %1521 = vperm.xlu1 %5669, %v6771_v13  }
 0x541   :  { %5670 = vset.pattern.permute.xlu1 %v5768_v50  ;;  %5671 = vset.pattern.permute.xlu0 %v5768_v50 }
 0x551   :  { %v1471_v11 = vpop.permute.xlu1 %1470  ;;  %v1459_v24 = vpop.permute.xlu0 %1458 }
 0x552   :  { %v1480_v53 = vsel %vm324_vm13, %v1459_v24, %v1471_v11  ;;  %v1478_v11 = vsel %vm324_vm13, %v6608_v3, %v6606_v25  ;;  %v1394_v24 = vsel %vm255_vm7, %v6614_v30, %v6612_v29  ;;  %v1451_v29 = vsel %vm303_vm14, %v6671_v45, %v6674_v1 }
 0x553   :  { %v1367_v30 = vsel %vm234_vm1, %v6719_v47, %v6721_v56 }
 0x555   :  { %v1387_v26 = vpop.permute.xlu1 %1386  ;;  %v1375_v27 = vpop.permute.xlu0 %1374 }
 0x556   :  { %v1396_v54 = vsel %vm255_vm7, %v1375_v27, %v1387_v26 }
 0x559   :  { %v1443_v34 = vpop.permute.xlu1 %1442  ;;  %v1431_v35 = vpop.permute.xlu0 %1430 }
 0x55a   :  { %v1452_v4 = vsel %vm303_vm14, %v1431_v35, %v1443_v34  ;;  %v1450_v34 = vsel %vm303_vm14, %v6735_v58, %v6737_v59  ;;  %v1366_v35 = vsel %vm234_vm1, %v6743_v61, %v6745_v63  ;;  %v1423_v61 = vsel %vm282_vm15, %v6773_v14, %v6775_v5 }
 0x55b   :  { %v1339_v63 = vsel %vm213_vm2, %v6779_v16, %v6781_v60 }
 0x55d   :  { %v1359_v36 = vpop.permute.xlu1 %1358  ;;  %v1347_v37 = vpop.permute.xlu0 %1346 }
 0x55e   :  { %v1368_v33 = vsel %vm234_vm1, %v1347_v37, %v1359_v36 }
 0x561   :  { %v1415_v38 = vpop.permute.xlu1 %1414  ;;  %v1403_v39 = vpop.permute.xlu0 %1402 }
 0x562   :  { %v1424_v47 = vsel %vm282_vm15, %v1403_v39, %v1415_v38  ;;  %v1422_v38 = vsel %vm282_vm15, %v6785_v19, %v6787_v20  ;;  %v1338_v39 = vsel %vm213_vm2, %v6789_v21, %v6791_v23  ;;  %v1270_v20 = vld [vmem:[%s8334_s9] sm:$0xff] }
 0x565   :  { %v1331_v40 = vpop.permute.xlu1 %1330  ;;  %v1319_v50 = vpop.permute.xlu0 %1318 }
 0x566   :  { %v1340_v56 = vsel %vm213_vm2, %v1319_v50, %v1331_v40 }
 0x569   :  { %v6793_v42 = vpop.permute.xlu1 %1302  ;;  %v6795_v43 = vpop.permute.xlu0 %1290 }
 0x56a   :  { %v1312_v5 = vsel %vm192_vm3, %v6795_v43, %v6793_v42  ;;  %v1277_v42 = vld [vmem:[%s8334_s9 + $0x38] sm:$0xff] }
 0x577   :  { %v1473_v44 = vpop.permute.xlu1 %1472  ;;  %v1461_v48 = vpop.permute.xlu0 %1460 }
 0x578   :  { %v1481_v0 = vsel %vm324_vm13, %v1461_v48, %v1473_v44  ;;  %v1276_v48 = vld [vmem:[%s8334_s9 + $0x30] sm:$0xff] }
 0x579   :  { %5261 = vmatprep.subr.mxu1 %v1481_v0 }
 0x57b   :  { %v1389_v7 = vpop.permute.xlu1 %1388  ;;  %v1377_v12 = vpop.permute.xlu0 %1376 }
 0x57c   :  { %v1397_v52 = vsel %vm255_vm7, %v1377_v12, %v1389_v7  ;;  %v1280_v7 = vld [vmem:[%s8334_s9 + $0x50] sm:$0xff] }
 0x57d   :  { %5262 = vmatpush3.msra.mxu1 %v1397_v52 }
 0x57e   :  { %5263 = vmatprep.subr.mxu1 %v1480_v53 }
 0x57f   :  { %v1445_v55 = vpop.permute.xlu1 %1444  ;;  %5264 = vmatpush3.msra.mxu1 %v1396_v54  ;;  %v1433_v17 = vpop.permute.xlu0 %1432  ;;  %v1279_v54 = vld [vmem:[%s8334_s9 + $0x48] sm:$0xff] }
 0x580   :  { %5265 = vmatprep.subr.mxu1 %v1479_v28  ;;  %v1453_v31 = vsel %vm303_vm14, %v1433_v17, %v1445_v55 }
 0x581   :  { %5266 = vmatpush3.msra.mxu1 %v1395_v57  ;;  %v1275_v57 = vld [vmem:[%s8334_s9 + $0x28] sm:$0xff] }
 0x582   :  { %5267 = vmatprep.subr.mxu1 %v1478_v11  ;;  %v1278_v11 = vld [vmem:[%s8334_s9 + $0x40] sm:$0xff] }
 0x583   :  { %v1361_v26 = vpop.permute.xlu1 %1360  ;;  %5268 = vmatpush3.msra.mxu1 %v1394_v24  ;;  %v1349_v27 = vpop.permute.xlu0 %1348  ;;  %v1281_v24 = vld [vmem:[%s8334_s9 + $0x58] sm:$0xff] }
 0x584   :  { %v1369_v32 = vsel %vm234_vm1, %v1349_v27, %v1361_v26  ;;  %5269 = vmatprep.subr.mxu1 %v1453_v31 }
 0x585   :  { %5270 = vmatpush3.msra.mxu1 %v1369_v32 }
 0x586   :  { %5271 = vmatprep.subr.mxu1 %v1452_v4 }
 0x587   :  { %v1417_v25 = vpop.permute.xlu1 %1416  ;;  %5272 = vmatpush3.msra.mxu1 %v1368_v33  ;;  %v1405_v3 = vpop.permute.xlu0 %1404 }
 0x588   :  { %5273 = vmatprep.subr.mxu1 %v1451_v29  ;;  %v1425_v45 = vsel %vm282_vm15, %v1405_v3, %v1417_v25 }
 0x589   :  { %5274 = vmatpush3.msra.mxu1 %v1367_v30 }
 0x58a   :  { %5275 = vmatprep.subr.mxu1 %v1450_v34 }
 0x58b   :  { %v1333_v36 = vpop.permute.xlu1 %1332  ;;  %5276 = vmatpush3.msra.mxu1 %v1366_v35  ;;  %v1321_v37 = vpop.permute.xlu0 %1320 }
 0x58c   :  { %v1341_v1 = vsel %vm213_vm2, %v1321_v37, %v1333_v36  ;;  %5277 = vmatprep.subr.mxu1 %v1425_v45 }
 0x58d   :  { %5278 = vmatpush3.msra.mxu1 %v1341_v1 }
 0x58e   :  { %5279 = vmatprep.subr.mxu1 %v1424_v47 }
 0x58f   :  { %v1301_v58 = vpop.permute.xlu1 %1300  ;;  %5280 = vmatpush3.msra.mxu1 %v1340_v56  ;;  %v1289_v59 = vpop.permute.xlu0 %1288 }
 0x590   :  { %5281 = vmatprep.subr.mxu1 %v1423_v61  ;;  %v1311_v19 = vsel %vm192_vm3, %v1289_v59, %v1301_v58 }
 0x591   :  { %5282 = vmatpush3.msra.mxu1 %v1339_v63 }
 0x592   :  { %5283 = vmatprep.subr.mxu1 %v1422_v38 }
 0x593   :  { %v1305_v40 = vpop.permute.xlu1 %1304  ;;  %5284 = vmatpush3.msra.mxu1 %v1338_v39  ;;  %v1293_v50 = vpop.permute.xlu0 %1292 }
 0x594   :  { %v1313_v14 = vsel %vm192_vm3, %v1293_v50, %v1305_v40  ;;  %5285 = vmatprep.subr.mxu1 %v6678_v18 }
 0x595   :  { %5286 = vmatpush3.msra.mxu1 %v1313_v14 }
 0x596   :  { %5287 = vmatprep.subr.mxu1 %v6634_v15  ;;  %v1274_v15 = vld [vmem:[%s8334_s9 + $0x20] sm:$0xff] }
 0x597   :  { %v1299_v16 = vpop.permute.xlu1 %1298  ;;  %5288 = vmatpush3.msra.mxu1 %v1312_v5  ;;  %v1287_v60 = vpop.permute.xlu0 %1286 }
 0x598   :  { %5289 = vmatprep.subr.mxu1 %v6498_v22  ;;  %v1310_v18 = vsel %vm192_vm3, %v1287_v60, %v1299_v16  ;;  %v1273_v22 = vld [vmem:[%s8334_s9 + $0x18] sm:$0xff] }
 0x599   :  { %5290 = vmatpush3.msra.mxu1 %v1311_v19 }
 0x59a   :  { %5291 = vmatprep.subr.mxu1 %v6478_v46 }
 0x59b   :  { %v1499_v21 = vpop.permute.xlu1 %1498  ;;  %5292 = vmatpush3.msra.mxu1 %v1310_v18  ;;  %v1487_v23 = vpop.permute.xlu0 %1486 }
 0x59c   :  { %1612 = vmatmul.mubr.f32.vlgmr.msra.gmra.mxu1 %v1270_v20  ;;  %v1508_v0 = vsel %vm345_vm4, %v1487_v23, %v1499_v21 }
 0x59d   :  { %1616 = vmatprep.mubr.f32.mxu1 %v1274_v15 }
 0x59f   :  { %v1501_v43 = vpop.permute.xlu1 %1500  ;;  %v1489_v44 = vpop.permute.xlu0 %1488 }
 0x5a0   :  { %1617 = vmatmul.mubr.f32.gmra.mxu1 %v1273_v22  ;;  %v1509_v46 = vsel %vm345_vm4, %v1489_v44, %v1501_v43  ;;  %v5128_v22 = vld [vmem:[%s8334_s9 + $0x70] sm:$0xff] }
 0x5a1   :  { %5477 = vmatprep.subr.mxu0 %v1509_v46  ;;  %1621 = vmatprep.mubr.f32.mxu1 %v1277_v42 }
 0x5a2   :  { %5478 = vmatpush3.msra.mxu0 %v1509_v46 }
 0x5a3   :  { %v1497_v12 = vpop.permute.xlu1 %1496  ;;  %5479 = vmatprep.subr.mxu0 %v1508_v0  ;;  %v1485_v52 = vpop.permute.xlu0 %1484 }
 0x5a4   :  { %1622 = vmatmul.mubr.f32.gmra.mxu1 %v1276_v48  ;;  %5480 = vmatpush3.msra.mxu0 %v1508_v0  ;;  %v1507_v53 = vsel %vm345_vm4, %v1485_v52, %v1497_v12 }
 0x5a5   :  { %5481 = vmatprep.subr.mxu0 %v1507_v53  ;;  %1626 = vmatprep.mubr.f32.mxu1 %v1280_v7 }
 0x5a6   :  { %5482 = vmatpush3.msra.mxu0 %v1507_v53 }
 0x5a7   :  { %v1495_v55 = vpop.permute.xlu1 %1494  ;;  %v1483_v17 = vpop.permute.xlu0 %1482 }
 0x5a8   :  { %1627 = vmatmul.mubr.f32.gmra.mxu1 %v1279_v54  ;;  %v1506_v28 = vsel %vm345_vm4, %v1483_v17, %v1495_v55 }
 0x5a9   :  { %5483 = vmatprep.subr.mxu0 %v1506_v28  ;;  %5499 = vmatprep.mubr.msk.f32.mxu1 %vm1534_vm5, %v5128_v22 }
 0x5aa   :  { %5484 = vmatpush3.msra.mxu0 %v1506_v28 }
 0x5ab   :  { %5486 = vmatmul.mubr.msk.f32.vlgmr.msra.gmra.mxu0 %vm1534_vm5, %v1275_v57 }
 0x5ac   :  { %5488 = vmatprep.mubr.msk.f32.mxu0 %vm1534_vm5, %v1278_v11 }
 0x5af   :  { %5489 = vmatmul.mubr.msk.f32.gmra.mxu0 %vm1534_vm5, %v1281_v24 }
 0x5b4   :  { %v6892_v27 = vpop.permute.xlu0 %1531  ;;  %v1527_v36 = vpop.permute.xlu1 %1526 }
 0x5b8   :  { %v1517_v4 = vpop.permute.xlu0 %1516  ;;  %v1522_v1 = vpop.permute.xlu1 %1521 }
 0x65c   :  { %v5293_v26 = vpop.f32.mrf.mxu1 }
 0x65e   :  { %v5294_v31 = vpop.f32.mrf.mxu1 }
 0x65f   :  { %v5295_v32 = vadd.f32 %v5294_v31, %v5293_v26 }
 0x660   :  { %v5296_v35 = vpop.f32.mrf.mxu1 }
 0x661   :  { %v1614_v25 = vadd.f32 %v5295_v32, %v1517_v4 }
 0x662   :  { %v5297_v37 = vpop.f32.mrf.mxu1 }
 0x663   :  { %v5298_v45 = vadd.f32 %v5297_v37, %v5296_v35 }
 0x664   :  { %v5299_v61 = vpop.f32.mrf.mxu1 }
 0x665   :  { %v1619_v47 = vadd.f32 %v5298_v45, %v1522_v1 }
 0x666   :  { %v5300_v63 = vpop.f32.mrf.mxu1 }
 0x667   :  { %v5301_v38 = vadd.f32 %v5300_v63, %v5299_v61 }
 0x668   :  { %v5302_v60 = vpop.f32.mrf.mxu1 }
 0x669   :  { %v1624_v40 = vadd.f32 %v5301_v38, %v1527_v36 }
 0x66a   :  { %v5303_v19 = vpop.f32.mrf.mxu1 }
 0x66b   :  { %v5487_v33 = vpop.f32.mrf.mxu0  ;;  %v5304_v20 = vadd.f32 %v5303_v19, %v5302_v60 }
 0x66c   :  { %v1704_v56 = vadd.f32 %v5487_v33, %v1619_v47 }
 0x66d   :  { %v1698_v3 = vpop.f32.mrf.mxu0  ;;  %v1629_v18 = vadd.f32 %v5304_v20, %v6892_v27 }
 0x66e   :  { %v1699_v29 = vadd.f32 %v1698_v3, %v1614_v25  ;;  %v1718_v58 = vmax.f32 %v1704_v56, 0.0 }
 0x66f   :  { %v5490_v39 = vpop.f32.mrf.mxu0 }
 0x670   :  { %v1717_v30 = vmax.f32 %v1699_v29, 0.0  ;;  %v6922_v59 = vmul.f32 %v6474_v41, %v1718_v58  ;;  %v1714_v15 = vadd.f32 %v5490_v39, %v1629_v18 }
 0x671   :  { %v1708_v50 = vpop.f32.mrf.mxu0 }
 0x672   :  { %v6895_v34 = vmul.f32 %v6474_v41, %v1717_v30  ;;  %v1709_v14 = vadd.f32 %v1708_v50, %v1624_v40  ;;  %v1720_v21 = vmax.f32 %v1714_v15, 0.0 }
 0x674   :  { %1922 = vrot.lane.b32.xlu0 %v6895_v34, %s8395_s0  ;;  %1910 = vrot.lane.b32.xlu1 %v6895_v34, %s8415_s30  ;;  %v1719_v5 = vmax.f32 %v1709_v14, 0.0  ;;  %v6981_v23 = vmul.f32 %v6474_v41, %v1720_v21 }
 0x676   :  { %v6949_v16 = vmul.f32 %v6474_v41, %v1719_v5  ;;  %v5127_v41 = vld [vmem:[%s8334_s9 + $0x68] sm:$0xff] }
 0x677   :  { %2058 = vmatprep.mubr.f32.mxu0 %v5127_v41 }
 0x678   :  { %1838 = vrot.lane.b32.xlu0 %v6895_v34, %s8405_s28  ;;  %1826 = vrot.lane.b32.xlu1 %v6895_v34, %s8406_s22 }
 0x67c   :  { %1894 = vrot.lane.b32.xlu0 %v6895_v34, %s8408_s26  ;;  %1882 = vrot.lane.b32.xlu1 %v6895_v34, %s8407_s18 }
 0x680   :  { %1810 = vrot.lane.b32.xlu0 %v6895_v34, %s8410_s23  ;;  %1798 = vrot.lane.b32.xlu1 %v6895_v34, %s8409_s1 }
 0x684   :  { %1866 = vrot.lane.b32.xlu0 %v6895_v34, %s8416_s3  ;;  %1854 = vrot.lane.b32.xlu1 %v6895_v34, %s8417_s8 }
 0x688   :  { %1782 = vrot.lane.b32.xlu0 %v6895_v34, %s8412_s27  ;;  %1770 = vrot.lane.b32.xlu1 %v6895_v34, %s8411_s25 }
 0x68c   :  { %1924 = vrot.lane.b32.xlu0 %v6922_v59, %s8395_s0  ;;  %1912 = vrot.lane.b32.xlu1 %v6922_v59, %s8415_s30 }
 0x690   :  { %1840 = vrot.lane.b32.xlu0 %v6922_v59, %s8405_s28  ;;  %1828 = vrot.lane.b32.xlu1 %v6922_v59, %s8406_s22 }
 0x694   :  { %1896 = vrot.lane.b32.xlu0 %v6922_v59, %s8408_s26  ;;  %1884 = vrot.lane.b32.xlu1 %v6922_v59, %s8407_s18 }
 0x698   :  { %1812 = vrot.lane.b32.xlu0 %v6922_v59, %s8410_s23  ;;  %1800 = vrot.lane.b32.xlu1 %v6922_v59, %s8409_s1 }
 0x69c   :  { %1868 = vrot.lane.b32.xlu0 %v6922_v59, %s8416_s3  ;;  %1856 = vrot.lane.b32.xlu1 %v6922_v59, %s8417_s8 }
 0x6a0   :  { %1784 = vrot.lane.b32.xlu0 %v6922_v59, %s8412_s27  ;;  %1772 = vrot.lane.b32.xlu1 %v6922_v59, %s8411_s25 }
 0x6a4   :  { %1926 = vrot.lane.b32.xlu0 %v6949_v16, %s8395_s0  ;;  %1914 = vrot.lane.b32.xlu1 %v6949_v16, %s8415_s30 }
 0x6a8   :  { %1842 = vrot.lane.b32.xlu0 %v6949_v16, %s8405_s28  ;;  %1830 = vrot.lane.b32.xlu1 %v6949_v16, %s8406_s22 }
 0x6ac   :  { %1898 = vrot.lane.b32.xlu0 %v6949_v16, %s8408_s26  ;;  %1886 = vrot.lane.b32.xlu1 %v6949_v16, %s8407_s18 }
 0x6b0   :  { %1814 = vrot.lane.b32.xlu0 %v6949_v16, %s8410_s23  ;;  %1802 = vrot.lane.b32.xlu1 %v6949_v16, %s8409_s1 }
 0x6b4   :  { %1870 = vrot.lane.b32.xlu0 %v6949_v16, %s8416_s3  ;;  %1858 = vrot.lane.b32.xlu1 %v6949_v16, %s8417_s8 }
 0x6b8   :  { %1786 = vrot.lane.b32.xlu0 %v6949_v16, %s8412_s27  ;;  %1774 = vrot.lane.b32.xlu1 %v6949_v16, %s8411_s25 }
 0x6bc   :  { %1758 = vrot.lane.b32.xlu0 %v6949_v16, %s8413_s19  ;;  %1746 = vrot.lane.b32.xlu1 %v6949_v16, %s8414_s29 }
 0x6c0   :  { %1928 = vrot.lane.b32.xlu0 %v6981_v23, %s8395_s0  ;;  %1916 = vrot.lane.b32.xlu1 %v6981_v23, %s8415_s30  ;;  %s8420_s0 = smov 56  }
 0x6c4   :  { %1844 = vrot.lane.b32.xlu0 %v6981_v23, %s8405_s28  ;;  %1832 = vrot.lane.b32.xlu1 %v6981_v23, %s8406_s22 }
 0x6c8   :  { %1900 = vrot.lane.b32.xlu0 %v6981_v23, %s8408_s26  ;;  %1888 = vrot.lane.b32.xlu1 %v6981_v23, %s8407_s18 }
 0x6cc   :  { %1816 = vrot.lane.b32.xlu0 %v6981_v23, %s8410_s23  ;;  %1804 = vrot.lane.b32.xlu1 %v6981_v23, %s8409_s1 }
 0x6d0   :  { %1872 = vrot.lane.b32.xlu0 %v6981_v23, %s8416_s3  ;;  %1860 = vrot.lane.b32.xlu1 %v6981_v23, %s8417_s8 }
 0x6d4   :  { %1788 = vrot.lane.b32.xlu0 %v6981_v23, %s8412_s27  ;;  %1776 = vrot.lane.b32.xlu1 %v6981_v23, %s8411_s25 }
 0x6d8   :  { %1756 = vrot.lane.b32.xlu0 %v6922_v59, %s8413_s19  ;;  %1744 = vrot.lane.b32.xlu1 %v6922_v59, %s8414_s29 }
 0x6dc   :  { %1760 = vrot.lane.b32.xlu0 %v6981_v23, %s8413_s19  ;;  %1748 = vrot.lane.b32.xlu1 %v6981_v23, %s8414_s29 }
 0x6e0   :  { %1754 = vrot.lane.b32.xlu0 %v6895_v34, %s8413_s19  ;;  %1742 = vrot.lane.b32.xlu1 %v6895_v34, %s8414_s29 }
 0x6e4   :  { %1954 = vrot.lane.b32.xlu0 %v6949_v16, %s8418_s7  ;;  %1942 = vrot.lane.b32.xlu1 %v6949_v16, %s8419_s6 }
 0x6e6   :  { %v7029_v42 = vpop.permute.xlu0 %1922  ;;  %v7031_v43 = vpop.permute.xlu1 %1910 }
 0x6e7   :  { %v1934_v20 = vsel %vm324_vm13, %v7031_v43, %v7029_v42 }
 0x6e8   :  { %1956 = vrot.lane.b32.xlu0 %v6981_v23, %s8418_s7  ;;  %1944 = vrot.lane.b32.xlu1 %v6981_v23, %s8419_s6 }
 0x6ea   :  { %v7038_v44 = vpop.permute.xlu0 %1838  ;;  %v7040_v46 = vpop.permute.xlu1 %1826 }
 0x6eb   :  { %v1850_v18 = vsel %vm255_vm7, %v7040_v46, %v7038_v44 }
 0x6ec   :  { %1952 = vrot.lane.b32.xlu0 %v6922_v59, %s8418_s7  ;;  %1940 = vrot.lane.b32.xlu1 %v6922_v59, %s8419_s6 }
 0x6ee   :  { %v7046_v48 = vpop.permute.xlu0 %1894  ;;  %v7048_v0 = vpop.permute.xlu1 %1882 }
 0x6f0   :  { %1950 = vrot.lane.b32.xlu0 %v6895_v34, %s8418_s7  ;;  %1938 = vrot.lane.b32.xlu1 %v6895_v34, %s8419_s6 }
 0x6f2   :  { %v7054_v7 = vpop.permute.xlu0 %1810  ;;  %v7056_v12 = vpop.permute.xlu1 %1798 }
 0x6f4   :  { %1979 = vperm.xlu1 %5670, %v6754_v2   ;;  %1975 = vperm.xlu0 %5671, %v6759_v9  }
 0x6f6   :  { %v7060_v52 = vpop.permute.xlu0 %1866  ;;  %v7062_v53 = vpop.permute.xlu1 %1854 }
 0x6f8   :  { %1971 = vperm.xlu1 %5670, %v6771_v13   ;;  %5672 = vset.pattern.permute.xlu0 %v5741_v8 }
 0x6fa   :  { %v7066_v54 = vpop.permute.xlu0 %1782  ;;  %v7068_v55 = vpop.permute.xlu1 %1770 }
 0x6fc   :  { %1967 = vperm.xlu1 %5670, %v6766_v10  }
 0x6fe   :  { %v1925_v17 = vpop.permute.xlu0 %1924  ;;  %v1913_v28 = vpop.permute.xlu1 %1912 }
 0x6ff   :  { %v1935_v60 = vsel %vm324_vm13, %v1913_v28, %v1925_v17 }
 0x700   :  { %5673 = vset.pattern.permute.xlu1 %v5741_v8 }
 0x702   :  { %v1841_v2 = vpop.permute.xlu0 %1840  ;;  %v1829_v9 = vpop.permute.xlu1 %1828 }
 0x703   :  { %v1851_v19 = vsel %vm255_vm7, %v1829_v9, %v1841_v2  ;;  %v1906_v2 = vsel %vm303_vm14, %v7048_v0, %v7046_v48  ;;  %v1822_v9 = vsel %vm234_vm1, %v7056_v12, %v7054_v7 }
 0x706   :  { %v1897_v57 = vpop.permute.xlu0 %1896  ;;  %v1885_v11 = vpop.permute.xlu1 %1884 }
 0x707   :  { %v1907_v44 = vsel %vm303_vm14, %v1885_v11, %v1897_v57 }
 0x70a   :  { %v1813_v24 = vpop.permute.xlu0 %1812  ;;  %v1801_v26 = vpop.permute.xlu1 %1800 }
 0x70b   :  { %v1823_v46 = vsel %vm234_vm1, %v1801_v26, %v1813_v24  ;;  %v1878_v26 = vsel %vm282_vm15, %v7062_v53, %v7060_v52 }
 0x70e   :  { %v7072_v27 = vpop.permute.xlu0 %1868  ;;  %v7074_v13 = vpop.permute.xlu1 %1856 }
 0x70f   :  { %v1879_v7 = vsel %vm282_vm15, %v7074_v13, %v7072_v27 }
 0x712   :  { %v7076_v31 = vpop.permute.xlu0 %1784  ;;  %v7078_v32 = vpop.permute.xlu1 %1772 }
 0x713   :  { %v1795_v12 = vsel %vm213_vm2, %v7078_v32, %v7076_v31 }
 0x716   :  { %v1927_v4 = vpop.permute.xlu0 %1926  ;;  %v1915_v10 = vpop.permute.xlu1 %1914 }
 0x717   :  { %v1936_v40 = vsel %vm324_vm13, %v1915_v10, %v1927_v4 }
 0x71a   :  { %v1843_v33 = vpop.permute.xlu0 %1842  ;;  %v1831_v25 = vpop.permute.xlu1 %1830 }
 0x71b   :  { %v1852_v50 = vsel %vm255_vm7, %v1831_v25, %v1843_v33  ;;  %v1794_v25 = vsel %vm213_vm2, %v7068_v55, %v7066_v54  ;;  %v5126_v55 = vld [vmem:[%s8334_s9 + $0x60] sm:$0xff] }
 0x71e   :  { %v1899_v3 = vpop.permute.xlu0 %1898  ;;  %v1887_v8 = vpop.permute.xlu1 %1886 }
 0x71f   :  { %v1908_v17 = vsel %vm303_vm14, %v1887_v8, %v1899_v3 }
 0x722   :  { %v1815_v29 = vpop.permute.xlu0 %1814  ;;  %v1803_v30 = vpop.permute.xlu1 %1802 }
 0x723   :  { %v1824_v28 = vsel %vm234_vm1, %v1803_v30, %v1815_v29  ;;  %v5133_v29 = vld [vmem:[%s8334_s9 + $0x98] sm:$0xff] }
 0x726   :  { %v1871_v35 = vpop.permute.xlu0 %1870  ;;  %v1859_v36 = vpop.permute.xlu1 %1858 }
 0x727   :  { %v1880_v11 = vsel %vm282_vm15, %v1859_v36, %v1871_v35  ;;  %v5132_v36 = vld [vmem:[%s8334_s9 + $0x90] sm:$0xff] }
 0x72a   :  { %v1787_v37 = vpop.permute.xlu0 %1786  ;;  %v1775_v45 = vpop.permute.xlu1 %1774 }
 0x72b   :  { %v1796_v24 = vsel %vm213_vm2, %v1775_v45, %v1787_v37  ;;  %v5136_v45 = vld [vmem:[%s8334_s9 + $0xb0] sm:$0xff] }
 0x72e   :  { %v7080_v1 = vpop.permute.xlu0 %1758  ;;  %v7082_v47 = vpop.permute.xlu1 %1746 }
 0x72f   :  { %v1768_v13 = vsel %vm192_vm3, %v7082_v47, %v7080_v1 }
 0x732   :  { %v1929_v56 = vpop.permute.xlu0 %1928  ;;  %v1917_v58 = vpop.permute.xlu1 %1916 }
 0x733   :  { %v1937_v61 = vsel %vm324_vm13, %v1917_v58, %v1929_v56  ;;  %v5135_v58 = vld [vmem:[%s8334_s9 + $0xa8] sm:$0xff] }
 0x734   :  { %5313 = vmatprep.subr.mxu0 %v1937_v61 }
 0x736   :  { %v1845_v63 = vpop.permute.xlu0 %1844  ;;  %v1833_v38 = vpop.permute.xlu1 %1832 }
 0x737   :  { %v1853_v39 = vsel %vm255_vm7, %v1833_v38, %v1845_v63 }
 0x738   :  { %5314 = vmatpush3.msra.mxu0 %v1853_v39  ;;  %v5131_v39 = vld [vmem:[%s8334_s9 + $0x88] sm:$0xff] }
 0x739   :  { %5315 = vmatprep.subr.mxu0 %v1936_v40  ;;  %v5134_v40 = vld [vmem:[%s8334_s9 + $0xa0] sm:$0xff] }
 0x73a   :  { %v1901_v14 = vpop.permute.xlu0 %1900  ;;  %5316 = vmatpush3.msra.mxu0 %v1852_v50  ;;  %v1889_v5 = vpop.permute.xlu1 %1888  ;;  %v5137_v50 = vld [vmem:[%s8334_s9 + $0xb8] sm:$0xff] }
 0x73b   :  { %5317 = vmatprep.subr.mxu0 %v1935_v60  ;;  %v1909_v41 = vsel %vm303_vm14, %v1889_v5, %v1901_v14 }
 0x73c   :  { %5318 = vmatpush3.msra.mxu0 %v1851_v19 }
 0x73d   :  { %5319 = vmatprep.subr.mxu0 %v1934_v20 }
 0x73e   :  { %v1817_v15 = vpop.permute.xlu0 %1816  ;;  %5320 = vmatpush3.msra.mxu0 %v1850_v18  ;;  %v1805_v21 = vpop.permute.xlu1 %1804 }
 0x73f   :  { %v1825_v22 = vsel %vm234_vm1, %v1805_v21, %v1817_v15  ;;  %5321 = vmatprep.subr.mxu0 %v1909_v41 }
 0x740   :  { %5322 = vmatpush3.msra.mxu0 %v1825_v22 }
 0x741   :  { %5323 = vmatprep.subr.mxu0 %v1908_v17 }
 0x742   :  { %v1873_v42 = vpop.permute.xlu0 %1872  ;;  %5324 = vmatpush3.msra.mxu0 %v1824_v28  ;;  %v1861_v43 = vpop.permute.xlu1 %1860  ;;  %v7176_v28 = vld [vmem:[%s8330_s5 + $0x9] ss:$0 sm:$0xff]  ;;  %s8428_s5 = smov 111  }
 0x743   :  { %5325 = vmatprep.subr.mxu0 %v1907_v44  ;;  %v1881_v33 = vsel %vm282_vm15, %v1861_v43, %v1873_v42 }
 0x744   :  { %5326 = vmatpush3.msra.mxu0 %v1823_v46 }
 0x745   :  { %5327 = vmatprep.subr.mxu0 %v1906_v2 }
 0x746   :  { %v1789_v4 = vpop.permute.xlu0 %1788  ;;  %5328 = vmatpush3.msra.mxu0 %v1822_v9  ;;  %v1777_v10 = vpop.permute.xlu1 %1776 }
 0x747   :  { %v1797_v57 = vsel %vm213_vm2, %v1777_v10, %v1789_v4  ;;  %5329 = vmatprep.subr.mxu0 %v1881_v33 }
 0x748   :  { %5330 = vmatpush3.msra.mxu0 %v1797_v57 }
 0x749   :  { %5331 = vmatprep.subr.mxu0 %v1880_v11 }
 0x74a   :  { %v1757_v48 = vpop.permute.xlu0 %1756  ;;  %5332 = vmatpush3.msra.mxu0 %v1796_v24  ;;  %v1745_v0 = vpop.permute.xlu1 %1744 }
 0x74b   :  { %5333 = vmatprep.subr.mxu0 %v1879_v7  ;;  %v1767_v54 = vsel %vm192_vm3, %v1745_v0, %v1757_v48 }
 0x74c   :  { %5334 = vmatpush3.msra.mxu0 %v1795_v12 }
 0x74d   :  { %5335 = vmatprep.subr.mxu0 %v1878_v26 }
 0x74e   :  { %v1761_v3 = vpop.permute.xlu0 %1760  ;;  %5336 = vmatpush3.msra.mxu0 %v1794_v25  ;;  %v1749_v8 = vpop.permute.xlu1 %1748 }
 0x74f   :  { %v1769_v27 = vsel %vm192_vm3, %v1749_v8, %v1761_v3  ;;  %5337 = vmatprep.subr.mxu0 %v6981_v23 }
 0x750   :  { %5338 = vmatpush3.msra.mxu0 %v1769_v27 }
 0x751   :  { %5339 = vmatprep.subr.mxu0 %v6949_v16  ;;  %v5130_v16 = vld [vmem:[%s8334_s9 + $0x80] sm:$0xff] }
 0x752   :  { %v1755_v52 = vpop.permute.xlu0 %1754  ;;  %5340 = vmatpush3.msra.mxu0 %v1768_v13  ;;  %v1743_v53 = vpop.permute.xlu1 %1742 }
 0x753   :  { %5341 = vmatprep.subr.mxu0 %v6922_v59  ;;  %v1766_v23 = vsel %vm192_vm3, %v1743_v53, %v1755_v52  ;;  %v5129_v59 = vld [vmem:[%s8334_s9 + $0x78] sm:$0xff] }
 0x754   :  { %5342 = vmatpush3.msra.mxu0 %v1767_v54 }
 0x755   :  { %5343 = vmatprep.subr.mxu0 %v6895_v34 }
 0x756   :  { %v1955_v31 = vpop.permute.xlu0 %1954  ;;  %5344 = vmatpush3.msra.mxu0 %v1766_v23  ;;  %v1943_v32 = vpop.permute.xlu1 %1942  ;;  %v5144_v23 = vld [vmem:[%s8334_s9 + $0xd0] sm:$0xff] }
 0x757   :  { %2059 = vmatmul.mubr.f32.vlgmr.msra.gmra.mxu0 %v5126_v55  ;;  %v1964_v37 = vsel %vm345_vm4, %v1943_v32, %v1955_v31  ;;  %v5143_v55 = vld [vmem:[%s8334_s9 + $0xc8] sm:$0xff] }
 0x758   :  { %2063 = vmatprep.mubr.f32.mxu0 %v5130_v16 }
 0x75a   :  { %v1957_v30 = vpop.permute.xlu0 %1956  ;;  %v1945_v35 = vpop.permute.xlu1 %1944 }
 0x75b   :  { %2064 = vmatmul.mubr.f32.gmra.mxu0 %v5129_v59  ;;  %v1965_v34 = vsel %vm345_vm4, %v1945_v35, %v1957_v30 }
 0x75c   :  { %5491 = vmatprep.subr.mxu1 %v1965_v34  ;;  %2068 = vmatprep.mubr.f32.mxu0 %v5133_v29 }
 0x75d   :  { %5492 = vmatpush3.msra.mxu1 %v1965_v34 }
 0x75e   :  { %v1953_v1 = vpop.permute.xlu0 %1952  ;;  %5493 = vmatprep.subr.mxu1 %v1964_v37  ;;  %v1941_v47 = vpop.permute.xlu1 %1940 }
 0x75f   :  { %2069 = vmatmul.mubr.f32.gmra.mxu0 %v5132_v36  ;;  %5494 = vmatpush3.msra.mxu1 %v1964_v37  ;;  %v1963_v56 = vsel %vm345_vm4, %v1941_v47, %v1953_v1  ;;  %v5691_v36 = vld [vmem:[%s8335_s10] sm:$0xff]  ;;  %v5692_v37 = vld [vmem:[%s8335_s10 + $0x8] sm:$0xff] }
 0x760   :  { %5495 = vmatprep.subr.mxu1 %v1963_v56  ;;  %2073 = vmatprep.mubr.f32.mxu0 %v5136_v45 }
 0x761   :  { %5496 = vmatpush3.msra.mxu1 %v1963_v56 }
 0x762   :  { %v1951_v61 = vpop.permute.xlu0 %1950  ;;  %v1939_v63 = vpop.permute.xlu1 %1938 }
 0x763   :  { %2074 = vmatmul.mubr.f32.gmra.mxu0 %v5135_v58  ;;  %v1962_v38 = vsel %vm345_vm4, %v1939_v63, %v1951_v61 }
 0x764   :  { %5497 = vmatprep.subr.mxu1 %v1962_v38  ;;  %2505 = vmatprep.mubr.f32.mxu0 %v5143_v55 }
 0x765   :  { %5498 = vmatpush3.msra.mxu1 %v1962_v38 }
 0x766   :  { %5500 = vmatmul.mubr.msk.f32.vlgmr.msra.gmra.mxu1 %vm1534_vm5, %v5131_v39 }
 0x767   :  { %5502 = vmatprep.mubr.msk.f32.mxu1 %vm1534_vm5, %v5134_v40 }
 0x76a   :  { %5503 = vmatmul.mubr.msk.f32.gmra.mxu1 %vm1534_vm5, %v5137_v50 }
 0x76b   :  { %5513 = vmatprep.mubr.msk.f32.mxu1 %vm1534_vm5, %v5144_v23 }
 0x76f   :  { %v7171_v14 = vpop.permute.xlu1 %1979  ;;  %v1976_v24 = vpop.permute.xlu0 %1975 }
 0x773   :  { %v1972_v60 = vpop.permute.xlu1 %1971 }
 0x777   :  { %v1968_v18 = vpop.permute.xlu1 %1967 }
 0x817   :  { %v5345_v5 = vpop.f32.mrf.mxu0 }
 0x819   :  { %v5346_v19 = vpop.f32.mrf.mxu0 }
 0x81a   :  { %v5347_v20 = vadd.f32 %v5346_v19, %v5345_v5 }
 0x81b   :  { %v5348_v43 = vpop.f32.mrf.mxu0 }
 0x81c   :  { %v2061_v21 = vadd.f32 %v5347_v20, %v1968_v18 }
 0x81d   :  { %v5349_v44 = vpop.f32.mrf.mxu0 }
 0x81e   :  { %v5350_v46 = vadd.f32 %v5349_v44, %v5348_v43 }
 0x81f   :  { %v5351_v33 = vpop.f32.mrf.mxu0 }
 0x820   :  { %v2066_v2 = vadd.f32 %v5350_v46, %v1972_v60 }
 0x821   :  { %v5352_v57 = vpop.f32.mrf.mxu0 }
 0x822   :  { %v5353_v11 = vadd.f32 %v5352_v57, %v5351_v33 }
 0x823   :  { %v5354_v3 = vpop.f32.mrf.mxu0 }
 0x824   :  { %v2071_v0 = vadd.f32 %v5353_v11, %v1976_v24 }
 0x825   :  { %v5355_v8 = vpop.f32.mrf.mxu0 }
 0x826   :  { %v5501_v15 = vpop.f32.mrf.mxu1  ;;  %v5356_v27 = vadd.f32 %v5355_v8, %v5354_v3 }
 0x827   :  { %v2151_v9 = vadd.f32 %v5501_v15, %v2066_v2 }
 0x828   :  { %v2145_v41 = vpop.f32.mrf.mxu1  ;;  %v2076_v13 = vadd.f32 %v5356_v27, %v7171_v14 }
 0x829   :  { %v2146_v22 = vadd.f32 %v2145_v41, %v2061_v21  ;;  %v2165_v4 = vmax.f32 %v2151_v9, 0.0 }
 0x82a   :  { %v5504_v48 = vpop.f32.mrf.mxu1 }
 0x82b   :  { %v2164_v17 = vmax.f32 %v2146_v22, 0.0  ;;  %v7210_v10 = vmul.f32 %v7176_v28, %v2165_v4  ;;  %v2161_v52 = vadd.f32 %v5504_v48, %v2076_v13 }
 0x82c   :  { %v2155_v7 = vpop.f32.mrf.mxu1 }
 0x82d   :  { %v7179_v42 = vmul.f32 %v7176_v28, %v2164_v17  ;;  %v2156_v12 = vadd.f32 %v2155_v7, %v2071_v0  ;;  %v2167_v53 = vmax.f32 %v2161_v52, 0.0 }
 0x82f   :  { %2369 = vrot.lane.b32.xlu1 %v7179_v42, %s8420_s0  ;;  %2357 = vrot.lane.b32.xlu0 %v7179_v42, %s8415_s30  ;;  %v2166_v26 = vmax.f32 %v2156_v12, 0.0  ;;  %v7273_v54 = vmul.f32 %v7176_v28, %v2167_v53 }
 0x831   :  { %v7241_v25 = vmul.f32 %v7176_v28, %v2166_v26 }
 0x833   :  { %2285 = vrot.lane.b32.xlu1 %v7179_v42, %s8405_s28  ;;  %2273 = vrot.lane.b32.xlu0 %v7179_v42, %s8406_s22 }
 0x837   :  { %2341 = vrot.lane.b32.xlu1 %v7179_v42, %s8408_s26  ;;  %2329 = vrot.lane.b32.xlu0 %v7179_v42, %s8407_s18 }
 0x83b   :  { %2257 = vrot.lane.b32.xlu1 %v7179_v42, %s8410_s23  ;;  %2245 = vrot.lane.b32.xlu0 %v7179_v42, %s8409_s1 }
 0x83f   :  { %2313 = vrot.lane.b32.xlu1 %v7179_v42, %s8416_s3  ;;  %2301 = vrot.lane.b32.xlu0 %v7179_v42, %s8417_s8 }
 0x843   :  { %2229 = vrot.lane.b32.xlu1 %v7179_v42, %s8412_s27  ;;  %2217 = vrot.lane.b32.xlu0 %v7179_v42, %s8411_s25 }
 0x847   :  { %2201 = vrot.lane.b32.xlu1 %v7179_v42, %s8413_s19  ;;  %2189 = vrot.lane.b32.xlu0 %v7179_v42, %s8414_s29 }
 0x84b   :  { %2371 = vrot.lane.b32.xlu1 %v7210_v10, %s8420_s0  ;;  %2359 = vrot.lane.b32.xlu0 %v7210_v10, %s8415_s30 }
 0x84f   :  { %2287 = vrot.lane.b32.xlu1 %v7210_v10, %s8405_s28  ;;  %2275 = vrot.lane.b32.xlu0 %v7210_v10, %s8406_s22 }
 0x853   :  { %2343 = vrot.lane.b32.xlu1 %v7210_v10, %s8408_s26  ;;  %2331 = vrot.lane.b32.xlu0 %v7210_v10, %s8407_s18 }
 0x857   :  { %2259 = vrot.lane.b32.xlu1 %v7210_v10, %s8410_s23  ;;  %2247 = vrot.lane.b32.xlu0 %v7210_v10, %s8409_s1 }
 0x85b   :  { %2315 = vrot.lane.b32.xlu1 %v7210_v10, %s8416_s3  ;;  %2303 = vrot.lane.b32.xlu0 %v7210_v10, %s8417_s8 }
 0x85f   :  { %2231 = vrot.lane.b32.xlu1 %v7210_v10, %s8412_s27  ;;  %2219 = vrot.lane.b32.xlu0 %v7210_v10, %s8411_s25 }
 0x863   :  { %2203 = vrot.lane.b32.xlu1 %v7210_v10, %s8413_s19  ;;  %2191 = vrot.lane.b32.xlu0 %v7210_v10, %s8414_s29 }
 0x867   :  { %2373 = vrot.lane.b32.xlu1 %v7241_v25, %s8420_s0  ;;  %2361 = vrot.lane.b32.xlu0 %v7241_v25, %s8415_s30 }
 0x86b   :  { %2289 = vrot.lane.b32.xlu1 %v7241_v25, %s8405_s28  ;;  %2277 = vrot.lane.b32.xlu0 %v7241_v25, %s8406_s22 }
 0x86f   :  { %2345 = vrot.lane.b32.xlu1 %v7241_v25, %s8408_s26  ;;  %2333 = vrot.lane.b32.xlu0 %v7241_v25, %s8407_s18 }
 0x873   :  { %2261 = vrot.lane.b32.xlu1 %v7241_v25, %s8410_s23  ;;  %2249 = vrot.lane.b32.xlu0 %v7241_v25, %s8409_s1 }
 0x877   :  { %2317 = vrot.lane.b32.xlu1 %v7241_v25, %s8416_s3  ;;  %2305 = vrot.lane.b32.xlu0 %v7241_v25, %s8417_s8 }
 0x87b   :  { %2233 = vrot.lane.b32.xlu1 %v7241_v25, %s8412_s27  ;;  %2221 = vrot.lane.b32.xlu0 %v7241_v25, %s8411_s25 }
 0x87f   :  { %2205 = vrot.lane.b32.xlu1 %v7241_v25, %s8413_s19  ;;  %2193 = vrot.lane.b32.xlu0 %v7241_v25, %s8414_s29 }
 0x883   :  { %2375 = vrot.lane.b32.xlu1 %v7273_v54, %s8420_s0  ;;  %2363 = vrot.lane.b32.xlu0 %v7273_v54, %s8415_s30 }
 0x887   :  { %2291 = vrot.lane.b32.xlu1 %v7273_v54, %s8405_s28  ;;  %2279 = vrot.lane.b32.xlu0 %v7273_v54, %s8406_s22  ;;  %s8430_s28 = smov 110  }
 0x88b   :  { %2347 = vrot.lane.b32.xlu1 %v7273_v54, %s8408_s26  ;;  %2335 = vrot.lane.b32.xlu0 %v7273_v54, %s8407_s18  ;;  %s5779_s26 = smov 80  }
 0x88f   :  { %2263 = vrot.lane.b32.xlu1 %v7273_v54, %s8410_s23  ;;  %2251 = vrot.lane.b32.xlu0 %v7273_v54, %s8409_s1 }
 0x893   :  { %2319 = vrot.lane.b32.xlu1 %v7273_v54, %s8416_s3  ;;  %2307 = vrot.lane.b32.xlu0 %v7273_v54, %s8417_s8 }
 0x897   :  { %2235 = vrot.lane.b32.xlu1 %v7273_v54, %s8412_s27  ;;  %2223 = vrot.lane.b32.xlu0 %v7273_v54, %s8411_s25  ;;  %s8429_s25 = smov 46  }
 0x89b   :  { %2401 = vrot.lane.b32.xlu1 %v7241_v25, %s8418_s7  ;;  %2389 = vrot.lane.b32.xlu0 %v7241_v25, %s8419_s6 }
 0x89f   :  { %2207 = vrot.lane.b32.xlu1 %v7273_v54, %s8413_s19  ;;  %2195 = vrot.lane.b32.xlu0 %v7273_v54, %s8414_s29 }
 0x8a1   :  { %v7313_v16 = vpop.permute.xlu1 %2369  ;;  %v7315_v31 = vpop.permute.xlu0 %2357 }
 0x8a3   :  { %2403 = vrot.lane.b32.xlu1 %v7273_v54, %s8418_s7  ;;  %2391 = vrot.lane.b32.xlu0 %v7273_v54, %s8419_s6 }
 0x8a5   :  { %v7322_v32 = vpop.permute.xlu1 %2285  ;;  %v7324_v59 = vpop.permute.xlu0 %2273 }
 0x8a7   :  { %2399 = vrot.lane.b32.xlu1 %v7210_v10, %s8418_s7  ;;  %2387 = vrot.lane.b32.xlu0 %v7210_v10, %s8419_s6 }
 0x8a9   :  { %v7330_v29 = vpop.permute.xlu1 %2341  ;;  %v7332_v30 = vpop.permute.xlu0 %2329 }
 0x8ab   :  { %2397 = vrot.lane.b32.xlu1 %v7179_v42, %s8418_s7  ;;  %2385 = vrot.lane.b32.xlu0 %v7179_v42, %s8419_s6 }
 0x8ad   :  { %v7338_v35 = vpop.permute.xlu1 %2257  ;;  %v7340_v34 = vpop.permute.xlu0 %2245 }
 0x8af   :  { %2414 = vperm.xlu0 %5672, %v5691_v36   ;;  %2418 = vperm.xlu1 %5673, %v5692_v37   ;;  %v2381_v37 = vsel %vm324_vm13, %v7315_v31, %v7313_v16 }
 0x8b1   :  { %v7348_v45 = vpop.permute.xlu1 %2313  ;;  %v7350_v1 = vpop.permute.xlu0 %2301 }
 0x8b5   :  { %v7352_v47 = vpop.permute.xlu1 %2229  ;;  %v7354_v56 = vpop.permute.xlu0 %2217 }
 0x8b9   :  { %v7356_v58 = vpop.permute.xlu1 %2201  ;;  %v7358_v61 = vpop.permute.xlu0 %2189 }
 0x8bd   :  { %v2372_v63 = vpop.permute.xlu1 %2371  ;;  %v2360_v38 = vpop.permute.xlu0 %2359 }
 0x8be   :  { %v2382_v23 = vsel %vm324_vm13, %v2360_v38, %v2372_v63 }
 0x8c1   :  { %v2288_v39 = vpop.permute.xlu1 %2287  ;;  %v2276_v40 = vpop.permute.xlu0 %2275 }
 0x8c2   :  { %v2298_v36 = vsel %vm255_vm7, %v2276_v40, %v2288_v39  ;;  %v2353_v40 = vsel %vm303_vm14, %v7332_v30, %v7330_v29 }
 0x8c5   :  { %v2344_v50 = vpop.permute.xlu1 %2343  ;;  %v2332_v14 = vpop.permute.xlu0 %2331 }
 0x8c9   :  { %v2260_v5 = vpop.permute.xlu1 %2259  ;;  %v2248_v60 = vpop.permute.xlu0 %2247 }
 0x8cd   :  { %v7360_v19 = vpop.permute.xlu1 %2315  ;;  %v7362_v20 = vpop.permute.xlu0 %2303 }
 0x8d1   :  { %v7364_v18 = vpop.permute.xlu1 %2231  ;;  %v7366_v15 = vpop.permute.xlu0 %2219 }
 0x8d5   :  { %v7368_v21 = vpop.permute.xlu1 %2203  ;;  %v7370_v41 = vpop.permute.xlu0 %2191 }
 0x8d9   :  { %v2374_v22 = vpop.permute.xlu1 %2373  ;;  %v2362_v17 = vpop.permute.xlu0 %2361 }
 0x8da   :  { %v2383_v13 = vsel %vm324_vm13, %v2362_v17, %v2374_v22  ;;  %v2297_v22 = vsel %vm255_vm7, %v7324_v59, %v7322_v32  ;;  %v2354_v32 = vsel %vm303_vm14, %v2332_v14, %v2344_v50  ;;  %v2270_v59 = vsel %vm234_vm1, %v2248_v60, %v2260_v5 }
 0x8db   :  { %v2325_v60 = vsel %vm282_vm15, %v7350_v1, %v7348_v45 }
 0x8dd   :  { %v2290_v43 = vpop.permute.xlu1 %2289  ;;  %v2278_v44 = vpop.permute.xlu0 %2277 }
 0x8de   :  { %v2299_v52 = vsel %vm255_vm7, %v2278_v44, %v2290_v43 }
 0x8e1   :  { %v2346_v46 = vpop.permute.xlu1 %2345  ;;  %v2334_v2 = vpop.permute.xlu0 %2333 }
 0x8e2   :  { %v2355_v38 = vsel %vm303_vm14, %v2334_v2, %v2346_v46  ;;  %v2269_v46 = vsel %vm234_vm1, %v7340_v34, %v7338_v35  ;;  %v2326_v35 = vsel %vm282_vm15, %v7362_v20, %v7360_v19  ;;  %v2242_v34 = vsel %vm213_vm2, %v7366_v15, %v7364_v18 }
 0x8e5   :  { %v2262_v9 = vpop.permute.xlu1 %2261  ;;  %v2250_v4 = vpop.permute.xlu0 %2249 }
 0x8e6   :  { %v2271_v39 = vsel %vm234_vm1, %v2250_v4, %v2262_v9 }
 0x8e9   :  { %v2318_v33 = vpop.permute.xlu1 %2317  ;;  %v2306_v57 = vpop.permute.xlu0 %2305 }
 0x8ea   :  { %v2327_v14 = vsel %vm282_vm15, %v2306_v57, %v2318_v33  ;;  %v2241_v33 = vsel %vm213_vm2, %v7354_v56, %v7352_v47  ;;  %v2214_v47 = vsel %vm192_vm3, %v7370_v41, %v7368_v21 }
 0x8ed   :  { %v2234_v11 = vpop.permute.xlu1 %2233  ;;  %v2222_v24 = vpop.permute.xlu0 %2221 }
 0x8ee   :  { %v2243_v5 = vsel %vm213_vm2, %v2222_v24, %v2234_v11 }
 0x8f1   :  { %v7372_v48 = vpop.permute.xlu1 %2205  ;;  %v7374_v0 = vpop.permute.xlu0 %2193 }
 0x8f2   :  { %v2215_v20 = vsel %vm192_vm3, %v7374_v0, %v7372_v48  ;;  %v5147_v0 = vld [vmem:[%s8334_s9 + $0xe8] sm:$0xff] }
 0x8f5   :  { %v2376_v7 = vpop.permute.xlu1 %2375  ;;  %v2364_v12 = vpop.permute.xlu0 %2363 }
 0x8f6   :  { %v2384_v26 = vsel %vm324_vm13, %v2364_v12, %v2376_v7  ;;  %v5148_v7 = vld [vmem:[%s8334_s9 + $0xf0] sm:$0xff] }
 0x8f7   :  { %5365 = vmatprep.subr.mxu0 %v2384_v26  ;;  %v5152_v12 = vld [vmem:[%s8334_s9 + $0x110] sm:$0xff]  ;;  %v5151_v26 = vld [vmem:[%s8334_s9 + $0x108] sm:$0xff] }
 0x8f9   :  { %v2292_v3 = vpop.permute.xlu1 %2291  ;;  %v2280_v8 = vpop.permute.xlu0 %2279 }
 0x8fa   :  { %v2300_v27 = vsel %vm255_vm7, %v2280_v8, %v2292_v3  ;;  %v5150_v3 = vld [vmem:[%s8334_s9 + $0x100] sm:$0xff]  ;;  %v5153_v8 = vld [vmem:[%s8334_s9 + $0x118] sm:$0xff]  ;;  %vm2887_vm7 = vcmask 523264  }
 0x8fb   :  { %5366 = vmatpush3.msra.mxu0 %v2300_v27 }
 0x8fc   :  { %5367 = vmatprep.subr.mxu0 %v2383_v13 }
 0x8fd   :  { %v2348_v53 = vpop.permute.xlu1 %2347  ;;  %5368 = vmatpush3.msra.mxu0 %v2299_v52  ;;  %v2336_v55 = vpop.permute.xlu0 %2335 }
 0x8fe   :  { %5369 = vmatprep.subr.mxu0 %v2382_v23  ;;  %v2356_v44 = vsel %vm303_vm14, %v2336_v55, %v2348_v53  ;;  %vm5777_vm14 = vmmov 0  }
 0x8ff   :  { %5370 = vmatpush3.msra.mxu0 %v2298_v36 }
 0x900   :  { %5371 = vmatprep.subr.mxu0 %v2381_v37 }
 0x901   :  { %v2264_v17 = vpop.permute.xlu1 %2263  ;;  %5372 = vmatpush3.msra.mxu0 %v2297_v22  ;;  %v2252_v43 = vpop.permute.xlu0 %2251 }
 0x902   :  { %v2272_v63 = vsel %vm234_vm1, %v2252_v43, %v2264_v17  ;;  %5373 = vmatprep.subr.mxu0 %v2356_v44 }
 0x903   :  { %5374 = vmatpush3.msra.mxu0 %v2272_v63 }
 0x904   :  { %5375 = vmatprep.subr.mxu0 %v2355_v38 }
 0x905   :  { %v2320_v16 = vpop.permute.xlu1 %2319  ;;  %5376 = vmatpush3.msra.mxu0 %v2271_v39  ;;  %v2308_v31 = vpop.permute.xlu0 %2307 }
 0x906   :  { %5377 = vmatprep.subr.mxu0 %v2354_v32  ;;  %v2328_v4 = vsel %vm282_vm15, %v2308_v31, %v2320_v16 }
 0x907   :  { %5378 = vmatpush3.msra.mxu0 %v2270_v59  ;;  %v2886_v59 = vld [vmem:[%s8329_s4 + $0x38] sm:$0xff] }
 0x908   :  { %5379 = vmatprep.subr.mxu0 %v2353_v40  ;;  %v2885_v40 = vld [vmem:[%s8329_s4 + $0x30] sm:$0xff] }
 0x909   :  { %v2236_v2 = vpop.permute.xlu1 %2235  ;;  %5380 = vmatpush3.msra.mxu0 %v2269_v46  ;;  %v2224_v9 = vpop.permute.xlu0 %2223  ;;  %v2884_v46 = vld [vmem:[%s8329_s4 + $0x28] sm:$0xff] }
 0x90a   :  { %v2244_v50 = vsel %vm213_vm2, %v2224_v9, %v2236_v2  ;;  %5381 = vmatprep.subr.mxu0 %v2328_v4  ;;  %v2883_v2 = vld [vmem:[%s8329_s4 + $0x20] sm:$0xff]  ;;  %v2882_v9 = vld [vmem:[%s8329_s4 + $0x18] sm:$0xff]  ;;  %v2881_v4 = vld [vmem:[%s8329_s4 + $0x10] sm:$0xff] }
 0x90b   :  { %5382 = vmatpush3.msra.mxu0 %v2244_v50  ;;  %v7542_v50 = vld [vmem:[%s8329_s4 + $0x8] sm:$0xff] }
 0x90c   :  { %5383 = vmatprep.subr.mxu0 %v2327_v14  ;;  %v7552_v14 = vld [vmem:[%s8329_s4] sm:$0xff] }
 0x90d   :  { %v2402_v29 = vpop.permute.xlu1 %2401  ;;  %5384 = vmatpush3.msra.mxu0 %v2243_v5  ;;  %v2390_v30 = vpop.permute.xlu0 %2389  ;;  %v5693_v5 = vld [vmem:[%s8335_s10 + $0x18] sm:$0xff] }
 0x90e   :  { %5385 = vmatprep.subr.mxu0 %v2326_v35  ;;  %v2411_v18 = vsel %vm345_vm4, %v2390_v30, %v2402_v29  ;;  %v5694_v29 = vld [vmem:[%s8335_s10 + $0x10] sm:$0xff] }
 0x90f   :  { %5386 = vmatpush3.msra.mxu0 %v2242_v34 }
 0x910   :  { %5387 = vmatprep.subr.mxu0 %v2325_v60 }
 0x911   :  { %v2208_v57 = vpop.permute.xlu1 %2207  ;;  %5388 = vmatpush3.msra.mxu0 %v2241_v33  ;;  %v2196_v11 = vpop.permute.xlu0 %2195 }
 0x912   :  { %v2216_v19 = vsel %vm192_vm3, %v2196_v11, %v2208_v57  ;;  %5389 = vmatprep.subr.mxu0 %v7273_v54  ;;  %v5142_v54 = vld [vmem:[%s8334_s9 + $0xc0] sm:$0xff] }
 0x913   :  { %5390 = vmatpush3.msra.mxu0 %v2216_v19 }
 0x914   :  { %5391 = vmatprep.subr.mxu0 %v7241_v25  ;;  %v2213_v25 = vsel %vm192_vm3, %v7358_v61, %v7356_v58  ;;  %v5149_v58 = vld [vmem:[%s8334_s9 + $0xf8] sm:$0xff] }
 0x915   :  { %v2404_v45 = vpop.permute.xlu1 %2403  ;;  %5392 = vmatpush3.msra.mxu0 %v2215_v20  ;;  %v2392_v1 = vpop.permute.xlu0 %2391 }
 0x916   :  { %5393 = vmatprep.subr.mxu0 %v7210_v10  ;;  %v2412_v56 = vsel %vm345_vm4, %v2392_v1, %v2404_v45  ;;  %v5146_v10 = vld [vmem:[%s8334_s9 + $0xe0] sm:$0xff] }
 0x917   :  { %5394 = vmatpush3.msra.mxu0 %v2214_v47  ;;  %5505 = vmatprep.subr.mxu1 %v2412_v56 }
 0x918   :  { %5395 = vmatprep.subr.mxu0 %v7179_v42  ;;  %5506 = vmatpush3.msra.mxu1 %v2412_v56  ;;  %v5145_v42 = vld [vmem:[%s8334_s9 + $0xd8] sm:$0xff]  ;;  %s8421_s9 = smov 62  }
 0x919   :  { %v2400_v15 = vpop.permute.xlu1 %2399  ;;  %5396 = vmatpush3.msra.mxu0 %v2213_v25  ;;  %5507 = vmatprep.subr.mxu1 %v2411_v18  ;;  %v2388_v21 = vpop.permute.xlu0 %2387 }
 0x91a   :  { %5508 = vmatpush3.msra.mxu1 %v2411_v18  ;;  %v2410_v41 = vsel %vm345_vm4, %v2388_v21, %v2400_v15  ;;  %2506 = vmatmul.mubr.f32.vlgmr.msra.gmra.mxu0 %v5142_v54 }
 0x91b   :  { %5509 = vmatprep.subr.mxu1 %v2410_v41  ;;  %2510 = vmatprep.mubr.f32.mxu0 %v5146_v10 }
 0x91c   :  { %5510 = vmatpush3.msra.mxu1 %v2410_v41  ;;  %5519 = vmatprep.subr.mxu0 %v2886_v59 }
 0x91d   :  { %v2398_v61 = vpop.permute.xlu1 %2397  ;;  %v2386_v24 = vpop.permute.xlu0 %2385  ;;  %5520 = vmatpush3.msra.mxu0 %v2886_v59 }
 0x91e   :  { %v2409_v48 = vsel %vm345_vm4, %v2386_v24, %v2398_v61  ;;  %2511 = vmatmul.mubr.f32.gmra.mxu0 %v5145_v42  ;;  %5521 = vmatprep.subr.mxu0 %v2885_v40 }
 0x91f   :  { %5511 = vmatprep.subr.mxu1 %v2409_v48  ;;  %2515 = vmatprep.mubr.f32.mxu0 %v5149_v58 }
 0x920   :  { %5512 = vmatpush3.msra.mxu1 %v2409_v48  ;;  %5522 = vmatpush3.msra.mxu0 %v2885_v40 }
 0x921   :  { %5514 = vmatmul.mubr.msk.f32.vlgmr.msra.gmra.mxu1 %vm1534_vm5, %v5147_v0  ;;  %5523 = vmatprep.subr.mxu0 %v2884_v46 }
 0x922   :  { %2516 = vmatmul.mubr.f32.gmra.mxu0 %v5148_v7  ;;  %5516 = vmatprep.mubr.msk.f32.mxu1 %vm1534_vm5, %v5150_v3 }
 0x923   :  { %2520 = vmatprep.mubr.f32.mxu0 %v5152_v12  ;;  %5524 = vmatpush3.msra.mxu0 %v2884_v46 }
 0x924   :  { %5525 = vmatprep.subr.mxu0 %v2883_v2 }
 0x925   :  { %5517 = vmatmul.mubr.msk.f32.gmra.mxu1 %vm1534_vm5, %v5153_v8  ;;  %5526 = vmatpush3.msra.mxu0 %v2883_v2 }
 0x926   :  { %2521 = vmatmul.mubr.f32.gmra.mxu0 %v5151_v26  ;;  %5527 = vmatprep.subr.mxu0 %v2882_v9 }
 0x927   :  { %5528 = vmatpush3.msra.mxu0 %v2882_v9 }
 0x928   :  { %5529 = vmatprep.subr.mxu0 %v2881_v4 }
 0x929   :  { %5530 = vmatpush3.msra.mxu0 %v2881_v4 }
 0x92a   :  { %v2415_v53 = vpop.permute.xlu0 %2414  ;;  %v2419_v38 = vpop.permute.xlu1 %2418  ;;  %5531 = vmatprep.subr.mxu0 %v7542_v50 }
 0x92b   :  { %5532 = vmatpush3.msra.mxu0 %v7542_v50 }
 0x92c   :  { %5533 = vmatprep.subr.mxu0 %v7552_v14 }
 0x92d   :  { %5534 = vmatpush3.msra.mxu0 %v7552_v14 }
 0x92e   :  { %5557 = vmatprep.subr.mxu0 %v5740_v6 }
 0x9da   :  { %v5397_v27 = vpop.f32.mrf.mxu0 }
 0x9dc   :  { %v5398_v13 = vpop.f32.mrf.mxu0 }
 0x9dd   :  { %v5399_v52 = vadd.f32 %v5398_v13, %v5397_v27 }
 0x9de   :  { %v5400_v43 = vpop.f32.mrf.mxu0 }
 0x9df   :  { %v2508_v23 = vadd.f32 %v5399_v52, %v2415_v53 }
 0x9e0   :  { %v5401_v44 = vpop.f32.mrf.mxu0 }
 0x9e1   :  { %v5515_v55 = vpop.f32.mrf.mxu1  ;;  %v5402_v63 = vadd.f32 %v5401_v44, %v5400_v43 }
 0x9e3   :  { %v2592_v36 = vpop.f32.mrf.mxu1  ;;  %v2513_v39 = vadd.f32 %v5402_v63, %v2419_v38 }
 0x9e4   :  { %v2593_v37 = vadd.f32 %v2592_v36, %v2508_v23 }
 0x9e5   :  { %v2598_v16 = vadd.f32 %v5515_v55, %v2513_v39 }
 0x9e6   :  { %v2611_v22 = vmax.f32 %v2593_v37, 0.0 }
 0x9e7   :  { %v2612_v31 = vmax.f32 %v2598_v16, 0.0 }
 0x9e8   :  { %v7468_v17 = vmul.f32 %v7176_v28, %v2611_v22 }
 0x9e9   :  { %v7499_v32 = vmul.f32 %v7176_v28, %v2612_v31 }
 0x9ea   :  { %2635 = vrot.lane.b32.xlu0 %v7468_v17, %s8416_s3  ;;  %2623 = vrot.lane.b32.xlu1 %v7468_v17, %s8417_s8 }
 0x9ee   :  { %2663 = vrot.lane.b32.xlu0 %v7468_v17, %s8421_s9  ;;  %2651 = vrot.lane.b32.xlu1 %v7468_v17, %s8422_s24 }
 0x9f2   :  { %2691 = vrot.lane.b32.xlu0 %v7468_v17, %s8420_s0  ;;  %2679 = vrot.lane.b32.xlu1 %v7468_v17, %s8415_s30 }
 0x9f6   :  { %2719 = vrot.lane.b32.xlu0 %v7468_v17, %s8418_s7  ;;  %2707 = vrot.lane.b32.xlu1 %v7468_v17, %s8419_s6 }
 0x9fa   :  { %2747 = vrot.lane.b32.xlu0 %v7468_v17, %s8423_s16  ;;  %2735 = vrot.lane.b32.xlu1 %v7468_v17, %s8424_s17 }
 0x9fe   :  { %2775 = vrot.lane.b32.xlu0 %v7468_v17, %s8425_s14  ;;  %2763 = vrot.lane.b32.xlu1 %v7468_v17, %s8426_s21 }
 0xa02   :  { %2803 = vrot.lane.b32.xlu0 %v7468_v17, %s8427_s20  ;;  %2791 = vrot.lane.b32.xlu1 %v7468_v17, %s8428_s5 }
 0xa06   :  { %2637 = vrot.lane.b32.xlu0 %v7499_v32, %s8416_s3  ;;  %2625 = vrot.lane.b32.xlu1 %v7499_v32, %s8417_s8 }
 0xa0a   :  { %2665 = vrot.lane.b32.xlu0 %v7499_v32, %s8421_s9  ;;  %2653 = vrot.lane.b32.xlu1 %v7499_v32, %s8422_s24 }
 0xa0e   :  { %2693 = vrot.lane.b32.xlu0 %v7499_v32, %s8420_s0  ;;  %2681 = vrot.lane.b32.xlu1 %v7499_v32, %s8415_s30 }
 0xa12   :  { %2721 = vrot.lane.b32.xlu0 %v7499_v32, %s8418_s7  ;;  %2709 = vrot.lane.b32.xlu1 %v7499_v32, %s8419_s6 }
 0xa16   :  { %2749 = vrot.lane.b32.xlu0 %v7499_v32, %s8423_s16  ;;  %2737 = vrot.lane.b32.xlu1 %v7499_v32, %s8424_s17 }
 0xa1a   :  { %2777 = vrot.lane.b32.xlu0 %v7499_v32, %s8425_s14  ;;  %2765 = vrot.lane.b32.xlu1 %v7499_v32, %s8426_s21 }
 0xa1e   :  { %2805 = vrot.lane.b32.xlu0 %v7499_v32, %s8427_s20  ;;  %2793 = vrot.lane.b32.xlu1 %v7499_v32, %s8428_s5 }
 0xa22   :  { %2831 = vrot.lane.b32.xlu0 %v7468_v17, %s8429_s25  ;;  %2819 = vrot.lane.b32.xlu1 %v7468_v17, %s8430_s28 }
 0xa26   :  { %2833 = vrot.lane.b32.xlu0 %v7499_v32, %s8429_s25  ;;  %2821 = vrot.lane.b32.xlu1 %v7499_v32, %s8430_s28 }
 0xa2a   :  { %2426 = vperm.xlu0 %5672, %v5693_v5   ;;  %2422 = vperm.xlu1 %5673, %v5694_v29  }
 0xa2e   :  { %2989 = vrot.lane.b32.xlu0 %v2885_v40, %s8426_s21  ;;  %2991 = vrot.lane.b32.xlu1 %v2886_v59, %s8426_s21 }
 0xa32   :  { %2985 = vrot.lane.b32.xlu0 %v2883_v2, %s8426_s21  ;;  %2987 = vrot.lane.b32.xlu1 %v2884_v46, %s8426_s21 }
 0xa36   :  { %2981 = vrot.lane.b32.xlu0 %v2881_v4, %s8426_s21  ;;  %2983 = vrot.lane.b32.xlu1 %v2882_v9, %s8426_s21 }
 0xa5c   :  { %v2636_v30 = vpop.permute.xlu0 %2635  ;;  %v2624_v35 = vpop.permute.xlu1 %2623 }
 0xa5d   :  { %v2647_v27 = vsel %vm282_vm15, %v2624_v35, %v2636_v30 }
 0xa5e   :  { %v2847_v37 = vmax.f32 %v7468_v17, %v2647_v27 }
 0xa60   :  { %v2664_v34 = vpop.permute.xlu0 %2663  ;;  %v2652_v60 = vpop.permute.xlu1 %2651 }
 0xa61   :  { %v2675_v13 = vsel %vm1053_vm6, %v2652_v60, %v2664_v34 }
 0xa64   :  { %v2692_v33 = vpop.permute.xlu0 %2691  ;;  %v2680_v57 = vpop.permute.xlu1 %2679 }
 0xa65   :  { %v2703_v0 = vsel %vm324_vm13, %v2680_v57, %v2692_v33 }
 0xa66   :  { %v2851_v53 = vmax.f32 %v2675_v13, %v2703_v0 }
 0xa68   :  { %v2720_v11 = vpop.permute.xlu0 %2719  ;;  %v2708_v19 = vpop.permute.xlu1 %2707  ;;  %v2863_v59 = vmax.f32 %v2847_v37, %v2851_v53 }
 0xa69   :  { %v2731_v52 = vsel %vm345_vm4, %v2708_v19, %v2720_v11 }
 0xa6c   :  { %v2748_v20 = vpop.permute.xlu0 %2747  ;;  %v2736_v45 = vpop.permute.xlu1 %2735 }
 0xa6d   :  { %v2759_v7 = vsel %vm1138_vm8, %v2736_v45, %v2748_v20  ;;  %v3082_v20 = vld [vmem:[%s8327_s2] sm:$0x1]  ;;  %v5403_v45 = vpop.f32.mrf.mxu0 }
 0xa6e   :  { %v2855_v55 = vmax.f32 %v2731_v52, %v2759_v7 }
 0xa70   :  { %v2776_v1 = vpop.permute.xlu0 %2775  ;;  %v2764_v47 = vpop.permute.xlu1 %2763 }
 0xa71   :  { %v2787_v12 = vsel %vm1167_vm10, %v2764_v47, %v2776_v1  ;;  %v5404_v1 = vpop.f32.mrf.mxu0  ;;  %v5518_v47 = vpop.f32.mrf.mxu1 }
 0xa73   :  { %v5406_v7 = vpop.f32.mrf.mxu0 }
 0xa74   :  { %v2804_v56 = vpop.permute.xlu0 %2803  ;;  %v2792_v54 = vpop.permute.xlu1 %2791 }
 0xa75   :  { %v2815_v48 = vsel %vm1196_vm11, %v2792_v54, %v2804_v56  ;;  %v5405_v56 = vadd.f32 %v5404_v1, %v5403_v45 }
 0xa76   :  { %v2859_v26 = vmax.f32 %v2787_v12, %v2815_v48  ;;  %v5407_v12 = vpop.f32.mrf.mxu0 }
 0xa78   :  { %v2638_v25 = vpop.permute.xlu0 %2637  ;;  %v2626_v18 = vpop.permute.xlu1 %2625  ;;  %v2867_v22 = vmax.f32 %v2855_v55, %v2859_v26  ;;  %v5408_v26 = vadd.f32 %v5407_v12, %v5406_v7 }
 0xa79   :  { %v2648_v43 = vsel %vm282_vm15, %v2626_v18, %v2638_v25 }
 0xa7a   :  { %v2848_v9 = vmax.f32 %v7499_v32, %v2648_v43  ;;  %v2871_v5 = vmax.f32 %v2863_v59, %v2867_v22  ;;  %v3083_v32 = vld [vmem:[%s8336_s11] sm:$0xff] }
 0xa7c   :  { %v2666_v10 = vpop.permute.xlu0 %2665  ;;  %v2654_v15 = vpop.permute.xlu1 %2653 }
 0xa7d   :  { %v2676_v38 = vsel %vm1053_vm6, %v2654_v15, %v2666_v10  ;;  %v2602_v10 = vpop.f32.mrf.mxu1 }
 0xa80   :  { %v2694_v21 = vpop.permute.xlu0 %2693  ;;  %v2682_v41 = vpop.permute.xlu1 %2681 }
 0xa81   :  { %v2704_v23 = vsel %vm324_vm13, %v2682_v41, %v2694_v21 }
 0xa82   :  { %v2852_v40 = vmax.f32 %v2676_v38, %v2704_v23 }
 0xa84   :  { %v2722_v42 = vpop.permute.xlu0 %2721  ;;  %v2710_v58 = vpop.permute.xlu1 %2709  ;;  %v2864_v35 = vmax.f32 %v2848_v9, %v2852_v40 }
 0xa85   :  { %v2732_v39 = vsel %vm345_vm4, %v2710_v58, %v2722_v42 }
 0xa88   :  { %v2750_v61 = vpop.permute.xlu0 %2749  ;;  %v2738_v24 = vpop.permute.xlu1 %2737 }
 0xa89   :  { %v2760_v36 = vsel %vm1138_vm8, %v2738_v24, %v2750_v61 }
 0xa8a   :  { %v2856_v46 = vmax.f32 %v2732_v39, %v2760_v36 }
 0xa8c   :  { %v2778_v3 = vpop.permute.xlu0 %2777  ;;  %v2766_v8 = vpop.permute.xlu1 %2765 }
 0xa8d   :  { %v2788_v16 = vsel %vm1167_vm10, %v2766_v8, %v2778_v3 }
 0xa90   :  { %v2806_v44 = vpop.permute.xlu0 %2805  ;;  %v2794_v63 = vpop.permute.xlu1 %2793 }
 0xa91   :  { %v2816_v31 = vsel %vm1196_vm11, %v2794_v63, %v2806_v44 }
 0xa92   :  { %v2860_v2 = vmax.f32 %v2788_v16, %v2816_v31 }
 0xa94   :  { %v2868_v17 = vmax.f32 %v2856_v46, %v2860_v2  ;;  %v2832_v4 = vpop.permute.xlu0 %2831  ;;  %v2820_v29 = vpop.permute.xlu1 %2819 }
 0xa95   :  { %v2843_v30 = vsel %vm1225_vm12, %v2820_v29, %v2832_v4 }
 0xa96   :  { %v2875_v34 = vmax.f32 %v2871_v5, %v2843_v30  ;;  %v2872_v33 = vmax.f32 %v2864_v35, %v2868_v17 }
 0xa98   :  { %v2834_v60 = vpop.permute.xlu0 %2833  ;;  %5535 = vmatprep.mubr.msk.f32.mxu0 %vm2887_vm7, %v2875_v34  ;;  %v2822_v57 = vpop.permute.xlu1 %2821 }
 0xa99   :  { %v2844_v11 = vsel %vm1225_vm12, %v2822_v57, %v2834_v60 }
 0xa9a   :  { %v2876_v19 = vmax.f32 %v2872_v33, %v2844_v11 }
 0xa9c   :  { %5536 = vmatmul.mubr.msk.f32.vlgmr.msra.gmra.mxu0 %vm2887_vm7, %v2876_v19 }
 0xa9d   :  { %5558 = vmatpush3.msra.mxu0 %v3083_v32  ;;  %5559 = vmatprep.mubr.msk.f32.mxu0 %vm5777_vm14, %v5740_v6 }
 0xaa0   :  { %5560 = vmatmul.mubr.msk.f32.vlgmr.msra.gmra.mxu0 %vm213_vm2, %v3082_v20 }
 0xaa1   :  { %3411 = vmatprep.mubr.f32.mxu0 %v5740_v6 }
 0xaa5   :  { %v2427_v54 = vpop.permute.xlu0 %2426  ;;  %v2423_v25 = vpop.permute.xlu1 %2422 }
 0xaa6   :  { %v2518_v18 = vadd.f32 %v5405_v56, %v2423_v25  ;;  %v2523_v3 = vadd.f32 %v5408_v26, %v2427_v54 }
 0xaa8   :  { %v2603_v15 = vadd.f32 %v2602_v10, %v2518_v18  ;;  %v2608_v8 = vadd.f32 %v5518_v47, %v2523_v3 }
 0xaa9   :  { %v2990_v21 = vpop.permute.xlu0 %2989  ;;  %v2992_v41 = vpop.permute.xlu1 %2991 }
 0xaaa   :  { %v2613_v42 = vmax.f32 %v2603_v15, 0.0  ;;  %5538 = vmatprep.subr.mxu1 %v2992_v41  ;;  %v2614_v27 = vmax.f32 %v2608_v8, 0.0 }
 0xaab   :  { %5539 = vmatpush3.msra.mxu1 %v2992_v41 }
 0xaac   :  { %v7613_v58 = vmul.f32 %v7176_v28, %v2613_v42  ;;  %5540 = vmatprep.subr.mxu1 %v2990_v21  ;;  %v7648_v13 = vmul.f32 %v7176_v28, %v2614_v27  ;;  %v7685_v28 = vld [vmem:[%s8340_s15] sm:$0x1] }
 0xaad   :  { %v2988_v61 = vpop.permute.xlu1 %2987  ;;  %5541 = vmatpush3.msra.mxu1 %v2990_v21  ;;  %v2986_v24 = vpop.permute.xlu0 %2985  ;;  %v3167_v52 = vrot.slane %v7685_v28, %v6031_v51 }
 0xaae   :  { %2639 = vrot.lane.b32.xlu1 %v7613_v58, %s8416_s3  ;;  %2627 = vrot.lane.b32.xlu0 %v7613_v58, %s8417_s8 }
 0xaaf   :  { %5542 = vmatprep.subr.mxu1 %v2988_v61 }
 0xab0   :  { %5543 = vmatpush3.msra.mxu1 %v2988_v61 }
 0xab1   :  { %v2984_v48 = vpop.permute.xlu1 %2983  ;;  %5544 = vmatprep.subr.mxu1 %v2986_v24  ;;  %v2982_v0 = vpop.permute.xlu0 %2981 }
 0xab2   :  { %2667 = vrot.lane.b32.xlu1 %v7613_v58, %s8421_s9  ;;  %2655 = vrot.lane.b32.xlu0 %v7613_v58, %s8422_s24 }
 0xab3   :  { %5545 = vmatpush3.msra.mxu1 %v2986_v24 }
 0xab4   :  { %5546 = vmatprep.subr.mxu1 %v2984_v48 }
 0xab5   :  { %5547 = vmatpush3.msra.mxu1 %v2984_v48 }
 0xab6   :  { %2695 = vrot.lane.b32.xlu1 %v7613_v58, %s8420_s0  ;;  %2683 = vrot.lane.b32.xlu0 %v7613_v58, %s8415_s30 }
 0xab7   :  { %5548 = vmatprep.subr.mxu1 %v2982_v0 }
 0xab8   :  { %5549 = vmatpush3.msra.mxu1 %v2982_v0 }
 0xaba   :  { %2723 = vrot.lane.b32.xlu1 %v7613_v58, %s8418_s7  ;;  %2711 = vrot.lane.b32.xlu0 %v7613_v58, %s8419_s6 }
 0xabe   :  { %2751 = vrot.lane.b32.xlu1 %v7613_v58, %s8423_s16  ;;  %2739 = vrot.lane.b32.xlu0 %v7613_v58, %s8424_s17 }
 0xac2   :  { %2779 = vrot.lane.b32.xlu1 %v7613_v58, %s8425_s14  ;;  %2767 = vrot.lane.b32.xlu0 %v7613_v58, %s8426_s21 }
 0xac6   :  { %2807 = vrot.lane.b32.xlu1 %v7613_v58, %s8427_s20  ;;  %2795 = vrot.lane.b32.xlu0 %v7613_v58, %s8428_s5 }
 0xaca   :  { %2823 = vrot.lane.b32.xlu1 %v7613_v58, %s8430_s28  ;;  %2835 = vrot.lane.b32.xlu0 %v7613_v58, %s8429_s25 }
 0xace   :  { %2629 = vrot.lane.b32.xlu1 %v7648_v13, %s8417_s8  ;;  %2641 = vrot.lane.b32.xlu0 %v7648_v13, %s8416_s3  ;;  %s5778_s3 = smov 96  }
 0xad2   :  { %2657 = vrot.lane.b32.xlu1 %v7648_v13, %s8422_s24  ;;  %2669 = vrot.lane.b32.xlu0 %v7648_v13, %s8421_s9 }
 0xad6   :  { %2685 = vrot.lane.b32.xlu1 %v7648_v13, %s8415_s30  ;;  %2697 = vrot.lane.b32.xlu0 %v7648_v13, %s8420_s0 }
 0xada   :  { %2713 = vrot.lane.b32.xlu1 %v7648_v13, %s8419_s6  ;;  %2725 = vrot.lane.b32.xlu0 %v7648_v13, %s8418_s7  ;;  %s8431_s6 = sld [smem:[#allocation10_spill]] }
 0xade   :  { %2741 = vrot.lane.b32.xlu1 %v7648_v13, %s8424_s17  ;;  %2753 = vrot.lane.b32.xlu0 %v7648_v13, %s8423_s16 }
 0xae2   :  { %2769 = vrot.lane.b32.xlu1 %v7648_v13, %s8426_s21  ;;  %2781 = vrot.lane.b32.xlu0 %v7648_v13, %s8425_s14 }
 0xae6   :  { %2797 = vrot.lane.b32.xlu1 %v7648_v13, %s8428_s5  ;;  %2809 = vrot.lane.b32.xlu0 %v7648_v13, %s8427_s20 }
 0xaea   :  { %2979 = vrot.lane.b32.xlu1 %v7542_v50, %s8426_s21  ;;  %2825 = vrot.lane.b32.xlu0 %v7648_v13, %s8430_s28 }
 0xaee   :  { %2837 = vrot.lane.b32.xlu1 %v7648_v13, %s8429_s25  ;;  %2977 = vrot.lane.b32.xlu0 %v7552_v14, %s8426_s21 }
 0xaf2   :  { %3168 = vrot.lane.b32.xlu1 %v3167_v52, %s5778_s3 }
 0xb20   :  { %v2628_v50 = vpop.permute.xlu0 %2627  ;;  %v2640_v53 = vpop.permute.xlu1 %2639 }
 0xb21   :  { %v2649_v14 = vsel %vm282_vm15, %v2628_v50, %v2640_v53 }
 0xb22   :  { %v2849_v5 = vmax.f32 %v7613_v58, %v2649_v14  ;;  %v3161_v14 = vld [vmem:[%s8336_s11 + $0x18] sm:$0xff] }
 0xb24   :  { %v2656_v55 = vpop.permute.xlu0 %2655  ;;  %v2668_v23 = vpop.permute.xlu1 %2667 }
 0xb25   :  { %v2677_v31 = vsel %vm1053_vm6, %v2656_v55, %v2668_v23 }
 0xb28   :  { %v2684_v36 = vpop.permute.xlu0 %2683  ;;  %v2696_v37 = vpop.permute.xlu1 %2695 }
 0xb29   :  { %v2705_v16 = vsel %vm324_vm13, %v2684_v36, %v2696_v37 }
 0xb2a   :  { %v2853_v40 = vmax.f32 %v2677_v31, %v2705_v16  ;;  %v3160_v31 = vld [vmem:[%s8336_s11 + $0x10] sm:$0xff] }
 0xb2c   :  { %v2712_v22 = vpop.permute.xlu0 %2711  ;;  %v2724_v43 = vpop.permute.xlu1 %2723  ;;  %v2865_v35 = vmax.f32 %v2849_v5, %v2853_v40  ;;  %v3279_v40 = vld [vmem:[%s8337_s12 + $0x118] sm:$0xf] }
 0xb2d   :  { %v2733_v9 = vsel %vm345_vm4, %v2712_v22, %v2724_v43 }
 0xb30   :  { %v2740_v44 = vpop.permute.xlu0 %2739  ;;  %v2752_v63 = vpop.permute.xlu1 %2751 }
 0xb31   :  { %v2761_v59 = vsel %vm1138_vm8, %v2740_v44, %v2752_v63 }
 0xb32   :  { %v2857_v29 = vmax.f32 %v2733_v9, %v2761_v59  ;;  %v3276_v9 = vld [vmem:[%s8337_s12 + $0x100] sm:$0xf] }
 0xb34   :  { %v2768_v38 = vpop.permute.xlu0 %2767  ;;  %v2780_v39 = vpop.permute.xlu1 %2779 }
 0xb35   :  { %v2789_v17 = vsel %vm1167_vm10, %v2768_v38, %v2780_v39 }
 0xb38   :  { %v2796_v46 = vpop.permute.xlu0 %2795  ;;  %v2808_v2 = vpop.permute.xlu1 %2807 }
 0xb39   :  { %v2817_v4 = vsel %vm1196_vm11, %v2796_v46, %v2808_v2  ;;  %v3278_v46 = vld [vmem:[%s8337_s12 + $0x110] sm:$0xf]  ;;  %v3277_v2 = vld [vmem:[%s8337_s12 + $0x108] sm:$0xf] }
 0xb3a   :  { %v2861_v30 = vmax.f32 %v2789_v17, %v2817_v4  ;;  %5164 = vmatprep.subr.msk.mxu0 %vm93_vm0, %v3277_v2  ;;  %v3283_v17 = vld [vmem:[%s8337_s12 + $0x138] sm:$0xf]  ;;  %v4686_v4 = vld [vmem:[%s8340_s15] sm:$0x3]  ;;  %v4767_v2 = vld [vmem:[%s8431_s6 + $0x268] sm:$0xff] }
 0xb3b   :  { %5165 = vmatpush1.msk.msra.mxu0 %vm93_vm0, %v3276_v9  ;;  %v4695_v5 = vrot.slane %v4686_v4, %v6042_v62  ;;  %v4762_v9 = vld [vmem:[%s8431_s6 + $0x238] sm:$0xff] }
 0xb3c   :  { %v2869_v34 = vmax.f32 %v2857_v29, %v2861_v30  ;;  %v2836_v60 = vpop.permute.xlu0 %2835  ;;  %v2824_v33 = vpop.permute.xlu1 %2823  ;;  %5168 = vmatprep.subr.msk.mxu0 %vm93_vm0, %v3279_v40  ;;  %v4691_v29 = vrot.slane %v4686_v4, %v6031_v51  ;;  %v3282_v30 = vld [vmem:[%s8337_s12 + $0x130] sm:$0xf] }
 0xb3d   :  { %v2845_v11 = vsel %vm1225_vm12, %v2824_v33, %v2836_v60  ;;  %4698 = vrot.lane.b32.xlu1 %v4695_v5, %s5779_s26  ;;  %v3281_v33 = vld [vmem:[%s8337_s12 + $0x128] sm:$0xf]  ;;  %v4761_v4 = vld [vmem:[%s8431_s6 + $0x230] sm:$0xff]  ;;  %v4763_v5 = vld [vmem:[%s8431_s6 + $0x240] sm:$0xff] }
 0xb3e   :  { %v2873_v57 = vmax.f32 %v2865_v35, %v2869_v34  ;;  %4696 = vrot.lane.b32.xlu0 %v4691_v29, %s5779_s26  ;;  %v3287_v34 = vld [vmem:[%s8337_s12 + $0x158] sm:$0xf]  ;;  %v4758_v29 = vld [vmem:[%s8431_s6 + $0x210] sm:$0xff] }
 0xb40   :  { %v2877_v19 = vmax.f32 %v2873_v57, %v2845_v11  ;;  %v2642_v32 = vpop.permute.xlu0 %2641  ;;  %v2630_v20 = vpop.permute.xlu1 %2629  ;;  %v3286_v57 = vld [vmem:[%s8337_s12 + $0x150] sm:$0xf]  ;;  %v3291_v11 = vld [vmem:[%s8337_s12 + $0x178] sm:$0xf] }
 0xb41   :  { %v2650_v0 = vsel %vm282_vm15, %v2630_v20, %v2642_v32  ;;  %v3280_v32 = vld [vmem:[%s8337_s12 + $0x120] sm:$0xf]  ;;  %v3285_v20 = vld [vmem:[%s8337_s12 + $0x148] sm:$0xf] }
 0xb42   :  { %5554 = vmatprep.mubr.msk.f32.mxu1 %vm2887_vm7, %v2877_v19  ;;  %v2850_v50 = vmax.f32 %v7648_v13, %v2650_v0  ;;  %v3162_v13 = vld [vmem:[%s8336_s11 + $0x20] sm:$0xff]  ;;  %v3271_v0 = vld [vmem:[%s8337_s12 + $0xd8] sm:$0xff] }
 0xb44   :  { %v2670_v45 = vpop.permute.xlu0 %2669  ;;  %v2658_v1 = vpop.permute.xlu1 %2657 }
 0xb45   :  { %v2678_v7 = vsel %vm1053_vm6, %v2658_v1, %v2670_v45  ;;  %v3290_v1 = vld [vmem:[%s8337_s12 + $0x170] sm:$0xf] }
 0xb48   :  { %v2698_v47 = vpop.permute.xlu0 %2697  ;;  %v2686_v56 = vpop.permute.xlu1 %2685 }
 0xb49   :  { %v2706_v41 = vsel %vm324_vm13, %v2686_v56, %v2698_v47  ;;  %vm3292_vm13 = vcmask 31744   ;;  %v3263_v47 = vld [vmem:[%s8337_s12 + $0x98] sm:$0xff]  ;;  %v3284_v56 = vld [vmem:[%s8337_s12 + $0x140] sm:$0xf] }
 0xb4a   :  { %v2854_v3 = vmax.f32 %v2678_v7, %v2706_v41  ;;  %v3261_v41 = vld [vmem:[%s8337_s12 + $0x88] sm:$0xff]  ;;  %v3244_v7 = vld [vmem:[%s8337_s12] sm:$0xff] }
 0xb4c   :  { %v2726_v54 = vpop.permute.xlu0 %2725  ;;  %v2714_v25 = vpop.permute.xlu1 %2713  ;;  %v2866_v36 = vmax.f32 %v2850_v50, %v2854_v3  ;;  %v3255_v3 = vld [vmem:[%s8337_s12 + $0x58] sm:$0xff]  ;;  %v3254_v50 = vld [vmem:[%s8337_s12 + $0x50] sm:$0xff] }
 0xb4d   :  { %v2734_v12 = vsel %vm345_vm4, %v2714_v25, %v2726_v54  ;;  %v3289_v54 = vld [vmem:[%s8337_s12 + $0x168] sm:$0xf]  ;;  %v3262_v25 = vld [vmem:[%s8337_s12 + $0x90] sm:$0xff] }
 0xb50   :  { %v2754_v18 = vpop.permute.xlu0 %2753  ;;  %v2742_v10 = vpop.permute.xlu1 %2741 }
 0xb51   :  { %v2762_v42 = vsel %vm1138_vm8, %v2742_v10, %v2754_v18  ;;  %v3247_v18 = vld [vmem:[%s8337_s12 + $0x18] sm:$0xff]  ;;  %v3246_v10 = vld [vmem:[%s8337_s12 + $0x10] sm:$0xff] }
 0xb52   :  { %v2858_v8 = vmax.f32 %v2734_v12, %v2762_v42  ;;  %v3266_v42 = vld [vmem:[%s8337_s12 + $0xb0] sm:$0xff]  ;;  %v3265_v12 = vld [vmem:[%s8337_s12 + $0xa8] sm:$0xff] }
 0xb54   :  { %v2782_v15 = vpop.permute.xlu0 %2781  ;;  %v2770_v21 = vpop.permute.xlu1 %2769 }
 0xb55   :  { %v2790_v24 = vsel %vm1167_vm10, %v2770_v21, %v2782_v15  ;;  %v3288_v15 = vld [vmem:[%s8337_s12 + $0x160] sm:$0xf]  ;;  %v3267_v21 = vld [vmem:[%s8337_s12 + $0xb8] sm:$0xff] }
 0xb58   :  { %v2810_v58 = vpop.permute.xlu0 %2809  ;;  %v2798_v61 = vpop.permute.xlu1 %2797 }
 0xb59   :  { %v2818_v48 = vsel %vm1196_vm11, %v2798_v61, %v2810_v58  ;;  %v3251_v58 = vld [vmem:[%s8337_s12 + $0x38] sm:$0xff]  ;;  %v3260_v61 = vld [vmem:[%s8337_s12 + $0x80] sm:$0xff] }
 0xb5a   :  { %v2862_v26 = vmax.f32 %v2790_v24, %v2818_v48  ;;  %v3245_v24 = vld [vmem:[%s8337_s12 + $0x8] sm:$0xff]  ;;  %v3250_v48 = vld [vmem:[%s8337_s12 + $0x30] sm:$0xff] }
 0xb5c   :  { %v7710_v27 = vpop.f32.mrf.mxu0  ;;  %v2826_v52 = vpop.permute.xlu0 %2825  ;;  %v2870_v53 = vmax.f32 %v2858_v8, %v2862_v26  ;;  %v3270_v26 = vld [vmem:[%s8337_s12 + $0xd0] sm:$0xff]  ;;  %v3264_v8 = vld [vmem:[%s8337_s12 + $0xa0] sm:$0xff] }
 0xb5d   :  { %v2980_v55 = vpop.permute.xlu1 %2979 }
 0xb5e   :  { %v7713_v23 = vpop.f32.mrf.mxu0  ;;  %5550 = vmatprep.subr.mxu1 %v2980_v55  ;;  %v2874_v43 = vmax.f32 %v2866_v36, %v2870_v53  ;;  %v3275_v53 = vld [vmem:[%s8337_s12 + $0xf8] sm:$0xff]  ;;  %v3269_v36 = vld [vmem:[%s8337_s12 + $0xc8] sm:$0xff] }
 0xb5f   :  { %5551 = vmatpush3.msra.mxu1 %v2980_v55  ;;  %v3248_v55 = vld [vmem:[%s8337_s12 + $0x20] sm:$0xff] }
 0xb60   :  { %v2978_v37 = vpop.permute.xlu0 %2977  ;;  %v3154_v22 = vpop.f32.mrf.mxu0 }
 0xb61   :  { %v2838_v44 = vpop.permute.xlu1 %2837  ;;  %5552 = vmatprep.subr.mxu1 %v2978_v37  ;;  %v3155_v16 = vadd.f32 %v3154_v22, %v7685_v28  ;;  %v3159_v28 = vld [vmem:[%s8336_s11 + $0x8] sm:$0xff]  ;;  %v3259_v22 = vld [vmem:[%s8337_s12 + $0x78] sm:$0xff] }
 0xb62   :  { %v2846_v63 = vsel %vm1225_vm12, %v2826_v52, %v2838_v44  ;;  %5553 = vmatpush3.msra.mxu1 %v2978_v37  ;;  %v5561_v38 = vpop.f32.mrf.mxu0  ;;  %v3249_v52 = vld [vmem:[%s8337_s12 + $0x28] sm:$0xff]  ;;  %v3274_v37 = vld [vmem:[%s8337_s12 + $0xf0] sm:$0xff] }
 0xb63   :  { %v2878_v39 = vmax.f32 %v2874_v43, %v2846_v63  ;;  %5562 = vmatprep.subr.mxu1 %v5740_v6  ;;  %v3158_v59 = vmax.f32 %v3155_v16, 0.0  ;;  %v3268_v43 = vld [vmem:[%s8337_s12 + $0xc0] sm:$0xff]  ;;  %v3253_v44 = vld [vmem:[%s8337_s12 + $0x48] sm:$0xff]  ;;  %v3258_v63 = vld [vmem:[%s8337_s12 + $0x70] sm:$0xff] }
 0xb64   :  { %v3252_v38 = vld [vmem:[%s8337_s12 + $0x40] sm:$0xff]  ;;  %v3257_v16 = vld [vmem:[%s8337_s12 + $0x68] sm:$0xff] }
 0xb65   :  { %5555 = vmatmul.mubr.msk.f32.vlgmr.msra.gmra.mxu1 %vm2887_vm7, %v2878_v39  ;;  %v3273_v39 = vld [vmem:[%s8337_s12 + $0xe8] sm:$0xff] }
 0xb66   :  { %5563 = vmatpush3.msra.mxu1 %v3162_v13  ;;  %5570 = vmatprep.mubr.msk.f32.mxu1 %vm5777_vm14, %v5740_v6  ;;  %v3272_v13 = vld [vmem:[%s8337_s12 + $0xe0] sm:$0xff] }
 0xb67   :  { %5564 = vmatprep.subr.mxu1 %v5740_v6 }
 0xb68   :  { %5565 = vmatpush3.msra.mxu1 %v3161_v14  ;;  %v3256_v14 = vld [vmem:[%s8337_s12 + $0x60] sm:$0xff] }
 0xb69   :  { %5566 = vmatprep.subr.mxu1 %v5740_v6 }
 0xb6a   :  { %5567 = vmatpush3.msra.mxu1 %v3160_v31  ;;  %v4611_v31 = vld [vmem:[%s8338_s13 + $0x8] sm:$0xff] }
 0xb6b   :  { %5568 = vmatprep.subr.mxu1 %v5740_v6 }
 0xb6c   :  { %5569 = vmatpush3.msra.mxu1 %v3159_v28  ;;  %v3169_v28 = vpop.permute.xlu1 %3168 }
 0xb6d   :  { %5571 = vmatmul.mubr.msk.f32.vlgmr.msra.gmra.mxu1 %vm1534_vm5, %v3158_v59  ;;  %5615 = vmatprep.subr.msk.mxu1 %vm93_vm0, %v3279_v40  ;;  %v4610_v59 = vld [vmem:[%s8338_s13] sm:$0xff] }
 0xb6e   :  { %3492 = vmatprep.mubr.f32.mxu1 %v5740_v6  ;;  %5616 = vmatpush1.msk.msra.mxu1 %vm93_vm0, %v3278_v46 }
 0xb6f   :  { %5176 = vmatprep.subr.msk.mxu1 %vm93_vm0, %v3283_v17  ;;  %v4764_v17 = vld [vmem:[%s8431_s6 + $0x248] sm:$0xff] }
 0xc25   :  { %v7769_v35 = vpop.f32.mrf.mxu1 }
 0xc26   :  { %5171 = vmatmul.mubr.msk.f32.vlgmr.msra.gmra.mxu1 %vm3292_vm13, %v7769_v35 }
 0xc27   :  { %v7776_v60 = vpop.f32.mrf.mxu1  ;;  %5177 = vmatpush1.msk.msra.mxu1 %vm93_vm0, %v3282_v30  ;;  %3636 = vmatprep.mubr.f32.mxu1 %v5740_v6  ;;  %v4760_v30 = vld [vmem:[%s8431_s6 + $0x220] sm:$0xff] }
 0xc28   :  { %5166 = vmatmul.mubr.msk.f32.vlgmr.msra.gmra.mxu0 %vm3292_vm13, %v7776_v60  ;;  %5184 = vmatprep.subr.msk.mxu1 %vm93_vm0, %v3287_v34  ;;  %v4759_v34 = vld [vmem:[%s8431_s6 + $0x218] sm:$0xff] }
 0xc29   :  { %3417 = vmatprep.mubr.f32.mxu0 %v5740_v6  ;;  %5169 = vmatpush1.msk.msra.mxu0 %vm93_vm0, %v3278_v46  ;;  %v4768_v46 = vld [vmem:[%s8431_s6 + $0x270] sm:$0xff] }
 0xc2a   :  { %5178 = vmatmul.mubr.msk.f32.vlgmr.msra.gmra.mxu1 %vm3292_vm13, %v7776_v60  ;;  %5172 = vmatprep.subr.msk.mxu0 %vm93_vm0, %v3281_v33  ;;  %v4756_v33 = vld [vmem:[%s8431_s6 + $0x1f8] sm:$0xff] }
 0xc2b   :  { %3642 = vmatprep.mubr.f32.mxu1 %v5740_v6  ;;  %5185 = vmatpush1.msk.msra.mxu1 %vm93_vm0, %v3286_v57  ;;  %v4753_v57 = vld [vmem:[%s8431_s6 + $0x1e0] sm:$0xff] }
 0xc2c   :  { %5167 = vmatmul.mubr.msk.f32.gmra.mxu0 %vm3292_vm13, %v7769_v35  ;;  %5192 = vmatprep.subr.msk.mxu1 %vm93_vm0, %v3291_v11  ;;  %v4755_v11 = vld [vmem:[%s8431_s6 + $0x1f0] sm:$0xff] }
 0xc2d   :  { %3486 = vmatprep.mubr.f32.mxu0 %v5740_v6  ;;  %v7803_v19 = vpop.f32.mrf.mxu1 }
 0xc2e   :  { %5179 = vmatmul.mubr.msk.f32.gmra.mxu1 %vm3292_vm13, %v7769_v35  ;;  %v3241_v40 = vadd.f32 %v7803_v19, %v3169_v28  ;;  %v4750_v19 = vld [vmem:[%s8431_s6 + $0x1c0] sm:$0xff]  ;;  %v4709_v28 = vld [vmem:[%s8431_s6 + $0x28] sm:$0xff] }
 0xc2f   :  { %3786 = vmatprep.mubr.f32.mxu1 %v5740_v6  ;;  %v5572_v45 = vpop.f32.mrf.mxu1 }
 0xc30   :  { %5170 = vmatmul.mubr.msk.f32.vlgmr.msra.gmra.mxu0 %vm3292_vm13, %v7776_v60  ;;  %v4751_v45 = vld [vmem:[%s8431_s6 + $0x1c8] sm:$0xff] }
 0xc31   :  { %5173 = vmatpush1.msk.msra.mxu0 %vm93_vm0, %v3280_v32  ;;  %3561 = vmatprep.mubr.f32.mxu0 %v5740_v6  ;;  %v4752_v32 = vld [vmem:[%s8431_s6 + $0x1d0] sm:$0xff] }
 0xc32   :  { %5186 = vmatmul.mubr.msk.f32.vlgmr.msra.gmra.mxu1 %vm3292_vm13, %v7776_v60  ;;  %5180 = vmatprep.subr.msk.mxu0 %vm93_vm0, %v3285_v20  ;;  %v4749_v20 = vld [vmem:[%s8431_s6 + $0x1b8] sm:$0xff] }
 0xc33   :  { %3790 = vmatprep.mubr.f32.mxu1 %v5740_v6  ;;  %5193 = vmatpush1.msk.msra.mxu1 %vm93_vm0, %v3290_v1  ;;  %v4746_v1 = vld [vmem:[%s8431_s6 + $0x198] sm:$0xff] }
 0xc34   :  { %5174 = vmatmul.mubr.msk.f32.vlgmr.msra.gmra.mxu0 %vm3292_vm13, %v7776_v60  ;;  %4056 = vmatprep.subr.mxu1 %v3263_v47  ;;  %v4748_v47 = vld [vmem:[%s8431_s6 + $0x1a8] sm:$0xff] }
 0xc35   :  { %3567 = vmatprep.mubr.f32.mxu0 %v5740_v6  ;;  %5181 = vmatpush1.msk.msra.mxu0 %vm93_vm0, %v3284_v56  ;;  %v4745_v56 = vld [vmem:[%s8431_s6 + $0x190] sm:$0xff] }
 0xc36   :  { %5187 = vmatmul.mubr.msk.f32.gmra.mxu1 %vm3292_vm13, %v7769_v35  ;;  %5188 = vmatprep.subr.msk.mxu0 %vm93_vm0, %v3289_v54  ;;  %v4747_v54 = vld [vmem:[%s8431_s6 + $0x1a0] sm:$0xff] }
 0xc37   :  { %3936 = vmatprep.mubr.f32.mxu1 %v5740_v6 }
 0xc38   :  { %5175 = vmatmul.mubr.msk.f32.gmra.mxu0 %vm3292_vm13, %v7769_v35 }
 0xc39   :  { %3711 = vmatprep.mubr.f32.mxu0 %v5740_v6 }
 0xc3a   :  { %5194 = vmatmul.mubr.msk.f32.vlgmr.msra.gmra.mxu1 %vm3292_vm13, %v7776_v60 }
 0xc3b   :  { %3940 = vmatprep.mubr.f32.mxu1 %v5740_v6  ;;  %4057 = vmatpush1.msra.mxu1 %v3262_v25  ;;  %v4742_v25 = vld [vmem:[%s8431_s6 + $0x170] sm:$0xff] }
 0xc3c   :  { %5182 = vmatmul.mubr.msk.f32.vlgmr.msra.gmra.mxu0 %vm3292_vm13, %v7776_v60  ;;  %4058 = vmatprep.subr.mxu1 %v3247_v18  ;;  %v4744_v18 = vld [vmem:[%s8431_s6 + $0x180] sm:$0xff] }
 0xc3d   :  { %3715 = vmatprep.mubr.f32.mxu0 %v5740_v6  ;;  %4059 = vmatpush1.msra.mxu1 %v3246_v10  ;;  %v4741_v10 = vld [vmem:[%s8431_s6 + $0x168] sm:$0xff] }
 0xc3e   :  { %5195 = vmatmul.mubr.msk.f32.gmra.mxu1 %vm3292_vm13, %v7769_v35  ;;  %5189 = vmatpush1.msk.msra.mxu0 %vm93_vm0, %v3288_v15  ;;  %v4743_v15 = vld [vmem:[%s8431_s6 + $0x178] sm:$0xff]  ;;  %vm4700_vm0 = vcmask 654336  }
 0xc3f   :  { %4092 = vmatprep.mubr.f32.mxu1 %v5740_v6  ;;  %4206 = vmatprep.subr.mxu1 %v3267_v21  ;;  %v4738_v21 = vld [vmem:[%s8431_s6 + $0x148] sm:$0xff] }
 0xc40   :  { %5183 = vmatmul.mubr.msk.f32.gmra.mxu0 %vm3292_vm13, %v7769_v35  ;;  %3981 = vmatprep.subr.mxu0 %v3261_v41  ;;  %v4740_v41 = vld [vmem:[%s8431_s6 + $0x158] sm:$0xff] }
 0xc41   :  { %3861 = vmatprep.mubr.f32.mxu0 %v5740_v6 }
 0xc42   :  { %5198 = vmatmul.mubr.msk.f32.vlgmr.msra.gmra.mxu1 %vm379_vm9, %v7713_v23 }
 0xc43   :  { %4098 = vmatprep.mubr.f32.mxu1 %v5740_v6  ;;  %4207 = vmatpush1.msra.mxu1 %v3266_v42  ;;  %v4737_v42 = vld [vmem:[%s8431_s6 + $0x140] sm:$0xff] }
 0xc44   :  { %5190 = vmatmul.mubr.msk.f32.vlgmr.msra.gmra.mxu0 %vm3292_vm13, %v7776_v60  ;;  %4208 = vmatprep.subr.mxu1 %v3251_v58  ;;  %v4754_v60 = vld [vmem:[%s8431_s6 + $0x1e8] sm:$0xff]  ;;  %v4739_v58 = vld [vmem:[%s8431_s6 + $0x150] sm:$0xff] }
 0xc45   :  { %3865 = vmatprep.mubr.f32.mxu0 %v5740_v6  ;;  %3982 = vmatpush1.msra.mxu0 %v3260_v61  ;;  %v4734_v61 = vld [vmem:[%s8431_s6 + $0x120] sm:$0xff] }
 0xc46   :  { %5199 = vmatmul.mubr.msk.f32.gmra.mxu1 %vm379_vm9, %v7710_v27  ;;  %3983 = vmatprep.subr.mxu0 %v3245_v24  ;;  %v4736_v24 = vld [vmem:[%s8431_s6 + $0x130] sm:$0xff] }
 0xc47   :  { %4209 = vmatpush1.msra.mxu1 %v3250_v48  ;;  %4242 = vmatprep.mubr.f32.mxu1 %v5740_v6  ;;  %v4733_v48 = vld [vmem:[%s8431_s6 + $0x118] sm:$0xff] }
 0xc48   :  { %5191 = vmatmul.mubr.msk.f32.gmra.mxu0 %vm3292_vm13, %v7769_v35  ;;  %4356 = vmatprep.subr.mxu1 %v3271_v0  ;;  %v4757_v35 = vld [vmem:[%s8431_s6 + $0x208] sm:$0xff] }
 0xc49   :  { %3984 = vmatpush1.msra.mxu0 %v3244_v7  ;;  %4017 = vmatprep.mubr.f32.mxu0 %v5740_v6  ;;  %v4735_v0 = vld [vmem:[%s8431_s6 + $0x128] sm:$0xff]  ;;  %v4730_v7 = vld [vmem:[%s8431_s6 + $0xf8] sm:$0xff] }
 0xc4a   :  { %5202 = vmatmul.mubr.msk.f32.vlgmr.msra.gmra.mxu1 %vm379_vm9, %v7713_v23  ;;  %4131 = vmatprep.subr.mxu0 %v3265_v12  ;;  %v4732_v12 = vld [vmem:[%s8431_s6 + $0x108] sm:$0xff] }
 0xc4b   :  { %4248 = vmatprep.mubr.f32.mxu1 %v5740_v6  ;;  %4357 = vmatpush1.msra.mxu1 %v3270_v26  ;;  %v4729_v26 = vld [vmem:[%s8431_s6 + $0xf0] sm:$0xff] }
 0xc4c   :  { %5196 = vmatmul.mubr.msk.f32.vlgmr.msra.gmra.mxu0 %vm379_vm9, %v7713_v23  ;;  %4358 = vmatprep.subr.mxu1 %v3255_v3  ;;  %v4731_v3 = vld [vmem:[%s8431_s6 + $0x100] sm:$0xff] }
 0xc4d   :  { %4023 = vmatprep.mubr.f32.mxu0 %v5740_v6  ;;  %4132 = vmatpush1.msra.mxu0 %v3264_v8  ;;  %v4726_v8 = vld [vmem:[%s8431_s6 + $0xd0] sm:$0xff] }
 0xc4e   :  { %5203 = vmatmul.mubr.msk.f32.gmra.mxu1 %vm379_vm9, %v7710_v27  ;;  %4133 = vmatprep.subr.mxu0 %v3249_v52  ;;  %v4728_v52 = vld [vmem:[%s8431_s6 + $0xe0] sm:$0xff] }
 0xc4f   :  { %4359 = vmatpush1.msra.mxu1 %v3254_v50  ;;  %4392 = vmatprep.mubr.f32.mxu1 %v5740_v6  ;;  %v4725_v50 = vld [vmem:[%s8431_s6 + $0xc8] sm:$0xff] }
 0xc50   :  { %5197 = vmatmul.mubr.msk.f32.gmra.mxu0 %vm379_vm9, %v7710_v27  ;;  %4506 = vmatprep.subr.mxu1 %v3275_v53  ;;  %v4727_v53 = vld [vmem:[%s8431_s6 + $0xd8] sm:$0xff] }
 0xc51   :  { %4134 = vmatpush1.msra.mxu0 %v3248_v55  ;;  %4167 = vmatprep.mubr.f32.mxu0 %v5740_v6  ;;  %v4722_v55 = vld [vmem:[%s8431_s6 + $0xa8] sm:$0xff] }
 0xc52   :  { %5206 = vmatmul.mubr.msk.f32.vlgmr.msra.gmra.mxu1 %vm379_vm9, %v7713_v23  ;;  %4281 = vmatprep.subr.mxu0 %v3269_v36  ;;  %v4724_v36 = vld [vmem:[%s8431_s6 + $0xb8] sm:$0xff] }
 0xc53   :  { %4396 = vmatprep.mubr.f32.mxu1 %v5740_v6  ;;  %4507 = vmatpush1.msra.mxu1 %v3274_v37  ;;  %v4721_v37 = vld [vmem:[%s8431_s6 + $0xa0] sm:$0xff] }
 0xc54   :  { %5200 = vmatmul.mubr.msk.f32.vlgmr.msra.gmra.mxu0 %vm379_vm9, %v7713_v23  ;;  %4508 = vmatprep.subr.mxu1 %v3259_v22  ;;  %v4723_v22 = vld [vmem:[%s8431_s6 + $0xb0] sm:$0xff] }
 0xc55   :  { %4173 = vmatprep.mubr.f32.mxu0 %v5740_v6  ;;  %4282 = vmatpush1.msra.mxu0 %v3268_v43  ;;  %v4718_v43 = vld [vmem:[%s8431_s6 + $0x80] sm:$0xff] }
 0xc56   :  { %5207 = vmatmul.mubr.msk.f32.gmra.mxu1 %vm379_vm9, %v7710_v27  ;;  %4283 = vmatprep.subr.mxu0 %v3253_v44  ;;  %v4720_v44 = vld [vmem:[%s8431_s6 + $0x90] sm:$0xff] }
 0xc57   :  { %4509 = vmatpush1.msra.mxu1 %v3258_v63  ;;  %4542 = vmatprep.mubr.f32.mxu1 %v5740_v6  ;;  %v4717_v63 = vld [vmem:[%s8431_s6 + $0x78] sm:$0xff] }
 0xc58   :  { %5201 = vmatmul.mubr.msk.f32.gmra.mxu0 %vm379_vm9, %v7710_v27 }
 0xc59   :  { %4284 = vmatpush1.msra.mxu0 %v3252_v38  ;;  %4317 = vmatprep.mubr.f32.mxu0 %v5740_v6  ;;  %v4719_v38 = vld [vmem:[%s8431_s6 + $0x88] sm:$0xff] }
 0xc5a   :  { %5210 = vmatmul.mubr.msk.f32.vlgmr.msra.gmra.mxu1 %vm379_vm9, %v7713_v23  ;;  %4431 = vmatprep.subr.mxu0 %v3273_v39  ;;  %v4714_v39 = vld [vmem:[%s8431_s6 + $0x58] sm:$0xff] }
 0xc5b   :  { %4546 = vmatprep.mubr.f32.mxu1 %v5740_v6 }
 0xc5c   :  { %5204 = vmatmul.mubr.msk.f32.vlgmr.msra.gmra.mxu0 %vm379_vm9, %v7713_v23 }
 0xc5d   :  { %4321 = vmatprep.mubr.f32.mxu0 %v5740_v6  ;;  %4432 = vmatpush1.msra.mxu0 %v3272_v13  ;;  %v4716_v13 = vld [vmem:[%s8431_s6 + $0x68] sm:$0xff] }
 0xc5e   :  { %5211 = vmatmul.mubr.msk.f32.gmra.mxu1 %vm379_vm9, %v7710_v27  ;;  %4433 = vmatprep.subr.mxu0 %v3257_v16  ;;  %v4713_v16 = vld [vmem:[%s8431_s6 + $0x50] sm:$0xff] }
 0xc5f   :  { %4434 = vmatpush1.msra.mxu0 %v3256_v14  ;;  %4871 = vmatprep.mubr.f32.mxu1 %v5740_v6  ;;  %v4715_v14 = vld [vmem:[%s8431_s6 + $0x60] sm:$0xff] }
 0xc60   :  { %5205 = vmatmul.mubr.msk.f32.gmra.mxu0 %vm379_vm9, %v7710_v27  ;;  %5573 = vmatprep.subr.mxu0 %v5740_v6 }
 0xc61   :  { %4467 = vmatprep.mubr.f32.mxu0 %v5740_v6 }
 0xc64   :  { %5208 = vmatmul.mubr.msk.f32.vlgmr.msra.gmra.mxu0 %vm379_vm9, %v7713_v23  ;;  %v4766_v23 = vld [vmem:[%s8431_s6 + $0x260] sm:$0xff] }
 0xc65   :  { %4471 = vmatprep.mubr.f32.mxu0 %v5740_v6  ;;  %5574 = vmatpush3.msra.mxu0 %v4611_v31  ;;  %v4710_v31 = vld [vmem:[%s8431_s6 + $0x30] sm:$0xff] }
 0xc66   :  { %5575 = vmatprep.subr.mxu0 %v5740_v6  ;;  %4807 = vmatprep.subr.mxu1 %v4766_v23  ;;  %v4706_v23 = vld [vmem:[%s8431_s6 + $0x8] sm:$0xff] }
 0xc67   :  { %5576 = vmatpush3.msra.mxu0 %v4610_v59  ;;  %v4712_v59 = vld [vmem:[%s8431_s6 + $0x40] sm:$0xff] }
 0xc68   :  { %5209 = vmatmul.mubr.msk.f32.gmra.mxu0 %vm379_vm9, %v7710_v27  ;;  %4877 = vmatprep.subr.mxu0 %v4768_v46  ;;  %v4765_v27 = vld [vmem:[%s8431_s6 + $0x258] sm:$0xff] }
 0xc69   :  { %5577 = vmatprep.mubr.msk.f32.mxu0 %vm5777_vm14, %v5740_v6  ;;  %4808 = vmatpush1.msra.mxu1 %v4765_v27  ;;  %v4708_v46 = vld [vmem:[%s8431_s6 + $0x18] sm:$0xff]  ;;  %v4705_v27 = vld [vmem:[%s8431_s6] sm:$0xff] }
 0xc6a   :  { %4809 = vmatprep.subr.mxu1 %v4762_v9  ;;  %v4769_v9 = vld [vmem:[%s8340_s15 + $0x1] sm:$0x1f] }
 0xc6b   :  { %4810 = vmatpush1.msra.mxu1 %v4761_v4  ;;  %v4789_v4 = vsub.s32 4, %v6026_v49 }
 0xc6c   :  { %5578 = vmatmul.mubr.msk.f32.vlgmr.msra.gmra.mxu0 %vm379_vm9, %v3241_v40  ;;  %4811 = vmatprep.subr.mxu1 %v4758_v29  ;;  %v4711_v40 = vld [vmem:[%s8431_s6 + $0x38] sm:$0xff]  ;;  %v4778_v29 = vrot.slane %v4769_v9, %v6042_v62  ;;  %vm5059_vm9 = vcmask 40960  }
 0xc6d   :  { %4941 = vmatprep.mubr.f32.mxu0 %v5740_v6  ;;  %4878 = vmatpush1.msra.mxu0 %v4767_v2  ;;  %v4707_v2 = vld [vmem:[%s8431_s6 + $0x10] sm:$0xff] }
 0xc6e   :  { %4879 = vmatprep.subr.mxu0 %v4764_v17  ;;  %4812 = vmatpush1.msra.mxu1 %v4757_v35  ;;  %v4785_v17 = vsub.s32 3, %v6026_v49  ;;  %v4781_v35 = vsub.s32 2, %v6026_v49 }
 0xc6f   :  { %4880 = vmatpush1.msra.mxu0 %v4763_v5  ;;  %4813 = vmatprep.subr.mxu1 %v4754_v60  ;;  %v4774_v5 = vrot.slane %v4769_v9, %v6031_v51 }
 0xc70   :  { %4881 = vmatprep.subr.mxu0 %v4760_v30  ;;  %4814 = vmatpush1.msra.mxu1 %v4753_v57  ;;  %v4786_v30 = vrot.slane %v4769_v9, %v4785_v17  ;;  %v4782_v60 = vrot.slane %v4769_v9, %v4781_v35 }
 0xc71   :  { %4882 = vmatpush1.msra.mxu0 %v4759_v34  ;;  %4815 = vmatprep.subr.mxu1 %v4750_v19  ;;  %v4790_v34 = vrot.slane %v4769_v9, %v4789_v4 }
 0xc72   :  { %4883 = vmatprep.subr.mxu0 %v4756_v33  ;;  %4816 = vmatpush1.msra.mxu1 %v4749_v20 }
 0xc73   :  { %4884 = vmatpush1.msra.mxu0 %v4755_v11  ;;  %4817 = vmatprep.subr.mxu1 %v4746_v1 }
 0xc74   :  { %4885 = vmatprep.subr.mxu0 %v4752_v32  ;;  %4818 = vmatpush1.msra.mxu1 %v4745_v56 }
 0xc75   :  { %4886 = vmatpush1.msra.mxu0 %v4751_v45  ;;  %4819 = vmatprep.subr.mxu1 %v4742_v25 }
 0xc76   :  { %4887 = vmatprep.subr.mxu0 %v4748_v47  ;;  %4820 = vmatpush1.msra.mxu1 %v4741_v10 }
 0xc77   :  { %4888 = vmatpush1.msra.mxu0 %v4747_v54  ;;  %4821 = vmatprep.subr.mxu1 %v4738_v21 }
 0xc78   :  { %4889 = vmatprep.subr.mxu0 %v4744_v18  ;;  %4822 = vmatpush1.msra.mxu1 %v4737_v42 }
 0xc79   :  { %4890 = vmatpush1.msra.mxu0 %v4743_v15  ;;  %4823 = vmatprep.subr.mxu1 %v4734_v61 }
 0xc7a   :  { %4891 = vmatprep.subr.mxu0 %v4740_v41  ;;  %4824 = vmatpush1.msra.mxu1 %v4733_v48 }
 0xc7b   :  { %4892 = vmatpush1.msra.mxu0 %v4739_v58  ;;  %4825 = vmatprep.subr.mxu1 %v4730_v7 }
 0xc7c   :  { %4893 = vmatprep.subr.mxu0 %v4736_v24  ;;  %4826 = vmatpush1.msra.mxu1 %v4729_v26 }
 0xc7d   :  { %4894 = vmatpush1.msra.mxu0 %v4735_v0  ;;  %4827 = vmatprep.subr.mxu1 %v4726_v8 }
 0xc7e   :  { %4895 = vmatprep.subr.mxu0 %v4732_v12  ;;  %4828 = vmatpush1.msra.mxu1 %v4725_v50 }
 0xc7f   :  { %4896 = vmatpush1.msra.mxu0 %v4731_v3  ;;  %4829 = vmatprep.subr.mxu1 %v4722_v55 }
 0xc80   :  { %4897 = vmatprep.subr.mxu0 %v4728_v52  ;;  %4830 = vmatpush1.msra.mxu1 %v4721_v37 }
 0xc81   :  { %4898 = vmatpush1.msra.mxu0 %v4727_v53  ;;  %4831 = vmatprep.subr.mxu1 %v4718_v43 }
 0xc82   :  { %4899 = vmatprep.subr.mxu0 %v4724_v36  ;;  %4832 = vmatpush1.msra.mxu1 %v4717_v63 }
 0xc83   :  { %4900 = vmatpush1.msra.mxu0 %v4723_v22  ;;  %4833 = vmatprep.subr.mxu1 %v4714_v39 }
 0xc84   :  { %4901 = vmatprep.subr.mxu0 %v4720_v44  ;;  %4834 = vmatpush1.msra.mxu1 %v4713_v16 }
 0xc85   :  { %4902 = vmatpush1.msra.mxu0 %v4719_v38  ;;  %4835 = vmatprep.subr.mxu1 %v4710_v31 }
 0xc86   :  { %4903 = vmatprep.subr.mxu0 %v4716_v13  ;;  %4836 = vmatpush1.msra.mxu1 %v4709_v28 }
 0xc87   :  { %4904 = vmatpush1.msra.mxu0 %v4715_v14  ;;  %4837 = vmatprep.subr.mxu1 %v4706_v23 }
 0xc88   :  { %4905 = vmatprep.subr.mxu0 %v4712_v59  ;;  %4838 = vmatpush1.msra.mxu1 %v4705_v27 }
 0xc89   :  { %4906 = vmatpush1.msra.mxu0 %v4711_v40  ;;  %5580 = vmatprep.subr.mxu1 %v5740_v6 }
 0xc8a   :  { %4907 = vmatprep.subr.mxu0 %v4708_v46  ;;  %4791 = vrot.lane.b32.xlu0 %v4774_v5, %s5779_s26 }
 0xc8b   :  { %4908 = vmatpush1.msra.mxu0 %v4707_v2  ;;  %4793 = vrot.lane.b32.xlu1 %v4778_v29, %s5779_s26 }
 0xc8e   :  { %4797 = vrot.lane.b32.xlu0 %v4786_v30, %s5779_s26 }
 0xc8f   :  { %4799 = vrot.lane.b32.xlu1 %v4790_v34, %s5779_s26 }
 0xc92   :  { %4795 = vrot.lane.b32.xlu0 %v4782_v60, %s5779_s26 }
 0xce6   :  { %v3494_v33 = vpop.f32.mrf.mxu1 }
 0xce8   :  { %v3413_v57 = vpop.f32.mrf.mxu0  ;;  %v3495_v51 = vpop.f32.mrf.mxu1 }
 0xcea   :  { %v3415_v11 = vpop.f32.mrf.mxu0  ;;  %v3638_v62 = vpop.f32.mrf.mxu1 }
 0xcec   :  { %v3419_v19 = vpop.f32.mrf.mxu0  ;;  %v3640_v32 = vpop.f32.mrf.mxu1 }
 0xcee   :  { %v3420_v20 = vpop.f32.mrf.mxu0  ;;  %v3644_v45 = vpop.f32.mrf.mxu1 }
 0xcf0   :  { %v3488_v1 = vpop.f32.mrf.mxu0  ;;  %v3645_v47 = vpop.f32.mrf.mxu1 }
 0xcf2   :  { %v3490_v49 = vpop.f32.mrf.mxu0  ;;  %v3788_v56 = vpop.f32.mrf.mxu1 }
 0xcf4   :  { %v3563_v54 = vpop.f32.mrf.mxu0  ;;  %v3789_v25 = vpop.f32.mrf.mxu1 }
 0xcf6   :  { %v3565_v18 = vpop.f32.mrf.mxu0  ;;  %v8227_v10 = vpop.f32.mrf.mxu1 }
 0xcf8   :  { %v3569_v15 = vpop.f32.mrf.mxu0  ;;  %v8229_v21 = vpop.f32.mrf.mxu1 }
 0xcfa   :  { %v3570_v41 = vpop.f32.mrf.mxu0  ;;  %v3938_v42 = vpop.f32.mrf.mxu1 }
 0xcfc   :  { %v3713_v58 = vpop.f32.mrf.mxu0  ;;  %v3939_v61 = vpop.f32.mrf.mxu1 }
 0xcfe   :  { %v3714_v24 = vpop.f32.mrf.mxu0  ;;  %v8231_v48 = vpop.f32.mrf.mxu1 }
 0xd00   :  { %v8233_v0 = vpop.f32.mrf.mxu0  ;;  %v3944_v7 = vpop.f32.mrf.mxu1 }
 0xd02   :  { %v3719_v12 = vpop.f32.mrf.mxu0  ;;  %v4094_v26 = vpop.f32.mrf.mxu1 }
 0xd03   :  { %v4095_v29 = vadd.f32 %v4094_v26, %v3488_v1 }
 0xd04   :  { %v3863_v3 = vpop.f32.mrf.mxu0  ;;  %v4096_v8 = vpop.f32.mrf.mxu1 }
 0xd05   :  { %v4097_v14 = vadd.f32 %v4096_v8, %v3490_v49 }
 0xd06   :  { %v3864_v52 = vpop.f32.mrf.mxu0  ;;  %v4100_v50 = vpop.f32.mrf.mxu1 }
 0xd07   :  { %v4558_v9 = vrot.slane %v4097_v14, 1 }
 0xd08   :  { %v8235_v53 = vpop.f32.mrf.mxu0  ;;  %v4101_v55 = vpop.f32.mrf.mxu1 }
 0xd09   :  { %v4560_v33 = vadd.f32 %v4558_v9, %v4095_v29  ;;  %v4975_v29 = vld [vmem:[%s8431_s6 + $0x1d8] sm:$0xff] }
 0xd0a   :  { %v3869_v36 = vpop.f32.mrf.mxu0  ;;  %v4244_v37 = vpop.f32.mrf.mxu1 }
 0xd0b   :  { %v4245_v17 = vadd.f32 %v4244_v37, %v3638_v62  ;;  %v4586_v49 = vrot.slane %v4560_v33, 2  ;;  %v4970_v33 = vld [vmem:[%s8431_s6 + $0x110] sm:$0xff] }
 0xd0c   :  { %v4019_v22 = vpop.f32.mrf.mxu0  ;;  %v4246_v43 = vpop.f32.mrf.mxu1 }
 0xd0d   :  { %v4247_v38 = vadd.f32 %v4246_v43, %v3640_v32  ;;  %v4020_v31 = vadd.f32 %v4019_v22, %v3413_v57 }
 0xd0e   :  { %v4021_v44 = vpop.f32.mrf.mxu0  ;;  %v4250_v63 = vpop.f32.mrf.mxu1 }
 0xd0f   :  { %v4022_v39 = vadd.f32 %v4021_v44, %v3415_v11  ;;  %v4566_v23 = vrot.slane %v4247_v38, 1 }
 0xd10   :  { %v4025_v13 = vpop.f32.mrf.mxu0  ;;  %v4251_v16 = vpop.f32.mrf.mxu1 }
 0xd11   :  { %v4554_v59 = vrot.slane %v4022_v39, 1  ;;  %v4568_v30 = vadd.f32 %v4566_v23, %v4245_v17  ;;  %v4978_v17 = vld [vmem:[%s8431_s6 + $0x250] sm:$0xff] }
 0xd12   :  { %v4026_v28 = vpop.f32.mrf.mxu0  ;;  %v4394_v40 = vpop.f32.mrf.mxu1 }
 0xd13   :  { %v4556_v46 = vadd.f32 %v4554_v59, %v4020_v31  ;;  %v4590_v32 = vrot.slane %v4568_v30, 2  ;;  %v4974_v30 = vld [vmem:[%s8431_s6 + $0x1b0] sm:$0xff] }
 0xd14   :  { %v4169_v27 = vpop.f32.mrf.mxu0  ;;  %v4395_v2 = vpop.f32.mrf.mxu1 }
 0xd15   :  { %v4170_v51 = vadd.f32 %v4169_v27, %v3563_v54  ;;  %v4588_v15 = vadd.f32 %v4586_v49, %v4556_v46  ;;  %v4699_v46 = vpop.permute.xlu1 %4698 }
 0xd16   :  { %v4171_v4 = vpop.f32.mrf.mxu0  ;;  %v4398_v5 = vpop.f32.mrf.mxu1 }
 0xd17   :  { %v4172_v35 = vadd.f32 %v4171_v4, %v3565_v18  ;;  %v4399_v22 = vadd.f32 %v4398_v5, %v8227_v10  ;;  %v4697_v10 = vpop.permute.xlu0 %4696  ;;  %v4977_v4 = vld [vmem:[%s8431_s6 + $0x228] sm:$0xff]  ;;  %v4976_v5 = vld [vmem:[%s8431_s6 + $0x200] sm:$0xff] }
 0xd18   :  { %v4175_v34 = vpop.f32.mrf.mxu0  ;;  %v4400_v60 = vpop.f32.mrf.mxu1  ;;  %v4701_v27 = vsel %vm4700_vm0, %v4697_v10, %v4699_v46 }
 0xd19   :  { %v4562_v11 = vrot.slane %v4172_v35, 1  ;;  %v4401_v54 = vadd.f32 %v4400_v60, %v8229_v21  ;;  %v4973_v35 = vld [vmem:[%s8431_s6 + $0x188] sm:$0xff]  ;;  %v4972_v34 = vld [vmem:[%s8431_s6 + $0x160] sm:$0xff]  ;;  %v4971_v60 = vld [vmem:[%s8431_s6 + $0x138] sm:$0xff] }
 0xd1a   :  { %v4176_v57 = vpop.f32.mrf.mxu0  ;;  %v4544_v19 = vpop.f32.mrf.mxu1 }
 0xd1b   :  { %v4564_v20 = vadd.f32 %v4562_v11, %v4170_v51  ;;  %v4574_v50 = vrot.slane %v4401_v54, 1  ;;  %v4969_v51 = vld [vmem:[%s8431_s6 + $0xe8] sm:$0xff]  ;;  %v4968_v11 = vld [vmem:[%s8431_s6 + $0xc0] sm:$0xff]  ;;  %v4967_v57 = vld [vmem:[%s8431_s6 + $0x98] sm:$0xff]  ;;  %v4792_v49 = vpop.permute.xlu0 %4791 }
 0xd1c   :  { %v4319_v45 = vpop.f32.mrf.mxu0  ;;  %v4545_v47 = vpop.f32.mrf.mxu1  ;;  %v4966_v19 = vld [vmem:[%s8431_s6 + $0x70] sm:$0xff] }
 0xd1d   :  { %v4592_v56 = vadd.f32 %v4590_v32, %v4564_v20  ;;  %v4576_v39 = vadd.f32 %v4574_v50, %v4399_v22  ;;  %v4965_v32 = vld [vmem:[%s8431_s6 + $0x48] sm:$0xff]  ;;  %v4964_v20 = vld [vmem:[%s8431_s6 + $0x20] sm:$0xff]  ;;  %v4794_v47 = vpop.permute.xlu1 %4793 }
 0xd1e   :  { %v4320_v25 = vpop.f32.mrf.mxu0  ;;  %v4548_v62 = vpop.f32.mrf.mxu1  ;;  %v5215_v45 = vld [vmem:[%s8340_s15 + $0x5] ss:$0 sm:$0xff]  ;;  %s5780_s15 = smov [#allocation4]  }
 0xd1f   :  { %v4602_v41 = vrot.slane %v4592_v56, 4  ;;  %v4549_v55 = vadd.f32 %v4548_v62, %v8231_v48  ;;  %v4594_v59 = vrot.slane %v4576_v39, 2  ;;  %4986 = vrot.lane.b32.xlu1 %v5215_v45, %s5779_s26  ;;  %v4801_v56 = vsel %vm4700_vm0, %v4792_v49, %v4794_v47  ;;  %s5089_s26 = sshll.u32 %s5780_s15, 4  ;;  %s5090_s26 = int_to_ptr.vmem [resolvable:$true] %s5089_s26 }
 0xd20   :  { %v4323_v1 = vpop.f32.mrf.mxu0  ;;  %v4550_v42 = vpop.f32.mrf.mxu1  ;;  %s5699_s30 = scalar_lea.vmem %s5090_s26, 32  ;;  %p5700_p1 = scmp.lt.s32.totalorder %s5090_s26, %s5090_s26 }
 0xd21   :  { %v4604_v18 = vadd.f32 %v4602_v41, %v4588_v15  ;;  %v4551_v61 = vadd.f32 %v4550_v42, %v3944_v7  ;;  %v4324_v7 = vadd.f32 %v4323_v1, %v8233_v0  ;;  %v4800_v41 = vpop.permute.xlu1 %4799 }
 0xd22   :  { %v4325_v58 = vpop.f32.mrf.mxu0 }
 0xd23   :  { %v4582_v3 = vrot.slane %v4551_v61, 1  ;;  %v4326_v8 = vadd.f32 %v4325_v58, %v3719_v12 }
 0xd24   :  { %v4469_v24 = vpop.f32.mrf.mxu0 }
 0xd25   :  { %v4584_v43 = vadd.f32 %v4582_v3, %v4549_v55  ;;  %v4570_v44 = vrot.slane %v4326_v8, 1 }
 0xd26   :  { %v4470_v26 = vpop.f32.mrf.mxu0 }
 0xd27   :  { %v4598_v14 = vrot.slane %v4584_v43, 2  ;;  %v4572_v12 = vadd.f32 %v4570_v44, %v4324_v7 }
 0xd28   :  { %v4473_v52 = vpop.f32.mrf.mxu0 }
 0xd29   :  { %v4474_v13 = vadd.f32 %v4473_v52, %v8235_v53  ;;  %v4596_v48 = vadd.f32 %v4594_v59, %v4572_v12  ;;  %v4979_v53 = vld [vmem:[%s8431_s6 + $0x278] sm:$0xff]  ;;  %s5695_s6 = scalar_lea.vmem %s5090_s26, 16 }
 0xd2a   :  { %v4475_v37 = vpop.f32.mrf.mxu0  ;;  %p5696_p0 = scmp.ne.s32.totalorder %s5090_s26, %s5695_s6  ;;  %p5701_p2 = scmp.lt.s32.totalorder %s5699_s30, %s5695_s6 }
 0xd2b   :  { %v4476_v63 = vadd.f32 %v4475_v37, %v3869_v36 }
 0xd2c   :  { %v4681_v38 = vpop.f32.mrf.mxu0  ;;  %p5702_p3 = por %p5701_p2, %p5700_p1 }
 0xd2d   :  { %v4578_v21 = vrot.slane %v4476_v63, 1 }
 0xd2e   :  { %v5579_v16 = vpop.f32.mrf.mxu0  ;;  %p5703_p4 = pnand %p5702_p3, %p5696_p0 }
 0xd2f   :  { %v4580_v31 = vadd.f32 %v4578_v21, %v4474_v13 }
 0xd31   :  { %v4600_v28 = vadd.f32 %v4598_v14, %v4580_v31 }
 0xd33   :  { %v4606_v40 = vrot.slane %v4600_v28, 4 }
 0xd35   :  { %v4608_v23 = vadd.f32 %v4606_v40, %v4596_v48 }
 0xd37   :  { %v4609_v36 = vadd.f32 %v4608_v23, %v4604_v18  ;;  %v4798_v18 = vpop.permute.xlu0 %4797 }
 0xd39   :  { %v4685_v2 = vadd.f32 %v4681_v38, %v4609_v36 }
 0xd3b   :  { %v4703_v0 = vadd.f32 %v4701_v27, %v4685_v2  ;;  %v4796_v24 = vpop.permute.xlu0 %4795 }
 0xd3c   :  { %v4802_v26 = vsel %vm4700_vm0, %v4796_v24, %v4798_v18 }
 0xd3d   :  { %v4704_v9 = vmax.f32 %v4703_v0, 0.0 }
 0xd3f   :  { %4872 = vmatmul.mubr.f32.vlgmr.msra.gmra.mxu1 %v4704_v9  ;;  %4942 = vmatmul.mubr.f32.vlgmr.msra.gmra.mxu0 %v4704_v9 }
 0xd40   :  { %5612 = vmatprep.mubr.msk.f32.mxu1 %vm5777_vm14, %v5740_v6  ;;  %5581 = vmatpush3.msra.mxu1 %v4979_v53 }
 0xd41   :  { %5582 = vmatprep.subr.mxu1 %v5740_v6 }
 0xd42   :  { %5583 = vmatpush3.msra.mxu1 %v4978_v17 }
 0xd43   :  { %5584 = vmatprep.subr.mxu1 %v5740_v6 }
 0xd44   :  { %5585 = vmatpush3.msra.mxu1 %v4977_v4 }
 0xd45   :  { %5586 = vmatprep.subr.mxu1 %v5740_v6 }
 0xd46   :  { %5587 = vmatpush3.msra.mxu1 %v4976_v5 }
 0xd47   :  { %5588 = vmatprep.subr.mxu1 %v5740_v6 }
 0xd48   :  { %5589 = vmatpush3.msra.mxu1 %v4975_v29 }
 0xd49   :  { %5590 = vmatprep.subr.mxu1 %v5740_v6 }
 0xd4a   :  { %5591 = vmatpush3.msra.mxu1 %v4974_v30 }
 0xd4b   :  { %5592 = vmatprep.subr.mxu1 %v5740_v6 }
 0xd4c   :  { %5593 = vmatpush3.msra.mxu1 %v4973_v35 }
 0xd4d   :  { %5594 = vmatprep.subr.mxu1 %v5740_v6 }
 0xd4e   :  { %5595 = vmatpush3.msra.mxu1 %v4972_v34 }
 0xd4f   :  { %5596 = vmatprep.subr.mxu1 %v5740_v6 }
 0xd50   :  { %5597 = vmatpush3.msra.mxu1 %v4971_v60 }
 0xd51   :  { %5598 = vmatprep.subr.mxu1 %v5740_v6 }
 0xd52   :  { %5599 = vmatpush3.msra.mxu1 %v4970_v33 }
 0xd53   :  { %5600 = vmatprep.subr.mxu1 %v5740_v6 }
 0xd54   :  { %5601 = vmatpush3.msra.mxu1 %v4969_v51 }
 0xd55   :  { %5602 = vmatprep.subr.mxu1 %v5740_v6 }
 0xd56   :  { %5603 = vmatpush3.msra.mxu1 %v4968_v11 }
 0xd57   :  { %5604 = vmatprep.subr.mxu1 %v5740_v6 }
 0xd58   :  { %5605 = vmatpush3.msra.mxu1 %v4967_v57 }
 0xd59   :  { %5606 = vmatprep.subr.mxu1 %v5740_v6 }
 0xd5a   :  { %5607 = vmatpush3.msra.mxu1 %v4966_v19 }
 0xd5b   :  { %5608 = vmatprep.subr.mxu1 %v5740_v6 }
 0xd5c   :  { %5609 = vmatpush3.msra.mxu1 %v4965_v32 }
 0xd5d   :  { %5610 = vmatprep.subr.mxu1 %v5740_v6  ;;  %v4803_v6 = vsel %vm4700_vm0, %v4798_v18, %v4800_v41 }
 0xd5e   :  { %5611 = vmatpush3.msra.mxu1 %v4964_v20 }
 0xd91   :  { %v4987_v39 = vpop.permute.xlu1 %4986 }
 0xdff   :  { %v4873_v25 = vpop.f32.mrf.mxu1  ;;  %v4943_v15 = vpop.f32.mrf.mxu0 }
 0xe00   :  { %v4874_v62 = vadd.f32 %v4873_v25, %v4801_v56  ;;  %v4944_v3 = vadd.f32 %v4943_v15, %v4802_v26 }
 0xe01   :  { %v4875_v1 = vpop.f32.mrf.mxu1  ;;  %v4945_v58 = vpop.f32.mrf.mxu0 }
 0xe02   :  { %v5213_v42 = vmul.f32 -1.442695, %v4874_v62  ;;  %v4946_v61 = vadd.f32 %v4945_v58, %v4803_v6 }
 0xe04   :  { %5674 = vpow2.f32 %v5213_v42  ;;  %v5214_v54 = vmul.f32 -1.442695, %v4946_v61 }
 0xe06   :  { %5676 = vpow2.f32 %v5214_v54 }
 0xe07   :  { %5678 = vtanh.f32 %v4944_v3 }
 0xe11   :  { %v5675_v8 = vpop.eup %5674 }
 0xe12   :  { %v4951_v52 = vadd.f32 1.0, %v5675_v8 }
 0xe13   :  { %v5677_v50 = vpop.eup %5676 }
 0xe14   :  { %5680 = vrcp.f32 %v4951_v52  ;;  %v4958_v55 = vadd.f32 1.0, %v5677_v50  ;;  %v5679_v37 = vpop.eup %5678 }
 0xe16   :  { %5682 = vrcp.f32 %v4958_v55 }
 0xe21   :  { %v5681_v22 = vpop.eup %5680 }
 0xe22   :  { %v4961_v43 = vmul.f32 %v5681_v22, %v5679_v37 }
 0xe23   :  { %v5683_v44 = vpop.eup %5682 }
 0xe24   :  { %5684 = vtanh.f32 %v4961_v43 }
 0xe31   :  { %v5685_v63 = vpop.eup %5684 }
 0xe32   :  { %v4963_v38 = vmul.f32 %v5685_v63, %v5683_v44 }
 0xe34   :  { %5613 = vmatmul.mubr.f32.vlgmr.msra.gmra.mxu1 %v4963_v38 }
 0xef4   :  { %v5055_v7 = vpop.f32.mrf.mxu1 }
 0xef5   :  { %v5056_v13 = vadd.f32 %v5055_v7, %v4987_v39 }
 0xef6   :  { %v5614_v21 = vpop.f32.mrf.mxu1 }
 0xef7   :  { %v5060_v16 = vsel %vm5059_vm9, %v5056_v13, -inf  ;;  %5072 = vst.msk [vmem:[#allocation4] sm:$0x1] %vm5059_vm9, %v5056_v13 }
 0xef8   :  { %5061 = vmax.xlane.f32.xlu0 %v5060_v16 }
 0xf81   :  { %v5062_v14 = vpop.xlane.xlu0 %5061 }
 0xf82   :  { %v5063_v12 = vsub.f32 %v5056_v13, %v5062_v14 }
 0xf84   :  { %v5064_v31 = vmul.f32 1.442695, %v5063_v12 }
 0xf86   :  { %5686 = vpow2.f32 %v5064_v31 }
 0xf93   :  { %v5687_v59 = vpop.eup %5686 }
 0xf94   :  { %v5066_v28 = vsel %vm5059_vm9, %v5687_v59, 0.0 }
 0xf95   :  { %5067 = vadd.xlane.f32.xlu1 %v5066_v28 }
 0xf96   :  { %5706 = shalt.err (!%p5703_p4)
}
 0xf97   :  { %s8432_s8 = sld [smem:[#allocation12_spill]]  ;;  %s5781_s13 = smov [#allocation2]  }
 0xf98   :  { %s5079_s7 = sshll.u32 %s5781_s13, 4  ;;  %s5080_s7 = int_to_ptr.vmem [resolvable:$true] %s5079_s7 }
 0xf99   :  { %s5715_s0 = scalar_lea.vmem %s5080_s7, 16  ;;  %s5719_s9 = scalar_lea.vmem %s5080_s7, 32 }
 0xf9a   :  { %p5716_p5 = scmp.ne.s32.totalorder %s5080_s7, %s5715_s0  ;;  %p5720_p6 = scmp.lt.s32.totalorder %s5080_s7, %s5080_s7 }
 0xf9b   :  { %p5721_p7 = scmp.lt.s32.totalorder %s5719_s9, %s5715_s0 }
 0xf9d   :  { %5092 = dma.vmem_to_hbm [thread:$0]  %s5090_s26, 16, %s8432_s8, [#allocation5]  }
 0xf9e   :  { %p5722_p8 = por %p5721_p7, %p5720_p6 }
 0xfa0   :  { %p5723_p9 = pnand %p5722_p8, %p5716_p5 }
0x101e   :  { %v5068_v48 = vpop.xlane.xlu1 %5067 }
0x101f   :  { %5688 = vrcp.f32 %v5068_v48 }
0x102c   :  { %v5689_v40 = vpop.eup %5688 }
0x102d   :  { %v5070_v23 = vmul.f32 %v5689_v40, %v5687_v59 }
0x102f   :  { %5071 = vst.msk [vmem:[#allocation2] sm:$0x1] %vm5059_vm9, %v5070_v23 }
0x1030   :  { %5726 = shalt.err (!%p5723_p9)
}
0x1031   :  { %s8433_s17 = sld [smem:[#allocation11_spill]] }
0x1037   :  { %5082 = dma.vmem_to_hbm [thread:$0]  %s5080_s7, 16, %s8433_s17, [#allocation3]  }
0x1038   :  { %5735 = dma.done.wait [#allocation3], 16  }
0x1039   :  { %5736 = vsyncadd [#allocation3], 4294967280 }
0x103a   :  { %5737 = dma.done.wait [#allocation5], 16  }
0x103b   :  { %5738 = vsyncadd [#allocation5], 4294967280 }
0x103c   :  { %5099 = vsyncpa [#allocation3], 1 }
0x103d   :  { %5100 = vsyncpa [#allocation5], 1 }

</bundles_post_ra>
